<compile_context>
chip_gen: v7x
topology: tpu7x:2x2x1
jax: 0.10.0
libtpu: 0.0.40
codegen_flags: <defaults>
</compile_context>

<pallas_src>
import functools

import jax
import jax.numpy as jnp
from jax.experimental import pallas as pl
from jax.experimental.pallas import tpu as pltpu


def _vmem():
    return pl.BlockSpec(memory_space=pltpu.MemorySpace.VMEM)


def _conv_lengths(seq_len, num_layers):
    ls = [seq_len]
    for _ in range(num_layers):
        ls.append(ls[-1] // 2 + 1)
    return ls


# --------------------------------------------------------------------------
# The fused kernel
# --------------------------------------------------------------------------

def _hybrid_kernel(x_ref, c0w_ref, c0b_ref, cw01_ref, cb_ref,
                   wd_ref, bd_ref,
                   wihf_ref, whhf_ref, bf_ref,
                   wihb_ref, whhb_ref, bb_ref,
                   wih1_ref, whh1_ref, b1_ref,
                   lng_ref, lnb_ref,
                   whl_ref, whc_ref, bout_ref,
                   out_ref,
                   cin_ref, cout_ref, x1s_ref, lns_ref,
                   *, h_real):
    f32 = jnp.float32
    B, T = x_ref.shape
    C = c0w_ref.shape[1]
    hp = whhf_ref.shape[0]                                # padded hidden (32)
    x2d = x_ref[...]                                      # (B, T)

    # ---------------- conv branch (BN folded host-side, eval mode) ---------
    # Conv1d(kernel=2, stride=2, padding=1): out[j] = x[2j-1]*w0 + x[2j]*w1
    # (pad contributes 0 at the edges).
    # Layer 0 (Cin == 1): pure VPU broadcast multiplies; outputs stacked
    # position-major into the cout scratch slab (rows j*B:(j+1)*B = pos j).
    c0w = c0w_ref[...]                                    # (2, C)
    c0b = c0b_ref[...]                                    # (1, C)
    L = T
    Lout = L // 2 + 1
    for j in range(Lout):
        if j == 0:
            acc = x2d[:, 0:1] * c0w[1:2, :] + c0b         # left pad -> no w0
        else:
            acc = x2d[:, 2 * j - 1:2 * j] * c0w[0:1, :] + c0b
            if 2 * j < L:
                acc = acc + x2d[:, 2 * j:2 * j + 1] * c0w[1:2, :]
        cout_ref[j * B:(j + 1) * B, :] = jnp.maximum(acc, 0.0)
    L = Lout

    # Deeper layers: assemble [x[2j-1] | x[2j]] rows in the cin slab, then ONE
    # (Lout*B, 2C) @ (2C, C) matmul per layer (K = 128).
    ztile = jnp.zeros((B, C), f32)
    for i in range(cw01_ref.shape[0]):
        Lout = L // 2 + 1
        for j in range(Lout):
            a = ztile if j == 0 else cout_ref[(2 * j - 1) * B:(2 * j) * B, :]
            b = cout_ref[(2 * j) * B:(2 * j + 1) * B, :] if 2 * j < L else ztile
            cin_ref[j * B:(j + 1) * B, 0:C] = a
            cin_ref[j * B:(j + 1) * B, C:2 * C] = b
        y = jnp.maximum(
            jnp.dot(cin_ref[0:Lout * B, :], cw01_ref[i],
                    preferred_element_type=f32) + cb_ref[i], 0.0)
        cout_ref[0:Lout * B, :] = y
        L = Lout

    conv_flat = jnp.concatenate(
        [cout_ref[j * B:(j + 1) * B, :] for j in range(L)], axis=-1)  # (B,C*Lf)
    h_conv = jnp.maximum(
        jnp.dot(conv_flat, wd_ref[...], preferred_element_type=f32)
        + bd_ref[...], 0.0)                               # (B, dense_neurons)

    # ---------------- LSTM branch ------------------------------------------
    def cell(gates, c):
        # Full-tile activations (2 EUP passes over one (B, 128) vreg row),
        # then 32-lane-aligned slices.  Pad lanes: gates == 0 -> g == 0, so
        # c/h stay exactly 0 (weight/bias pad columns are zero).
        sig = jax.nn.sigmoid(gates)
        tnh = jnp.tanh(gates)
        i = sig[:, 0 * hp:1 * hp]
        f = sig[:, 1 * hp:2 * hp]
        g = tnh[:, 2 * hp:3 * hp]
        o = sig[:, 3 * hp:4 * hp]
        c = f * c + i * g
        return o * jnp.tanh(c), c

    wihf = wihf_ref[...]; whhf = whhf_ref[...]; bf = bf_ref[...]
    wihb = wihb_ref[...]; whhb = whhb_ref[...]; bb = bb_ref[...]

    # Hoisted lstm0 input projections (+bias): Din == 1 so these are VPU
    # broadcast multiplies, fully off the recurrent critical path.
    xwf = [x2d[:, t:t + 1] * wihf + bf for t in range(T)]
    xwb = [x2d[:, t:t + 1] * wihb + bb for t in range(T)]

    zeros = jnp.zeros((B, hp), f32)
    h_f, c_f, h_b, c_b = zeros, zeros, zeros, zeros
    # Forward & backward chains interleaved (independent -> ILP).  Hidden
    # states go straight into the (T*B, 2*hp) x1 scratch slab so the lstm1
    # input GEMM can be done in one matmul afterwards.
    for s in range(T):
        tb = T - 1 - s
        gf = xwf[s] + jnp.dot(h_f, whhf, preferred_element_type=f32)
        h_f, c_f = cell(gf, c_f)
        x1s_ref[s * B:(s + 1) * B, 0:hp] = h_f
        gb = xwb[tb] + jnp.dot(h_b, whhb, preferred_element_type=f32)
        h_b, c_b = cell(gb, c_b)
        x1s_ref[tb * B:(tb + 1) * B, hp:2 * hp] = h_b

    # lstm1 input projection for all T steps at once: (T*B, 2hp) @ (2hp, 4hp).
    g1_pre = (jnp.dot(x1s_ref[...], wih1_ref[...], preferred_element_type=f32)
              + b1_ref[...])                              # (T*B, 4*hp)

    whh1 = whh1_ref[...]
    lng = lng_ref[...]                                    # (1, hp), pads = 0
    lnb = lnb_ref[...]
    lane = jax.lax.broadcasted_iota(jnp.int32, (1, hp), 1)
    lmask = (lane < h_real).astype(f32)                   # 1 on real lanes
    inv_h = 1.0 / float(h_real)

    h1, c1 = zeros, zeros
    for t in range(T):
        g1 = g1_pre[t * B:(t + 1) * B, :] + jnp.dot(
            h1, whh1, preferred_element_type=f32)
        h1, c1 = cell(g1, c1)
        # 32-lane-aligned LayerNorm: pad lanes of h1 are exactly 0; use the
        # masked centered form (not E[x^2]-mu^2), divide by the real width.
        mu = jnp.sum(h1, axis=-1, keepdims=True) * inv_h
        cen = (h1 - mu) * lmask
        var = jnp.sum(cen * cen, axis=-1, keepdims=True) * inv_h
        lns_ref[:, t * hp:(t + 1) * hp] = (
            cen * jax.lax.rsqrt(var + 1e-5) * lng + lnb)

    # ---------------- fused heads: single lane-dense (B, n_pad) output -----
    logits = (jnp.dot(lns_ref[...], whl_ref[...], preferred_element_type=f32)
              + jnp.dot(h_conv, whc_ref[...], preferred_element_type=f32)
              + bout_ref[...])
    out_ref[...] = logits


def hybrid_lstm_forward(x, packed, *, h_real, n_ml, n_mc):
    # x: (B, T, 1).  Returns (multilabel_logits, multiclass_logits).
    B, T, _ = x.shape
    x2d = x[:, :, 0]
    hp = packed['whh0f'].shape[0]
    C = packed['c0_w'].shape[1]
    n_pad = packed['b_out'].shape[1]
    Lc = (T // 2 + 1) * B                                 # max stacked conv rows
    args = (x2d,
            packed['c0_w'], packed['c0_b'], packed['cw01'], packed['cb'],
            packed['wd'], packed['bd'],
            packed['wih0f'], packed['whh0f'], packed['b0f'],
            packed['wih0b'], packed['whh0b'], packed['b0b'],
            packed['wih1'], packed['whh1'], packed['b1'],
            packed['ln_g'], packed['ln_b'],
            packed['wh_l'], packed['wh_c'], packed['b_out'])
    out = pl.pallas_call(
        functools.partial(_hybrid_kernel, h_real=h_real),
        out_shape=jax.ShapeDtypeStruct((B, n_pad), jnp.float32),
        in_specs=[_vmem()] * len(args),
        out_specs=_vmem(),
        scratch_shapes=[pltpu.VMEM((Lc, 2 * C), jnp.float32),       # conv X slab
                        pltpu.VMEM((Lc, C), jnp.float32),           # conv out slab
                        pltpu.VMEM((T * B, 2 * hp), jnp.float32),   # lstm1 input
                        pltpu.VMEM((B, T * hp), jnp.float32)],      # LN out slab
    )(*args)
    return out[:, :n_ml], out[:, n_ml:n_ml + n_mc]


# --------------------------------------------------------------------------
# Parameters: PyTorch-layout synthetic init + one-time packing / folding
# --------------------------------------------------------------------------

def init_params(key, seq_len, n_multilabel, n_multiclass, *,
                filters=64, filterslstm=30, num_conv_layers=6, dense_neurons=80):
    keys = iter(jax.random.split(key, 128))

    def nrm(shape, scale=0.1):
        return scale * jax.random.normal(next(keys), shape, jnp.float32)

    conv = []
    cin = 1
    for _ in range(num_conv_layers):
        conv.append(dict(
            w=nrm((filters, cin, 2), 0.2),
            b=nrm((filters,)),
            gamma=1.0 + nrm((filters,)),
            beta=nrm((filters,)),
            mean=nrm((filters,)),
            var=1.0 + 0.1 * jax.random.uniform(next(keys), (filters,), jnp.float32),
        ))
        cin = filters
    lengths = _conv_lengths(seq_len, num_conv_layers)
    conv_output_size = filters * lengths[-1]

    H = filterslstm

    def lstm_raw(din):
        return dict(w_ih=nrm((4 * H, din), 0.2), w_hh=nrm((4 * H, H), 0.2),
                    b_ih=nrm((4 * H,)), b_hh=nrm((4 * H,)))

    final_input = H * seq_len + dense_neurons
    return dict(
        conv=conv,
        dense_conv_w=nrm((dense_neurons, conv_output_size)),
        dense_conv_b=nrm((dense_neurons,)),
        lstm0_fw=lstm_raw(1),
        lstm0_bw=lstm_raw(1),
        lstm1=lstm_raw(2 * H),
        ln_g=1.0 + nrm((H,)),
        ln_b=nrm((H,)),
        ml_w=nrm((n_multilabel, final_input)),
        ml_b=nrm((n_multilabel,)),
        mc_w=nrm((n_multiclass, final_input)),
        mc_b=nrm((n_multiclass,)),
    )


def _pack_lstm(p, H, Hp, split_input=False):
    # PyTorch: w_ih (4H, Din), w_hh (4H, H), gate order i,f,g,o.
    # Pack to Wih (Din_pad, 4*Hp), Whh (Hp, 4*Hp), b (1, 4*Hp); padded
    # rows/cols are zero so padded hidden lanes stay exactly 0.
    w_ih, w_hh = p['w_ih'], p['w_hh']
    bb = p['b_ih'] + p['b_hh']
    pad_h = Hp - H
    wih_blk, whh_blk, b_blk = [], [], []
    for k in range(4):
        wk = w_ih[k * H:(k + 1) * H, :].T                      # (Din, H)
        if split_input:                                        # Din == 2H
            wk = jnp.concatenate(
                [jnp.pad(wk[:H], ((0, pad_h), (0, 0))),
                 jnp.pad(wk[H:], ((0, pad_h), (0, 0)))], axis=0)
        wih_blk.append(jnp.pad(wk, ((0, 0), (0, pad_h))))
        whh_blk.append(jnp.pad(w_hh[k * H:(k + 1) * H, :].T,
                               ((0, pad_h), (0, pad_h))))
        b_blk.append(jnp.pad(bb[k * H:(k + 1) * H], (0, pad_h)))
    return (jnp.concatenate(wih_blk, axis=1),
            jnp.concatenate(whh_blk, axis=1),
            jnp.concatenate(b_blk).reshape(1, 4 * Hp))


def prepare_params(params, seq_len, *, hp=32):
    conv = params['conv']
    C = conv[0]['w'].shape[0]
    eps = 1e-5

    def fold(lp):      # fold eval-mode BatchNorm1d into conv weight / bias
        scale = lp['gamma'] * jax.lax.rsqrt(lp['var'] + eps)
        wf = lp['w'] * scale[:, None, None]                    # (Cout, Cin, 2)
        bf = (lp['b'] - lp['mean']) * scale + lp['beta']
        return wf, bf

    w0_fold, b0_fold = fold(conv[0])                           # Cin == 1
    c0_w = jnp.stack([w0_fold[:, 0, 0], w0_fold[:, 0, 1]], axis=0)  # (2, C)
    c0_b = b0_fold.reshape(1, C)

    cw01, cb = [], []
    for lp in conv[1:]:
        wf, bfold = fold(lp)
        # vstack([w0, w1]) so the kernel's [x[2j-1] | x[2j]] rows hit one
        # K = 2C matmul per layer.
        cw01.append(jnp.concatenate([wf[:, :, 0].T, wf[:, :, 1].T], axis=0))
        cb.append(bfold.reshape(1, C))
    cw01 = jnp.stack(cw01)                                     # (L-1, 2C, C)
    cb = jnp.stack(cb)

    # dense_conv: permute flattened-feature columns from PyTorch channel-major
    # (c*Lf + l) order to the kernel's position-major (l*C + c) order.
    Lf = _conv_lengths(seq_len, len(conv))[-1]
    perm = jnp.array([c * Lf + l for l in range(Lf) for c in range(C)],
                     jnp.int32)
    wd = params['dense_conv_w'][:, perm].T                     # (C*Lf, dense)
    bd = params['dense_conv_b'].reshape(1, -1)

    H = params['ln_g'].shape[0]
    wih0f, whh0f, b0f = _pack_lstm(params['lstm0_fw'], H, hp)
    wih0b, whh0b, b0b = _pack_lstm(params['lstm0_bw'], H, hp)
    wih1, whh1, b1 = _pack_lstm(params['lstm1'], H, hp, split_input=True)

    # LayerNorm params zero-padded to the 32-lane tile.
    ln_g = jnp.pad(params['ln_g'], (0, hp - H)).reshape(1, hp)
    ln_b = jnp.pad(params['ln_b'], (0, hp - H)).reshape(1, hp)

    # Heads: one lane-padded (F, n_pad) weight.  The lstm block gets zero rows
    # inserted for the padded hidden lanes so the kernel consumes the aligned
    # (B, T*hp) LN slab directly; split into lstm / conv row blocks so the
    # kernel never lane-concats lstm_flat with h_conv.
    n_ml = params['ml_b'].shape[0]
    n_mc = params['mc_b'].shape[0]
    n_tot = n_ml + n_mc
    n_pad = ((n_tot + 127) // 128) * 128
    w_all = jnp.concatenate([params['ml_w'], params['mc_w']], axis=0).T
    w_all = jnp.pad(w_all, ((0, 0), (0, n_pad - n_tot)))       # (F, n_pad)
    w_lstm = w_all[:H * seq_len, :].reshape(seq_len, H, n_pad)
    w_lstm = jnp.pad(w_lstm, ((0, 0), (0, hp - H), (0, 0)))
    wh_l = w_lstm.reshape(seq_len * hp, n_pad)                 # (T*hp, n_pad)
    wh_c = w_all[H * seq_len:, :]                              # (dense, n_pad)
    b_out = jnp.pad(jnp.concatenate([params['ml_b'], params['mc_b']]),
                    (0, n_pad - n_tot)).reshape(1, n_pad)

    return dict(
        c0_w=c0_w, c0_b=c0_b, cw01=cw01, cb=cb, wd=wd, bd=bd,
        wih0f=wih0f, whh0f=whh0f, b0f=b0f,
        wih0b=wih0b, whh0b=whh0b, b0b=b0b,
        wih1=wih1, whh1=whh1, b1=b1,
        ln_g=ln_g, ln_b=ln_b,
        wh_l=wh_l, wh_c=wh_c, b_out=b_out,
    )


# --------------------------------------------------------------------------

if __name__ == "__main__":
    seq_len = 8
    n_multilabel = 6
    n_multiclass = 5
    batch = 2

    key = jax.random.PRNGKey(0)
    raw_params = init_params(key, seq_len, n_multilabel, n_multiclass)
    packed = prepare_params(raw_params, seq_len)
    H = raw_params['ln_g'].shape[0]
    x = jax.random.normal(jax.random.fold_in(key, 999),
                          (batch, seq_len, 1), jnp.float32)

    fwd = jax.jit(functools.partial(hybrid_lstm_forward,
                                    h_real=H, n_ml=n_multilabel,
                                    n_mc=n_multiclass))
    out_ml, out_mc = fwd(x, packed)
    jax.block_until_ready((out_ml, out_mc))

    assert out_ml.shape == (batch, n_multilabel), out_ml.shape
    assert out_mc.shape == (batch, n_multiclass), out_mc.shape
    assert jnp.all(jnp.isfinite(out_ml)) and jnp.all(jnp.isfinite(out_mc))
    print("KERNEL_OK")
</pallas_src>

<mosaic_0001>
module attributes {stable_mosaic.version = 11 : i64} {
  func.func @_hybrid_kernel(%arg0: memref<2x8xf32, #tpu.memory_space<vmem>>, %arg1: memref<2x64xf32, #tpu.memory_space<vmem>>, %arg2: memref<1x64xf32, #tpu.memory_space<vmem>>, %arg3: memref<5x128x64xf32, #tpu.memory_space<vmem>>, %arg4: memref<5x1x64xf32, #tpu.memory_space<vmem>>, %arg5: memref<128x80xf32, #tpu.memory_space<vmem>>, %arg6: memref<1x80xf32, #tpu.memory_space<vmem>>, %arg7: memref<1x128xf32, #tpu.memory_space<vmem>>, %arg8: memref<32x128xf32, #tpu.memory_space<vmem>>, %arg9: memref<1x128xf32, #tpu.memory_space<vmem>>, %arg10: memref<1x128xf32, #tpu.memory_space<vmem>>, %arg11: memref<32x128xf32, #tpu.memory_space<vmem>>, %arg12: memref<1x128xf32, #tpu.memory_space<vmem>>, %arg13: memref<64x128xf32, #tpu.memory_space<vmem>>, %arg14: memref<32x128xf32, #tpu.memory_space<vmem>>, %arg15: memref<1x128xf32, #tpu.memory_space<vmem>>, %arg16: memref<1x32xf32, #tpu.memory_space<vmem>>, %arg17: memref<1x32xf32, #tpu.memory_space<vmem>>, %arg18: memref<256x128xf32, #tpu.memory_space<vmem>>, %arg19: memref<80x128xf32, #tpu.memory_space<vmem>>, %arg20: memref<1x128xf32, #tpu.memory_space<vmem>>, %arg21: memref<2x128xf32, #tpu.memory_space<vmem>>, %arg22: memref<10x128xf32, #tpu.memory_space<vmem>>, %arg23: memref<10x64xf32, #tpu.memory_space<vmem>>, %arg24: memref<16x64xf32, #tpu.memory_space<vmem>>, %arg25: memref<2x256xf32, #tpu.memory_space<vmem>>) attributes {dimension_semantics = [], scalar_prefetch = 0 : i64, scratch_operands = 4 : i64, tpu.core_type = #tpu.core_type<tc>} {
    %c0 = arith.constant 0 : index
    %c0_0 = arith.constant 0 : index
    %0 = vector.load %arg0[%c0, %c0_0] : memref<2x8xf32, #tpu.memory_space<vmem>>, vector<2x8xf32>
    %c0_1 = arith.constant 0 : index
    %c0_2 = arith.constant 0 : index
    %1 = vector.load %arg1[%c0_1, %c0_2] : memref<2x64xf32, #tpu.memory_space<vmem>>, vector<2x64xf32>
    %c0_3 = arith.constant 0 : index
    %c0_4 = arith.constant 0 : index
    %2 = vector.load %arg2[%c0_3, %c0_4] : memref<1x64xf32, #tpu.memory_space<vmem>>, vector<1x64xf32>
    %3 = vector.extract_strided_slice %0 {offsets = [0, 0], sizes = [2, 1], strides = [1, 1]} : vector<2x8xf32> to vector<2x1xf32>
    %4 = vector.extract_strided_slice %1 {offsets = [1, 0], sizes = [1, 64], strides = [1, 1]} : vector<2x64xf32> to vector<1x64xf32>
    %5 = vector.broadcast %3 : vector<2x1xf32> to vector<2x64xf32>
    %6 = vector.broadcast %4 : vector<1x64xf32> to vector<2x64xf32>
    %7 = arith.mulf %5, %6 : vector<2x64xf32>
    %8 = vector.broadcast %2 : vector<1x64xf32> to vector<2x64xf32>
    %9 = arith.addf %7, %8 : vector<2x64xf32>
    %cst = arith.constant 0.000000e+00 : f32
    %10 = vector.broadcast %cst : f32 to vector<2x64xf32>
    %11 = arith.maximumf %9, %10 : vector<2x64xf32>
    %c0_5 = arith.constant 0 : index
    %c0_6 = arith.constant 0 : index
    %12 = vector.load %arg23[%c0_5, %c0_6] : memref<10x64xf32, #tpu.memory_space<vmem>>, vector<2x64xf32>
    tpu.vector_store %arg23[%c0_5, %c0_6], %11 {strides = array<i32>} : memref<10x64xf32, #tpu.memory_space<vmem>>, vector<2x64xf32>,
    %13 = vector.extract_strided_slice %0 {offsets = [0, 1], sizes = [2, 1], strides = [1, 1]} : vector<2x8xf32> to vector<2x1xf32>
    %14 = vector.extract_strided_slice %1 {offsets = [0, 0], sizes = [1, 64], strides = [1, 1]} : vector<2x64xf32> to vector<1x64xf32>
    %15 = vector.broadcast %13 : vector<2x1xf32> to vector<2x64xf32>
    %16 = vector.broadcast %14 : vector<1x64xf32> to vector<2x64xf32>
    %17 = arith.mulf %15, %16 : vector<2x64xf32>
    %18 = vector.broadcast %2 : vector<1x64xf32> to vector<2x64xf32>
    %19 = arith.addf %17, %18 : vector<2x64xf32>
    %20 = vector.extract_strided_slice %0 {offsets = [0, 2], sizes = [2, 1], strides = [1, 1]} : vector<2x8xf32> to vector<2x1xf32>
    %21 = vector.extract_strided_slice %1 {offsets = [1, 0], sizes = [1, 64], strides = [1, 1]} : vector<2x64xf32> to vector<1x64xf32>
    %22 = vector.broadcast %20 : vector<2x1xf32> to vector<2x64xf32>
    %23 = vector.broadcast %21 : vector<1x64xf32> to vector<2x64xf32>
    %24 = arith.mulf %22, %23 : vector<2x64xf32>
    %25 = arith.addf %19, %24 : vector<2x64xf32>
    %cst_7 = arith.constant 0.000000e+00 : f32
    %26 = vector.broadcast %cst_7 : f32 to vector<2x64xf32>
    %27 = arith.maximumf %25, %26 : vector<2x64xf32>
    %c2 = arith.constant 2 : index
    %c0_8 = arith.constant 0 : index
    %28 = vector.load %arg23[%c2, %c0_8] : memref<10x64xf32, #tpu.memory_space<vmem>>, vector<2x64xf32>
    tpu.vector_store %arg23[%c2, %c0_8], %27 {strides = array<i32>} : memref<10x64xf32, #tpu.memory_space<vmem>>, vector<2x64xf32>,
    %29 = vector.extract_strided_slice %0 {offsets = [0, 3], sizes = [2, 1], strides = [1, 1]} : vector<2x8xf32> to vector<2x1xf32>
    %30 = vector.extract_strided_slice %1 {offsets = [0, 0], sizes = [1, 64], strides = [1, 1]} : vector<2x64xf32> to vector<1x64xf32>
    %31 = vector.broadcast %29 : vector<2x1xf32> to vector<2x64xf32>
    %32 = vector.broadcast %30 : vector<1x64xf32> to vector<2x64xf32>
    %33 = arith.mulf %31, %32 : vector<2x64xf32>
    %34 = vector.broadcast %2 : vector<1x64xf32> to vector<2x64xf32>
    %35 = arith.addf %33, %34 : vector<2x64xf32>
    %36 = vector.extract_strided_slice %0 {offsets = [0, 4], sizes = [2, 1], strides = [1, 1]} : vector<2x8xf32> to vector<2x1xf32>
    %37 = vector.extract_strided_slice %1 {offsets = [1, 0], sizes = [1, 64], strides = [1, 1]} : vector<2x64xf32> to vector<1x64xf32>
    %38 = vector.broadcast %36 : vector<2x1xf32> to vector<2x64xf32>
    %39 = vector.broadcast %37 : vector<1x64xf32> to vector<2x64xf32>
    %40 = arith.mulf %38, %39 : vector<2x64xf32>
    %41 = arith.addf %35, %40 : vector<2x64xf32>
    %cst_9 = arith.constant 0.000000e+00 : f32
    %42 = vector.broadcast %cst_9 : f32 to vector<2x64xf32>
    %43 = arith.maximumf %41, %42 : vector<2x64xf32>
    %c4 = arith.constant 4 : index
    %c0_10 = arith.constant 0 : index
    %44 = vector.load %arg23[%c4, %c0_10] : memref<10x64xf32, #tpu.memory_space<vmem>>, vector<2x64xf32>
    tpu.vector_store %arg23[%c4, %c0_10], %43 {strides = array<i32>} : memref<10x64xf32, #tpu.memory_space<vmem>>, vector<2x64xf32>,
    %45 = vector.extract_strided_slice %0 {offsets = [0, 5], sizes = [2, 1], strides = [1, 1]} : vector<2x8xf32> to vector<2x1xf32>
    %46 = vector.extract_strided_slice %1 {offsets = [0, 0], sizes = [1, 64], strides = [1, 1]} : vector<2x64xf32> to vector<1x64xf32>
    %47 = vector.broadcast %45 : vector<2x1xf32> to vector<2x64xf32>
    %48 = vector.broadcast %46 : vector<1x64xf32> to vector<2x64xf32>
    %49 = arith.mulf %47, %48 : vector<2x64xf32>
    %50 = vector.broadcast %2 : vector<1x64xf32> to vector<2x64xf32>
    %51 = arith.addf %49, %50 : vector<2x64xf32>
    %52 = vector.extract_strided_slice %0 {offsets = [0, 6], sizes = [2, 1], strides = [1, 1]} : vector<2x8xf32> to vector<2x1xf32>
    %53 = vector.extract_strided_slice %1 {offsets = [1, 0], sizes = [1, 64], strides = [1, 1]} : vector<2x64xf32> to vector<1x64xf32>
    %54 = vector.broadcast %52 : vector<2x1xf32> to vector<2x64xf32>
    %55 = vector.broadcast %53 : vector<1x64xf32> to vector<2x64xf32>
    %56 = arith.mulf %54, %55 : vector<2x64xf32>
    %57 = arith.addf %51, %56 : vector<2x64xf32>
    %cst_11 = arith.constant 0.000000e+00 : f32
    %58 = vector.broadcast %cst_11 : f32 to vector<2x64xf32>
    %59 = arith.maximumf %57, %58 : vector<2x64xf32>
    %c6 = arith.constant 6 : index
    %c0_12 = arith.constant 0 : index
    %60 = vector.load %arg23[%c6, %c0_12] : memref<10x64xf32, #tpu.memory_space<vmem>>, vector<2x64xf32>
    tpu.vector_store %arg23[%c6, %c0_12], %59 {strides = array<i32>} : memref<10x64xf32, #tpu.memory_space<vmem>>, vector<2x64xf32>,
    %61 = vector.extract_strided_slice %0 {offsets = [0, 7], sizes = [2, 1], strides = [1, 1]} : vector<2x8xf32> to vector<2x1xf32>
    %62 = vector.extract_strided_slice %1 {offsets = [0, 0], sizes = [1, 64], strides = [1, 1]} : vector<2x64xf32> to vector<1x64xf32>
    %63 = vector.broadcast %61 : vector<2x1xf32> to vector<2x64xf32>
    %64 = vector.broadcast %62 : vector<1x64xf32> to vector<2x64xf32>
    %65 = arith.mulf %63, %64 : vector<2x64xf32>
    %66 = vector.broadcast %2 : vector<1x64xf32> to vector<2x64xf32>
    %67 = arith.addf %65, %66 : vector<2x64xf32>
    %cst_13 = arith.constant 0.000000e+00 : f32
    %68 = vector.broadcast %cst_13 : f32 to vector<2x64xf32>
    %69 = arith.maximumf %67, %68 : vector<2x64xf32>
    %c8 = arith.constant 8 : index
    %c0_14 = arith.constant 0 : index
    %70 = vector.load %arg23[%c8, %c0_14] : memref<10x64xf32, #tpu.memory_space<vmem>>, vector<2x64xf32>
    tpu.vector_store %arg23[%c8, %c0_14], %69 {strides = array<i32>} : memref<10x64xf32, #tpu.memory_space<vmem>>, vector<2x64xf32>,
    %cst_15 = arith.constant 0.000000e+00 : f32
    %71 = vector.broadcast %cst_15 : f32 to vector<2x64xf32>
    %c0_16 = arith.constant 0 : index
    %c0_17 = arith.constant 0 : index
    %72 = vector.load %arg23[%c0_16, %c0_17] : memref<10x64xf32, #tpu.memory_space<vmem>>, vector<2x64xf32>
    %c0_18 = arith.constant 0 : index
    %c0_19 = arith.constant 0 : index
    %73 = vector.load %arg22[%c0_18, %c0_19] : memref<10x128xf32, #tpu.memory_space<vmem>>, vector<2x64xf32>
    tpu.vector_store %arg22[%c0_18, %c0_19], %71 {strides = array<i32>} : memref<10x128xf32, #tpu.memory_space<vmem>>, vector<2x64xf32>,
    %c0_20 = arith.constant 0 : index
    %c64 = arith.constant 64 : index
    %74 = vector.load %arg22[%c0_20, %c64] : memref<10x128xf32, #tpu.memory_space<vmem>>, vector<2x64xf32>
    tpu.vector_store %arg22[%c0_20, %c64], %72 {strides = array<i32>} : memref<10x128xf32, #tpu.memory_space<vmem>>, vector<2x64xf32>,
    %c2_21 = arith.constant 2 : index
    %c0_22 = arith.constant 0 : index
    %75 = vector.load %arg23[%c2_21, %c0_22] : memref<10x64xf32, #tpu.memory_space<vmem>>, vector<2x64xf32>
    %c4_23 = arith.constant 4 : index
    %c0_24 = arith.constant 0 : index
    %76 = vector.load %arg23[%c4_23, %c0_24] : memref<10x64xf32, #tpu.memory_space<vmem>>, vector<2x64xf32>
    %c2_25 = arith.constant 2 : index
    %c0_26 = arith.constant 0 : index
    %77 = vector.load %arg22[%c2_25, %c0_26] : memref<10x128xf32, #tpu.memory_space<vmem>>, vector<2x64xf32>
    tpu.vector_store %arg22[%c2_25, %c0_26], %75 {strides = array<i32>} : memref<10x128xf32, #tpu.memory_space<vmem>>, vector<2x64xf32>,
    %c2_27 = arith.constant 2 : index
    %c64_28 = arith.constant 64 : index
    %78 = vector.load %arg22[%c2_27, %c64_28] : memref<10x128xf32, #tpu.memory_space<vmem>>, vector<2x64xf32>
    tpu.vector_store %arg22[%c2_27, %c64_28], %76 {strides = array<i32>} : memref<10x128xf32, #tpu.memory_space<vmem>>, vector<2x64xf32>,
    %c6_29 = arith.constant 6 : index
    %c0_30 = arith.constant 0 : index
    %79 = vector.load %arg23[%c6_29, %c0_30] : memref<10x64xf32, #tpu.memory_space<vmem>>, vector<2x64xf32>
    %c8_31 = arith.constant 8 : index
    %c0_32 = arith.constant 0 : index
    %80 = vector.load %arg23[%c8_31, %c0_32] : memref<10x64xf32, #tpu.memory_space<vmem>>, vector<2x64xf32>
    %c4_33 = arith.constant 4 : index
    %c0_34 = arith.constant 0 : index
    %81 = vector.load %arg22[%c4_33, %c0_34] : memref<10x128xf32, #tpu.memory_space<vmem>>, vector<2x64xf32>
    tpu.vector_store %arg22[%c4_33, %c0_34], %79 {strides = array<i32>} : memref<10x128xf32, #tpu.memory_space<vmem>>, vector<2x64xf32>,
    %c4_35 = arith.constant 4 : index
    %c64_36 = arith.constant 64 : index
    %82 = vector.load %arg22[%c4_35, %c64_36] : memref<10x128xf32, #tpu.memory_space<vmem>>, vector<2x64xf32>
    tpu.vector_store %arg22[%c4_35, %c64_36], %80 {strides = array<i32>} : memref<10x128xf32, #tpu.memory_space<vmem>>, vector<2x64xf32>,
    %c0_37 = arith.constant 0 : index
    %c0_38 = arith.constant 0 : index
    %83 = vector.load %arg22[%c0_37, %c0_38] : memref<10x128xf32, #tpu.memory_space<vmem>>, vector<6x128xf32>
    %c0_39 = arith.constant 0 : index
    %c0_40 = arith.constant 0 : index
    %c0_41 = arith.constant 0 : index
    %84 = vector.load %arg3[%c0_39, %c0_40, %c0_41] : memref<5x128x64xf32, #tpu.memory_space<vmem>>, vector<1x128x64xf32>
    %85 = vector.shape_cast %84 : vector<1x128x64xf32> to vector<128x64xf32>
    %cst_42 = arith.constant dense<0.000000e+00> : vector<6x64xf32>
    %86 = tpu.matmul %83, %85, %cst_42 {dimension_numbers = #tpu.dot_dimension_numbers<[1], [0], [0], [1], [0, 0, 1, 1], [], []>} : vector<6x128xf32>, vector<128x64xf32>, vector<6x64xf32> -> vector<6x64xf32>
    %c0_43 = arith.constant 0 : index
    %c0_44 = arith.constant 0 : index
    %c0_45 = arith.constant 0 : index
    %87 = vector.load %arg4[%c0_43, %c0_44, %c0_45] : memref<5x1x64xf32, #tpu.memory_space<vmem>>, vector<1x1x64xf32>
    %88 = vector.shape_cast %87 : vector<1x1x64xf32> to vector<1x64xf32>
    %89 = vector.broadcast %88 : vector<1x64xf32> to vector<6x64xf32>
    %90 = arith.addf %86, %89 : vector<6x64xf32>
    %cst_46 = arith.constant 0.000000e+00 : f32
    %91 = vector.broadcast %cst_46 : f32 to vector<6x64xf32>
    %92 = arith.maximumf %90, %91 : vector<6x64xf32>
    %c0_47 = arith.constant 0 : index
    %c0_48 = arith.constant 0 : index
    %93 = vector.load %arg23[%c0_47, %c0_48] : memref<10x64xf32, #tpu.memory_space<vmem>>, vector<6x64xf32>
    tpu.vector_store %arg23[%c0_47, %c0_48], %92 {strides = array<i32>} : memref<10x64xf32, #tpu.memory_space<vmem>>, vector<6x64xf32>,
    %c0_49 = arith.constant 0 : index
    %c0_50 = arith.constant 0 : index
    %94 = vector.load %arg23[%c0_49, %c0_50] : memref<10x64xf32, #tpu.memory_space<vmem>>, vector<2x64xf32>
    %c0_51 = arith.constant 0 : index
    %c0_52 = arith.constant 0 : index
    %95 = vector.load %arg22[%c0_51, %c0_52] : memref<10x128xf32, #tpu.memory_space<vmem>>, vector<2x64xf32>
    tpu.vector_store %arg22[%c0_51, %c0_52], %71 {strides = array<i32>} : memref<10x128xf32, #tpu.memory_space<vmem>>, vector<2x64xf32>,
    %c0_53 = arith.constant 0 : index
    %c64_54 = arith.constant 64 : index
    %96 = vector.load %arg22[%c0_53, %c64_54] : memref<10x128xf32, #tpu.memory_space<vmem>>, vector<2x64xf32>
    tpu.vector_store %arg22[%c0_53, %c64_54], %94 {strides = array<i32>} : memref<10x128xf32, #tpu.memory_space<vmem>>, vector<2x64xf32>,
    %c2_55 = arith.constant 2 : index
    %c0_56 = arith.constant 0 : index
    %97 = vector.load %arg23[%c2_55, %c0_56] : memref<10x64xf32, #tpu.memory_space<vmem>>, vector<2x64xf32>
    %c4_57 = arith.constant 4 : index
    %c0_58 = arith.constant 0 : index
    %98 = vector.load %arg23[%c4_57, %c0_58] : memref<10x64xf32, #tpu.memory_space<vmem>>, vector<2x64xf32>
    %c2_59 = arith.constant 2 : index
    %c0_60 = arith.constant 0 : index
    %99 = vector.load %arg22[%c2_59, %c0_60] : memref<10x128xf32, #tpu.memory_space<vmem>>, vector<2x64xf32>
    tpu.vector_store %arg22[%c2_59, %c0_60], %97 {strides = array<i32>} : memref<10x128xf32, #tpu.memory_space<vmem>>, vector<2x64xf32>,
    %c2_61 = arith.constant 2 : index
    %c64_62 = arith.constant 64 : index
    %100 = vector.load %arg22[%c2_61, %c64_62] : memref<10x128xf32, #tpu.memory_space<vmem>>, vector<2x64xf32>
    tpu.vector_store %arg22[%c2_61, %c64_62], %98 {strides = array<i32>} : memref<10x128xf32, #tpu.memory_space<vmem>>, vector<2x64xf32>,
    %c0_63 = arith.constant 0 : index
    %c0_64 = arith.constant 0 : index
    %101 = vector.load %arg22[%c0_63, %c0_64] : memref<10x128xf32, #tpu.memory_space<vmem>>, vector<4x128xf32>
    %c1 = arith.constant 1 : index
    %c0_65 = arith.constant 0 : index
    %c0_66 = arith.constant 0 : index
    %102 = vector.load %arg3[%c1, %c0_65, %c0_66] : memref<5x128x64xf32, #tpu.memory_space<vmem>>, vector<1x128x64xf32>
    %103 = vector.shape_cast %102 : vector<1x128x64xf32> to vector<128x64xf32>
    %cst_67 = arith.constant dense<0.000000e+00> : vector<4x64xf32>
    %104 = tpu.matmul %101, %103, %cst_67 {dimension_numbers = #tpu.dot_dimension_numbers<[1], [0], [0], [1], [0, 0, 1, 1], [], []>} : vector<4x128xf32>, vector<128x64xf32>, vector<4x64xf32> -> vector<4x64xf32>
    %c1_68 = arith.constant 1 : index
    %c0_69 = arith.constant 0 : index
    %c0_70 = arith.constant 0 : index
    %105 = vector.load %arg4[%c1_68, %c0_69, %c0_70] : memref<5x1x64xf32, #tpu.memory_space<vmem>>, vector<1x1x64xf32>
    %106 = vector.shape_cast %105 : vector<1x1x64xf32> to vector<1x64xf32>
    %107 = vector.broadcast %106 : vector<1x64xf32> to vector<4x64xf32>
    %108 = arith.addf %104, %107 : vector<4x64xf32>
    %cst_71 = arith.constant 0.000000e+00 : f32
    %109 = vector.broadcast %cst_71 : f32 to vector<4x64xf32>
    %110 = arith.maximumf %108, %109 : vector<4x64xf32>
    %c0_72 = arith.constant 0 : index
    %c0_73 = arith.constant 0 : index
    %111 = vector.load %arg23[%c0_72, %c0_73] : memref<10x64xf32, #tpu.memory_space<vmem>>, vector<4x64xf32>
    tpu.vector_store %arg23[%c0_72, %c0_73], %110 {strides = array<i32>} : memref<10x64xf32, #tpu.memory_space<vmem>>, vector<4x64xf32>,
    %c0_74 = arith.constant 0 : index
    %c0_75 = arith.constant 0 : index
    %112 = vector.load %arg23[%c0_74, %c0_75] : memref<10x64xf32, #tpu.memory_space<vmem>>, vector<2x64xf32>
    %c0_76 = arith.constant 0 : index
    %c0_77 = arith.constant 0 : index
    %113 = vector.load %arg22[%c0_76, %c0_77] : memref<10x128xf32, #tpu.memory_space<vmem>>, vector<2x64xf32>
    tpu.vector_store %arg22[%c0_76, %c0_77], %71 {strides = array<i32>} : memref<10x128xf32, #tpu.memory_space<vmem>>, vector<2x64xf32>,
    %c0_78 = arith.constant 0 : index
    %c64_79 = arith.constant 64 : index
    %114 = vector.load %arg22[%c0_78, %c64_79] : memref<10x128xf32, #tpu.memory_space<vmem>>, vector<2x64xf32>
    tpu.vector_store %arg22[%c0_78, %c64_79], %112 {strides = array<i32>} : memref<10x128xf32, #tpu.memory_space<vmem>>, vector<2x64xf32>,
    %c2_80 = arith.constant 2 : index
    %c0_81 = arith.constant 0 : index
    %115 = vector.load %arg23[%c2_80, %c0_81] : memref<10x64xf32, #tpu.memory_space<vmem>>, vector<2x64xf32>
    %c2_82 = arith.constant 2 : index
    %c0_83 = arith.constant 0 : index
    %116 = vector.load %arg22[%c2_82, %c0_83] : memref<10x128xf32, #tpu.memory_space<vmem>>, vector<2x64xf32>
    tpu.vector_store %arg22[%c2_82, %c0_83], %115 {strides = array<i32>} : memref<10x128xf32, #tpu.memory_space<vmem>>, vector<2x64xf32>,
    %c2_84 = arith.constant 2 : index
    %c64_85 = arith.constant 64 : index
    %117 = vector.load %arg22[%c2_84, %c64_85] : memref<10x128xf32, #tpu.memory_space<vmem>>, vector<2x64xf32>
    tpu.vector_store %arg22[%c2_84, %c64_85], %71 {strides = array<i32>} : memref<10x128xf32, #tpu.memory_space<vmem>>, vector<2x64xf32>,
    %c0_86 = arith.constant 0 : index
    %c0_87 = arith.constant 0 : index
    %118 = vector.load %arg22[%c0_86, %c0_87] : memref<10x128xf32, #tpu.memory_space<vmem>>, vector<4x128xf32>
    %c2_88 = arith.constant 2 : index
    %c0_89 = arith.constant 0 : index
    %c0_90 = arith.constant 0 : index
    %119 = vector.load %arg3[%c2_88, %c0_89, %c0_90] : memref<5x128x64xf32, #tpu.memory_space<vmem>>, vector<1x128x64xf32>
    %120 = vector.shape_cast %119 : vector<1x128x64xf32> to vector<128x64xf32>
    %cst_91 = arith.constant dense<0.000000e+00> : vector<4x64xf32>
    %121 = tpu.matmul %118, %120, %cst_91 {dimension_numbers = #tpu.dot_dimension_numbers<[1], [0], [0], [1], [0, 0, 1, 1], [], []>} : vector<4x128xf32>, vector<128x64xf32>, vector<4x64xf32> -> vector<4x64xf32>
    %c2_92 = arith.constant 2 : index
    %c0_93 = arith.constant 0 : index
    %c0_94 = arith.constant 0 : index
    %122 = vector.load %arg4[%c2_92, %c0_93, %c0_94] : memref<5x1x64xf32, #tpu.memory_space<vmem>>, vector<1x1x64xf32>
    %123 = vector.shape_cast %122 : vector<1x1x64xf32> to vector<1x64xf32>
    %124 = vector.broadcast %123 : vector<1x64xf32> to vector<4x64xf32>
    %125 = arith.addf %121, %124 : vector<4x64xf32>
    %cst_95 = arith.constant 0.000000e+00 : f32
    %126 = vector.broadcast %cst_95 : f32 to vector<4x64xf32>
    %127 = arith.maximumf %125, %126 : vector<4x64xf32>
    %c0_96 = arith.constant 0 : index
    %c0_97 = arith.constant 0 : index
    %128 = vector.load %arg23[%c0_96, %c0_97] : memref<10x64xf32, #tpu.memory_space<vmem>>, vector<4x64xf32>
    tpu.vector_store %arg23[%c0_96, %c0_97], %127 {strides = array<i32>} : memref<10x64xf32, #tpu.memory_space<vmem>>, vector<4x64xf32>,
    %c0_98 = arith.constant 0 : index
    %c0_99 = arith.constant 0 : index
    %129 = vector.load %arg23[%c0_98, %c0_99] : memref<10x64xf32, #tpu.memory_space<vmem>>, vector<2x64xf32>
    %c0_100 = arith.constant 0 : index
    %c0_101 = arith.constant 0 : index
    %130 = vector.load %arg22[%c0_100, %c0_101] : memref<10x128xf32, #tpu.memory_space<vmem>>, vector<2x64xf32>
    tpu.vector_store %arg22[%c0_100, %c0_101], %71 {strides = array<i32>} : memref<10x128xf32, #tpu.memory_space<vmem>>, vector<2x64xf32>,
    %c0_102 = arith.constant 0 : index
    %c64_103 = arith.constant 64 : index
    %131 = vector.load %arg22[%c0_102, %c64_103] : memref<10x128xf32, #tpu.memory_space<vmem>>, vector<2x64xf32>
    tpu.vector_store %arg22[%c0_102, %c64_103], %129 {strides = array<i32>} : memref<10x128xf32, #tpu.memory_space<vmem>>, vector<2x64xf32>,
    %c2_104 = arith.constant 2 : index
    %c0_105 = arith.constant 0 : index
    %132 = vector.load %arg23[%c2_104, %c0_105] : memref<10x64xf32, #tpu.memory_space<vmem>>, vector<2x64xf32>
    %c2_106 = arith.constant 2 : index
    %c0_107 = arith.constant 0 : index
    %133 = vector.load %arg22[%c2_106, %c0_107] : memref<10x128xf32, #tpu.memory_space<vmem>>, vector<2x64xf32>
    tpu.vector_store %arg22[%c2_106, %c0_107], %132 {strides = array<i32>} : memref<10x128xf32, #tpu.memory_space<vmem>>, vector<2x64xf32>,
    %c2_108 = arith.constant 2 : index
    %c64_109 = arith.constant 64 : index
    %134 = vector.load %arg22[%c2_108, %c64_109] : memref<10x128xf32, #tpu.memory_space<vmem>>, vector<2x64xf32>
    tpu.vector_store %arg22[%c2_108, %c64_109], %71 {strides = array<i32>} : memref<10x128xf32, #tpu.memory_space<vmem>>, vector<2x64xf32>,
    %c0_110 = arith.constant 0 : index
    %c0_111 = arith.constant 0 : index
    %135 = vector.load %arg22[%c0_110, %c0_111] : memref<10x128xf32, #tpu.memory_space<vmem>>, vector<4x128xf32>
    %c3 = arith.constant 3 : index
    %c0_112 = arith.constant 0 : index
    %c0_113 = arith.constant 0 : index
    %136 = vector.load %arg3[%c3, %c0_112, %c0_113] : memref<5x128x64xf32, #tpu.memory_space<vmem>>, vector<1x128x64xf32>
    %137 = vector.shape_cast %136 : vector<1x128x64xf32> to vector<128x64xf32>
    %cst_114 = arith.constant dense<0.000000e+00> : vector<4x64xf32>
    %138 = tpu.matmul %135, %137, %cst_114 {dimension_numbers = #tpu.dot_dimension_numbers<[1], [0], [0], [1], [0, 0, 1, 1], [], []>} : vector<4x128xf32>, vector<128x64xf32>, vector<4x64xf32> -> vector<4x64xf32>
    %c3_115 = arith.constant 3 : index
    %c0_116 = arith.constant 0 : index
    %c0_117 = arith.constant 0 : index
    %139 = vector.load %arg4[%c3_115, %c0_116, %c0_117] : memref<5x1x64xf32, #tpu.memory_space<vmem>>, vector<1x1x64xf32>
    %140 = vector.shape_cast %139 : vector<1x1x64xf32> to vector<1x64xf32>
    %141 = vector.broadcast %140 : vector<1x64xf32> to vector<4x64xf32>
    %142 = arith.addf %138, %141 : vector<4x64xf32>
    %cst_118 = arith.constant 0.000000e+00 : f32
    %143 = vector.broadcast %cst_118 : f32 to vector<4x64xf32>
    %144 = arith.maximumf %142, %143 : vector<4x64xf32>
    %c0_119 = arith.constant 0 : index
    %c0_120 = arith.constant 0 : index
    %145 = vector.load %arg23[%c0_119, %c0_120] : memref<10x64xf32, #tpu.memory_space<vmem>>, vector<4x64xf32>
    tpu.vector_store %arg23[%c0_119, %c0_120], %144 {strides = array<i32>} : memref<10x64xf32, #tpu.memory_space<vmem>>, vector<4x64xf32>,
    %c0_121 = arith.constant 0 : index
    %c0_122 = arith.constant 0 : index
    %146 = vector.load %arg23[%c0_121, %c0_122] : memref<10x64xf32, #tpu.memory_space<vmem>>, vector<2x64xf32>
    %c0_123 = arith.constant 0 : index
    %c0_124 = arith.constant 0 : index
    %147 = vector.load %arg22[%c0_123, %c0_124] : memref<10x128xf32, #tpu.memory_space<vmem>>, vector<2x64xf32>
    tpu.vector_store %arg22[%c0_123, %c0_124], %71 {strides = array<i32>} : memref<10x128xf32, #tpu.memory_space<vmem>>, vector<2x64xf32>,
    %c0_125 = arith.constant 0 : index
    %c64_126 = arith.constant 64 : index
    %148 = vector.load %arg22[%c0_125, %c64_126] : memref<10x128xf32, #tpu.memory_space<vmem>>, vector<2x64xf32>
    tpu.vector_store %arg22[%c0_125, %c64_126], %146 {strides = array<i32>} : memref<10x128xf32, #tpu.memory_space<vmem>>, vector<2x64xf32>,
    %c2_127 = arith.constant 2 : index
    %c0_128 = arith.constant 0 : index
    %149 = vector.load %arg23[%c2_127, %c0_128] : memref<10x64xf32, #tpu.memory_space<vmem>>, vector<2x64xf32>
    %c2_129 = arith.constant 2 : index
    %c0_130 = arith.constant 0 : index
    %150 = vector.load %arg22[%c2_129, %c0_130] : memref<10x128xf32, #tpu.memory_space<vmem>>, vector<2x64xf32>
    tpu.vector_store %arg22[%c2_129, %c0_130], %149 {strides = array<i32>} : memref<10x128xf32, #tpu.memory_space<vmem>>, vector<2x64xf32>,
    %c2_131 = arith.constant 2 : index
    %c64_132 = arith.constant 64 : index
    %151 = vector.load %arg22[%c2_131, %c64_132] : memref<10x128xf32, #tpu.memory_space<vmem>>, vector<2x64xf32>
    tpu.vector_store %arg22[%c2_131, %c64_132], %71 {strides = array<i32>} : memref<10x128xf32, #tpu.memory_space<vmem>>, vector<2x64xf32>,
    %c0_133 = arith.constant 0 : index
    %c0_134 = arith.constant 0 : index
    %152 = vector.load %arg22[%c0_133, %c0_134] : memref<10x128xf32, #tpu.memory_space<vmem>>, vector<4x128xf32>
    %c4_135 = arith.constant 4 : index
    %c0_136 = arith.constant 0 : index
    %c0_137 = arith.constant 0 : index
    %153 = vector.load %arg3[%c4_135, %c0_136, %c0_137] : memref<5x128x64xf32, #tpu.memory_space<vmem>>, vector<1x128x64xf32>
    %154 = vector.shape_cast %153 : vector<1x128x64xf32> to vector<128x64xf32>
    %cst_138 = arith.constant dense<0.000000e+00> : vector<4x64xf32>
    %155 = tpu.matmul %152, %154, %cst_138 {dimension_numbers = #tpu.dot_dimension_numbers<[1], [0], [0], [1], [0, 0, 1, 1], [], []>} : vector<4x128xf32>, vector<128x64xf32>, vector<4x64xf32> -> vector<4x64xf32>
    %c4_139 = arith.constant 4 : index
    %c0_140 = arith.constant 0 : index
    %c0_141 = arith.constant 0 : index
    %156 = vector.load %arg4[%c4_139, %c0_140, %c0_141] : memref<5x1x64xf32, #tpu.memory_space<vmem>>, vector<1x1x64xf32>
    %157 = vector.shape_cast %156 : vector<1x1x64xf32> to vector<1x64xf32>
    %158 = vector.broadcast %157 : vector<1x64xf32> to vector<4x64xf32>
    %159 = arith.addf %155, %158 : vector<4x64xf32>
    %cst_142 = arith.constant 0.000000e+00 : f32
    %160 = vector.broadcast %cst_142 : f32 to vector<4x64xf32>
    %161 = arith.maximumf %159, %160 : vector<4x64xf32>
    %c0_143 = arith.constant 0 : index
    %c0_144 = arith.constant 0 : index
    %162 = vector.load %arg23[%c0_143, %c0_144] : memref<10x64xf32, #tpu.memory_space<vmem>>, vector<4x64xf32>
    tpu.vector_store %arg23[%c0_143, %c0_144], %161 {strides = array<i32>} : memref<10x64xf32, #tpu.memory_space<vmem>>, vector<4x64xf32>,
    %c0_145 = arith.constant 0 : index
    %c0_146 = arith.constant 0 : index
    %163 = vector.load %arg23[%c0_145, %c0_146] : memref<10x64xf32, #tpu.memory_space<vmem>>, vector<2x64xf32>
    %c2_147 = arith.constant 2 : index
    %c0_148 = arith.constant 0 : index
    %164 = vector.load %arg23[%c2_147, %c0_148] : memref<10x64xf32, #tpu.memory_space<vmem>>, vector<2x64xf32>
    %165 = tpu.concatenate %163, %164 in 1 : vector<2x64xf32>, vector<2x64xf32> -> vector<2x128xf32>
    %c0_149 = arith.constant 0 : index
    %c0_150 = arith.constant 0 : index
    %166 = vector.load %arg5[%c0_149, %c0_150] : memref<128x80xf32, #tpu.memory_space<vmem>>, vector<128x80xf32>
    %cst_151 = arith.constant dense<0.000000e+00> : vector<2x80xf32>
    %167 = tpu.matmul %165, %166, %cst_151 {dimension_numbers = #tpu.dot_dimension_numbers<[1], [0], [0], [1], [0, 0, 1, 1], [], []>} : vector<2x128xf32>, vector<128x80xf32>, vector<2x80xf32> -> vector<2x80xf32>
    %c0_152 = arith.constant 0 : index
    %c0_153 = arith.constant 0 : index
    %168 = vector.load %arg6[%c0_152, %c0_153] : memref<1x80xf32, #tpu.memory_space<vmem>>, vector<1x80xf32>
    %169 = vector.broadcast %168 : vector<1x80xf32> to vector<2x80xf32>
    %170 = arith.addf %167, %169 : vector<2x80xf32>
    %cst_154 = arith.constant 0.000000e+00 : f32
    %171 = vector.broadcast %cst_154 : f32 to vector<2x80xf32>
    %172 = arith.maximumf %170, %171 : vector<2x80xf32>
    %c0_155 = arith.constant 0 : index
    %c0_156 = arith.constant 0 : index
    %173 = vector.load %arg7[%c0_155, %c0_156] : memref<1x128xf32, #tpu.memory_space<vmem>>, vector<1x128xf32>
    %c0_157 = arith.constant 0 : index
    %c0_158 = arith.constant 0 : index
    %174 = vector.load %arg8[%c0_157, %c0_158] : memref<32x128xf32, #tpu.memory_space<vmem>>, vector<32x128xf32>
    %c0_159 = arith.constant 0 : index
    %c0_160 = arith.constant 0 : index
    %175 = vector.load %arg9[%c0_159, %c0_160] : memref<1x128xf32, #tpu.memory_space<vmem>>, vector<1x128xf32>
    %c0_161 = arith.constant 0 : index
    %c0_162 = arith.constant 0 : index
    %176 = vector.load %arg10[%c0_161, %c0_162] : memref<1x128xf32, #tpu.memory_space<vmem>>, vector<1x128xf32>
    %c0_163 = arith.constant 0 : index
    %c0_164 = arith.constant 0 : index
    %177 = vector.load %arg11[%c0_163, %c0_164] : memref<32x128xf32, #tpu.memory_space<vmem>>, vector<32x128xf32>
    %c0_165 = arith.constant 0 : index
    %c0_166 = arith.constant 0 : index
    %178 = vector.load %arg12[%c0_165, %c0_166] : memref<1x128xf32, #tpu.memory_space<vmem>>, vector<1x128xf32>
    %179 = vector.extract_strided_slice %0 {offsets = [0, 0], sizes = [2, 1], strides = [1, 1]} : vector<2x8xf32> to vector<2x1xf32>
    %180 = vector.broadcast %179 : vector<2x1xf32> to vector<2x128xf32>
    %181 = vector.broadcast %173 : vector<1x128xf32> to vector<2x128xf32>
    %182 = arith.mulf %180, %181 : vector<2x128xf32>
    %183 = vector.broadcast %175 : vector<1x128xf32> to vector<2x128xf32>
    %184 = arith.addf %182, %183 : vector<2x128xf32>
    %185 = vector.extract_strided_slice %0 {offsets = [0, 1], sizes = [2, 1], strides = [1, 1]} : vector<2x8xf32> to vector<2x1xf32>
    %186 = vector.broadcast %185 : vector<2x1xf32> to vector<2x128xf32>
    %187 = vector.broadcast %173 : vector<1x128xf32> to vector<2x128xf32>
    %188 = arith.mulf %186, %187 : vector<2x128xf32>
    %189 = vector.broadcast %175 : vector<1x128xf32> to vector<2x128xf32>
    %190 = arith.addf %188, %189 : vector<2x128xf32>
    %191 = vector.extract_strided_slice %0 {offsets = [0, 2], sizes = [2, 1], strides = [1, 1]} : vector<2x8xf32> to vector<2x1xf32>
    %192 = vector.broadcast %191 : vector<2x1xf32> to vector<2x128xf32>
    %193 = vector.broadcast %173 : vector<1x128xf32> to vector<2x128xf32>
    %194 = arith.mulf %192, %193 : vector<2x128xf32>
    %195 = vector.broadcast %175 : vector<1x128xf32> to vector<2x128xf32>
    %196 = arith.addf %194, %195 : vector<2x128xf32>
    %197 = vector.extract_strided_slice %0 {offsets = [0, 3], sizes = [2, 1], strides = [1, 1]} : vector<2x8xf32> to vector<2x1xf32>
    %198 = vector.broadcast %197 : vector<2x1xf32> to vector<2x128xf32>
    %199 = vector.broadcast %173 : vector<1x128xf32> to vector<2x128xf32>
    %200 = arith.mulf %198, %199 : vector<2x128xf32>
    %201 = vector.broadcast %175 : vector<1x128xf32> to vector<2x128xf32>
    %202 = arith.addf %200, %201 : vector<2x128xf32>
    %203 = vector.extract_strided_slice %0 {offsets = [0, 4], sizes = [2, 1], strides = [1, 1]} : vector<2x8xf32> to vector<2x1xf32>
    %204 = vector.broadcast %203 : vector<2x1xf32> to vector<2x128xf32>
    %205 = vector.broadcast %173 : vector<1x128xf32> to vector<2x128xf32>
    %206 = arith.mulf %204, %205 : vector<2x128xf32>
    %207 = vector.broadcast %175 : vector<1x128xf32> to vector<2x128xf32>
    %208 = arith.addf %206, %207 : vector<2x128xf32>
    %209 = vector.extract_strided_slice %0 {offsets = [0, 5], sizes = [2, 1], strides = [1, 1]} : vector<2x8xf32> to vector<2x1xf32>
    %210 = vector.broadcast %209 : vector<2x1xf32> to vector<2x128xf32>
    %211 = vector.broadcast %173 : vector<1x128xf32> to vector<2x128xf32>
    %212 = arith.mulf %210, %211 : vector<2x128xf32>
    %213 = vector.broadcast %175 : vector<1x128xf32> to vector<2x128xf32>
    %214 = arith.addf %212, %213 : vector<2x128xf32>
    %215 = vector.extract_strided_slice %0 {offsets = [0, 6], sizes = [2, 1], strides = [1, 1]} : vector<2x8xf32> to vector<2x1xf32>
    %216 = vector.broadcast %215 : vector<2x1xf32> to vector<2x128xf32>
    %217 = vector.broadcast %173 : vector<1x128xf32> to vector<2x128xf32>
    %218 = arith.mulf %216, %217 : vector<2x128xf32>
    %219 = vector.broadcast %175 : vector<1x128xf32> to vector<2x128xf32>
    %220 = arith.addf %218, %219 : vector<2x128xf32>
    %221 = vector.extract_strided_slice %0 {offsets = [0, 7], sizes = [2, 1], strides = [1, 1]} : vector<2x8xf32> to vector<2x1xf32>
    %222 = vector.broadcast %221 : vector<2x1xf32> to vector<2x128xf32>
    %223 = vector.broadcast %173 : vector<1x128xf32> to vector<2x128xf32>
    %224 = arith.mulf %222, %223 : vector<2x128xf32>
    %225 = vector.broadcast %175 : vector<1x128xf32> to vector<2x128xf32>
    %226 = arith.addf %224, %225 : vector<2x128xf32>
    %227 = vector.extract_strided_slice %0 {offsets = [0, 0], sizes = [2, 1], strides = [1, 1]} : vector<2x8xf32> to vector<2x1xf32>
    %228 = vector.broadcast %227 : vector<2x1xf32> to vector<2x128xf32>
    %229 = vector.broadcast %176 : vector<1x128xf32> to vector<2x128xf32>
    %230 = arith.mulf %228, %229 : vector<2x128xf32>
    %231 = vector.broadcast %178 : vector<1x128xf32> to vector<2x128xf32>
    %232 = arith.addf %230, %231 : vector<2x128xf32>
    %233 = vector.extract_strided_slice %0 {offsets = [0, 1], sizes = [2, 1], strides = [1, 1]} : vector<2x8xf32> to vector<2x1xf32>
    %234 = vector.broadcast %233 : vector<2x1xf32> to vector<2x128xf32>
    %235 = vector.broadcast %176 : vector<1x128xf32> to vector<2x128xf32>
    %236 = arith.mulf %234, %235 : vector<2x128xf32>
    %237 = vector.broadcast %178 : vector<1x128xf32> to vector<2x128xf32>
    %238 = arith.addf %236, %237 : vector<2x128xf32>
    %239 = vector.extract_strided_slice %0 {offsets = [0, 2], sizes = [2, 1], strides = [1, 1]} : vector<2x8xf32> to vector<2x1xf32>
    %240 = vector.broadcast %239 : vector<2x1xf32> to vector<2x128xf32>
    %241 = vector.broadcast %176 : vector<1x128xf32> to vector<2x128xf32>
    %242 = arith.mulf %240, %241 : vector<2x128xf32>
    %243 = vector.broadcast %178 : vector<1x128xf32> to vector<2x128xf32>
    %244 = arith.addf %242, %243 : vector<2x128xf32>
    %245 = vector.extract_strided_slice %0 {offsets = [0, 3], sizes = [2, 1], strides = [1, 1]} : vector<2x8xf32> to vector<2x1xf32>
    %246 = vector.broadcast %245 : vector<2x1xf32> to vector<2x128xf32>
    %247 = vector.broadcast %176 : vector<1x128xf32> to vector<2x128xf32>
    %248 = arith.mulf %246, %247 : vector<2x128xf32>
    %249 = vector.broadcast %178 : vector<1x128xf32> to vector<2x128xf32>
    %250 = arith.addf %248, %249 : vector<2x128xf32>
    %251 = vector.extract_strided_slice %0 {offsets = [0, 4], sizes = [2, 1], strides = [1, 1]} : vector<2x8xf32> to vector<2x1xf32>
    %252 = vector.broadcast %251 : vector<2x1xf32> to vector<2x128xf32>
    %253 = vector.broadcast %176 : vector<1x128xf32> to vector<2x128xf32>
    %254 = arith.mulf %252, %253 : vector<2x128xf32>
    %255 = vector.broadcast %178 : vector<1x128xf32> to vector<2x128xf32>
    %256 = arith.addf %254, %255 : vector<2x128xf32>
    %257 = vector.extract_strided_slice %0 {offsets = [0, 5], sizes = [2, 1], strides = [1, 1]} : vector<2x8xf32> to vector<2x1xf32>
    %258 = vector.broadcast %257 : vector<2x1xf32> to vector<2x128xf32>
    %259 = vector.broadcast %176 : vector<1x128xf32> to vector<2x128xf32>
    %260 = arith.mulf %258, %259 : vector<2x128xf32>
    %261 = vector.broadcast %178 : vector<1x128xf32> to vector<2x128xf32>
    %262 = arith.addf %260, %261 : vector<2x128xf32>
    %263 = vector.extract_strided_slice %0 {offsets = [0, 6], sizes = [2, 1], strides = [1, 1]} : vector<2x8xf32> to vector<2x1xf32>
    %264 = vector.broadcast %263 : vector<2x1xf32> to vector<2x128xf32>
    %265 = vector.broadcast %176 : vector<1x128xf32> to vector<2x128xf32>
    %266 = arith.mulf %264, %265 : vector<2x128xf32>
    %267 = vector.broadcast %178 : vector<1x128xf32> to vector<2x128xf32>
    %268 = arith.addf %266, %267 : vector<2x128xf32>
    %269 = vector.extract_strided_slice %0 {offsets = [0, 7], sizes = [2, 1], strides = [1, 1]} : vector<2x8xf32> to vector<2x1xf32>
    %270 = vector.broadcast %269 : vector<2x1xf32> to vector<2x128xf32>
    %271 = vector.broadcast %176 : vector<1x128xf32> to vector<2x128xf32>
    %272 = arith.mulf %270, %271 : vector<2x128xf32>
    %273 = vector.broadcast %178 : vector<1x128xf32> to vector<2x128xf32>
    %274 = arith.addf %272, %273 : vector<2x128xf32>
    %cst_167 = arith.constant 0.000000e+00 : f32
    %275 = vector.broadcast %cst_167 : f32 to vector<2x32xf32>
    %cst_168 = arith.constant dense<0.000000e+00> : vector<2x128xf32>
    %276 = tpu.matmul %275, %174, %cst_168 {dimension_numbers = #tpu.dot_dimension_numbers<[1], [0], [0], [1], [0, 0, 1, 1], [], []>} : vector<2x32xf32>, vector<32x128xf32>, vector<2x128xf32> -> vector<2x128xf32>
    %277 = arith.addf %184, %276 : vector<2x128xf32>
    %278 = arith.negf %277 : vector<2x128xf32>
    %279 = math.exp %278 : vector<2x128xf32>
    %cst_169 = arith.constant 1.000000e+00 : f32
    %280 = vector.broadcast %cst_169 : f32 to vector<2x128xf32>
    %281 = arith.addf %280, %279 : vector<2x128xf32>
    %282 = arith.divf %280, %281 : vector<2x128xf32>
    %283 = math.tanh %277 : vector<2x128xf32>
    %284 = vector.extract_strided_slice %282 {offsets = [0, 0], sizes = [2, 32], strides = [1, 1]} : vector<2x128xf32> to vector<2x32xf32>
    %285 = vector.extract_strided_slice %282 {offsets = [0, 32], sizes = [2, 32], strides = [1, 1]} : vector<2x128xf32> to vector<2x32xf32>
    %286 = vector.extract_strided_slice %283 {offsets = [0, 64], sizes = [2, 32], strides = [1, 1]} : vector<2x128xf32> to vector<2x32xf32>
    %287 = vector.extract_strided_slice %282 {offsets = [0, 96], sizes = [2, 32], strides = [1, 1]} : vector<2x128xf32> to vector<2x32xf32>
    %288 = arith.mulf %285, %275 : vector<2x32xf32>
    %289 = arith.mulf %284, %286 : vector<2x32xf32>
    %290 = arith.addf %288, %289 : vector<2x32xf32>
    %291 = math.tanh %290 : vector<2x32xf32>
    %292 = arith.mulf %287, %291 : vector<2x32xf32>
    %c0_170 = arith.constant 0 : index
    %c0_171 = arith.constant 0 : index
    %293 = vector.load %arg24[%c0_170, %c0_171] : memref<16x64xf32, #tpu.memory_space<vmem>>, vector<2x32xf32>
    tpu.vector_store %arg24[%c0_170, %c0_171], %292 {strides = array<i32>} : memref<16x64xf32, #tpu.memory_space<vmem>>, vector<2x32xf32>,
    %cst_172 = arith.constant dense<0.000000e+00> : vector<2x128xf32>
    %294 = tpu.matmul %275, %177, %cst_172 {dimension_numbers = #tpu.dot_dimension_numbers<[1], [0], [0], [1], [0, 0, 1, 1], [], []>} : vector<2x32xf32>, vector<32x128xf32>, vector<2x128xf32> -> vector<2x128xf32>
    %295 = arith.addf %274, %294 : vector<2x128xf32>
    %296 = arith.negf %295 : vector<2x128xf32>
    %297 = math.exp %296 : vector<2x128xf32>
    %cst_173 = arith.constant 1.000000e+00 : f32
    %298 = vector.broadcast %cst_173 : f32 to vector<2x128xf32>
    %299 = arith.addf %298, %297 : vector<2x128xf32>
    %300 = arith.divf %298, %299 : vector<2x128xf32>
    %301 = math.tanh %295 : vector<2x128xf32>
    %302 = vector.extract_strided_slice %300 {offsets = [0, 0], sizes = [2, 32], strides = [1, 1]} : vector<2x128xf32> to vector<2x32xf32>
    %303 = vector.extract_strided_slice %300 {offsets = [0, 32], sizes = [2, 32], strides = [1, 1]} : vector<2x128xf32> to vector<2x32xf32>
    %304 = vector.extract_strided_slice %301 {offsets = [0, 64], sizes = [2, 32], strides = [1, 1]} : vector<2x128xf32> to vector<2x32xf32>
    %305 = vector.extract_strided_slice %300 {offsets = [0, 96], sizes = [2, 32], strides = [1, 1]} : vector<2x128xf32> to vector<2x32xf32>
    %306 = arith.mulf %303, %275 : vector<2x32xf32>
    %307 = arith.mulf %302, %304 : vector<2x32xf32>
    %308 = arith.addf %306, %307 : vector<2x32xf32>
    %309 = math.tanh %308 : vector<2x32xf32>
    %310 = arith.mulf %305, %309 : vector<2x32xf32>
    %c14 = arith.constant 14 : index
    %c32 = arith.constant 32 : index
    %311 = vector.load %arg24[%c14, %c32] : memref<16x64xf32, #tpu.memory_space<vmem>>, vector<2x32xf32>
    tpu.vector_store %arg24[%c14, %c32], %310 {strides = array<i32>} : memref<16x64xf32, #tpu.memory_space<vmem>>, vector<2x32xf32>,
    %cst_174 = arith.constant dense<0.000000e+00> : vector<2x128xf32>
    %312 = tpu.matmul %292, %174, %cst_174 {dimension_numbers = #tpu.dot_dimension_numbers<[1], [0], [0], [1], [0, 0, 1, 1], [], []>} : vector<2x32xf32>, vector<32x128xf32>, vector<2x128xf32> -> vector<2x128xf32>
    %313 = arith.addf %190, %312 : vector<2x128xf32>
    %314 = arith.negf %313 : vector<2x128xf32>
    %315 = math.exp %314 : vector<2x128xf32>
    %cst_175 = arith.constant 1.000000e+00 : f32
    %316 = vector.broadcast %cst_175 : f32 to vector<2x128xf32>
    %317 = arith.addf %316, %315 : vector<2x128xf32>
    %318 = arith.divf %316, %317 : vector<2x128xf32>
    %319 = math.tanh %313 : vector<2x128xf32>
    %320 = vector.extract_strided_slice %318 {offsets = [0, 0], sizes = [2, 32], strides = [1, 1]} : vector<2x128xf32> to vector<2x32xf32>
    %321 = vector.extract_strided_slice %318 {offsets = [0, 32], sizes = [2, 32], strides = [1, 1]} : vector<2x128xf32> to vector<2x32xf32>
    %322 = vector.extract_strided_slice %319 {offsets = [0, 64], sizes = [2, 32], strides = [1, 1]} : vector<2x128xf32> to vector<2x32xf32>
    %323 = vector.extract_strided_slice %318 {offsets = [0, 96], sizes = [2, 32], strides = [1, 1]} : vector<2x128xf32> to vector<2x32xf32>
    %324 = arith.mulf %321, %290 : vector<2x32xf32>
    %325 = arith.mulf %320, %322 : vector<2x32xf32>
    %326 = arith.addf %324, %325 : vector<2x32xf32>
    %327 = math.tanh %326 : vector<2x32xf32>
    %328 = arith.mulf %323, %327 : vector<2x32xf32>
    %c2_176 = arith.constant 2 : index
    %c0_177 = arith.constant 0 : index
    %329 = vector.load %arg24[%c2_176, %c0_177] : memref<16x64xf32, #tpu.memory_space<vmem>>, vector<2x32xf32>
    tpu.vector_store %arg24[%c2_176, %c0_177], %328 {strides = array<i32>} : memref<16x64xf32, #tpu.memory_space<vmem>>, vector<2x32xf32>,
    %cst_178 = arith.constant dense<0.000000e+00> : vector<2x128xf32>
    %330 = tpu.matmul %310, %177, %cst_178 {dimension_numbers = #tpu.dot_dimension_numbers<[1], [0], [0], [1], [0, 0, 1, 1], [], []>} : vector<2x32xf32>, vector<32x128xf32>, vector<2x128xf32> -> vector<2x128xf32>
    %331 = arith.addf %268, %330 : vector<2x128xf32>
    %332 = arith.negf %331 : vector<2x128xf32>
    %333 = math.exp %332 : vector<2x128xf32>
    %cst_179 = arith.constant 1.000000e+00 : f32
    %334 = vector.broadcast %cst_179 : f32 to vector<2x128xf32>
    %335 = arith.addf %334, %333 : vector<2x128xf32>
    %336 = arith.divf %334, %335 : vector<2x128xf32>
    %337 = math.tanh %331 : vector<2x128xf32>
    %338 = vector.extract_strided_slice %336 {offsets = [0, 0], sizes = [2, 32], strides = [1, 1]} : vector<2x128xf32> to vector<2x32xf32>
    %339 = vector.extract_strided_slice %336 {offsets = [0, 32], sizes = [2, 32], strides = [1, 1]} : vector<2x128xf32> to vector<2x32xf32>
    %340 = vector.extract_strided_slice %337 {offsets = [0, 64], sizes = [2, 32], strides = [1, 1]} : vector<2x128xf32> to vector<2x32xf32>
    %341 = vector.extract_strided_slice %336 {offsets = [0, 96], sizes = [2, 32], strides = [1, 1]} : vector<2x128xf32> to vector<2x32xf32>
    %342 = arith.mulf %339, %308 : vector<2x32xf32>
    %343 = arith.mulf %338, %340 : vector<2x32xf32>
    %344 = arith.addf %342, %343 : vector<2x32xf32>
    %345 = math.tanh %344 : vector<2x32xf32>
    %346 = arith.mulf %341, %345 : vector<2x32xf32>
    %c12 = arith.constant 12 : index
    %c32_180 = arith.constant 32 : index
    %347 = vector.load %arg24[%c12, %c32_180] : memref<16x64xf32, #tpu.memory_space<vmem>>, vector<2x32xf32>
    tpu.vector_store %arg24[%c12, %c32_180], %346 {strides = array<i32>} : memref<16x64xf32, #tpu.memory_space<vmem>>, vector<2x32xf32>,
    %cst_181 = arith.constant dense<0.000000e+00> : vector<2x128xf32>
    %348 = tpu.matmul %328, %174, %cst_181 {dimension_numbers = #tpu.dot_dimension_numbers<[1], [0], [0], [1], [0, 0, 1, 1], [], []>} : vector<2x32xf32>, vector<32x128xf32>, vector<2x128xf32> -> vector<2x128xf32>
    %349 = arith.addf %196, %348 : vector<2x128xf32>
    %350 = arith.negf %349 : vector<2x128xf32>
    %351 = math.exp %350 : vector<2x128xf32>
    %cst_182 = arith.constant 1.000000e+00 : f32
    %352 = vector.broadcast %cst_182 : f32 to vector<2x128xf32>
    %353 = arith.addf %352, %351 : vector<2x128xf32>
    %354 = arith.divf %352, %353 : vector<2x128xf32>
    %355 = math.tanh %349 : vector<2x128xf32>
    %356 = vector.extract_strided_slice %354 {offsets = [0, 0], sizes = [2, 32], strides = [1, 1]} : vector<2x128xf32> to vector<2x32xf32>
    %357 = vector.extract_strided_slice %354 {offsets = [0, 32], sizes = [2, 32], strides = [1, 1]} : vector<2x128xf32> to vector<2x32xf32>
    %358 = vector.extract_strided_slice %355 {offsets = [0, 64], sizes = [2, 32], strides = [1, 1]} : vector<2x128xf32> to vector<2x32xf32>
    %359 = vector.extract_strided_slice %354 {offsets = [0, 96], sizes = [2, 32], strides = [1, 1]} : vector<2x128xf32> to vector<2x32xf32>
    %360 = arith.mulf %357, %326 : vector<2x32xf32>
    %361 = arith.mulf %356, %358 : vector<2x32xf32>
    %362 = arith.addf %360, %361 : vector<2x32xf32>
    %363 = math.tanh %362 : vector<2x32xf32>
    %364 = arith.mulf %359, %363 : vector<2x32xf32>
    %c4_183 = arith.constant 4 : index
    %c0_184 = arith.constant 0 : index
    %365 = vector.load %arg24[%c4_183, %c0_184] : memref<16x64xf32, #tpu.memory_space<vmem>>, vector<2x32xf32>
    tpu.vector_store %arg24[%c4_183, %c0_184], %364 {strides = array<i32>} : memref<16x64xf32, #tpu.memory_space<vmem>>, vector<2x32xf32>,
    %cst_185 = arith.constant dense<0.000000e+00> : vector<2x128xf32>
    %366 = tpu.matmul %346, %177, %cst_185 {dimension_numbers = #tpu.dot_dimension_numbers<[1], [0], [0], [1], [0, 0, 1, 1], [], []>} : vector<2x32xf32>, vector<32x128xf32>, vector<2x128xf32> -> vector<2x128xf32>
    %367 = arith.addf %262, %366 : vector<2x128xf32>
    %368 = arith.negf %367 : vector<2x128xf32>
    %369 = math.exp %368 : vector<2x128xf32>
    %cst_186 = arith.constant 1.000000e+00 : f32
    %370 = vector.broadcast %cst_186 : f32 to vector<2x128xf32>
    %371 = arith.addf %370, %369 : vector<2x128xf32>
    %372 = arith.divf %370, %371 : vector<2x128xf32>
    %373 = math.tanh %367 : vector<2x128xf32>
    %374 = vector.extract_strided_slice %372 {offsets = [0, 0], sizes = [2, 32], strides = [1, 1]} : vector<2x128xf32> to vector<2x32xf32>
    %375 = vector.extract_strided_slice %372 {offsets = [0, 32], sizes = [2, 32], strides = [1, 1]} : vector<2x128xf32> to vector<2x32xf32>
    %376 = vector.extract_strided_slice %373 {offsets = [0, 64], sizes = [2, 32], strides = [1, 1]} : vector<2x128xf32> to vector<2x32xf32>
    %377 = vector.extract_strided_slice %372 {offsets = [0, 96], sizes = [2, 32], strides = [1, 1]} : vector<2x128xf32> to vector<2x32xf32>
    %378 = arith.mulf %375, %344 : vector<2x32xf32>
    %379 = arith.mulf %374, %376 : vector<2x32xf32>
    %380 = arith.addf %378, %379 : vector<2x32xf32>
    %381 = math.tanh %380 : vector<2x32xf32>
    %382 = arith.mulf %377, %381 : vector<2x32xf32>
    %c10 = arith.constant 10 : index
    %c32_187 = arith.constant 32 : index
    %383 = vector.load %arg24[%c10, %c32_187] : memref<16x64xf32, #tpu.memory_space<vmem>>, vector<2x32xf32>
    tpu.vector_store %arg24[%c10, %c32_187], %382 {strides = array<i32>} : memref<16x64xf32, #tpu.memory_space<vmem>>, vector<2x32xf32>,
    %cst_188 = arith.constant dense<0.000000e+00> : vector<2x128xf32>
    %384 = tpu.matmul %364, %174, %cst_188 {dimension_numbers = #tpu.dot_dimension_numbers<[1], [0], [0], [1], [0, 0, 1, 1], [], []>} : vector<2x32xf32>, vector<32x128xf32>, vector<2x128xf32> -> vector<2x128xf32>
    %385 = arith.addf %202, %384 : vector<2x128xf32>
    %386 = arith.negf %385 : vector<2x128xf32>
    %387 = math.exp %386 : vector<2x128xf32>
    %cst_189 = arith.constant 1.000000e+00 : f32
    %388 = vector.broadcast %cst_189 : f32 to vector<2x128xf32>
    %389 = arith.addf %388, %387 : vector<2x128xf32>
    %390 = arith.divf %388, %389 : vector<2x128xf32>
    %391 = math.tanh %385 : vector<2x128xf32>
    %392 = vector.extract_strided_slice %390 {offsets = [0, 0], sizes = [2, 32], strides = [1, 1]} : vector<2x128xf32> to vector<2x32xf32>
    %393 = vector.extract_strided_slice %390 {offsets = [0, 32], sizes = [2, 32], strides = [1, 1]} : vector<2x128xf32> to vector<2x32xf32>
    %394 = vector.extract_strided_slice %391 {offsets = [0, 64], sizes = [2, 32], strides = [1, 1]} : vector<2x128xf32> to vector<2x32xf32>
    %395 = vector.extract_strided_slice %390 {offsets = [0, 96], sizes = [2, 32], strides = [1, 1]} : vector<2x128xf32> to vector<2x32xf32>
    %396 = arith.mulf %393, %362 : vector<2x32xf32>
    %397 = arith.mulf %392, %394 : vector<2x32xf32>
    %398 = arith.addf %396, %397 : vector<2x32xf32>
    %399 = math.tanh %398 : vector<2x32xf32>
    %400 = arith.mulf %395, %399 : vector<2x32xf32>
    %c6_190 = arith.constant 6 : index
    %c0_191 = arith.constant 0 : index
    %401 = vector.load %arg24[%c6_190, %c0_191] : memref<16x64xf32, #tpu.memory_space<vmem>>, vector<2x32xf32>
    tpu.vector_store %arg24[%c6_190, %c0_191], %400 {strides = array<i32>} : memref<16x64xf32, #tpu.memory_space<vmem>>, vector<2x32xf32>,
    %cst_192 = arith.constant dense<0.000000e+00> : vector<2x128xf32>
    %402 = tpu.matmul %382, %177, %cst_192 {dimension_numbers = #tpu.dot_dimension_numbers<[1], [0], [0], [1], [0, 0, 1, 1], [], []>} : vector<2x32xf32>, vector<32x128xf32>, vector<2x128xf32> -> vector<2x128xf32>
    %403 = arith.addf %256, %402 : vector<2x128xf32>
    %404 = arith.negf %403 : vector<2x128xf32>
    %405 = math.exp %404 : vector<2x128xf32>
    %cst_193 = arith.constant 1.000000e+00 : f32
    %406 = vector.broadcast %cst_193 : f32 to vector<2x128xf32>
    %407 = arith.addf %406, %405 : vector<2x128xf32>
    %408 = arith.divf %406, %407 : vector<2x128xf32>
    %409 = math.tanh %403 : vector<2x128xf32>
    %410 = vector.extract_strided_slice %408 {offsets = [0, 0], sizes = [2, 32], strides = [1, 1]} : vector<2x128xf32> to vector<2x32xf32>
    %411 = vector.extract_strided_slice %408 {offsets = [0, 32], sizes = [2, 32], strides = [1, 1]} : vector<2x128xf32> to vector<2x32xf32>
    %412 = vector.extract_strided_slice %409 {offsets = [0, 64], sizes = [2, 32], strides = [1, 1]} : vector<2x128xf32> to vector<2x32xf32>
    %413 = vector.extract_strided_slice %408 {offsets = [0, 96], sizes = [2, 32], strides = [1, 1]} : vector<2x128xf32> to vector<2x32xf32>
    %414 = arith.mulf %411, %380 : vector<2x32xf32>
    %415 = arith.mulf %410, %412 : vector<2x32xf32>
    %416 = arith.addf %414, %415 : vector<2x32xf32>
    %417 = math.tanh %416 : vector<2x32xf32>
    %418 = arith.mulf %413, %417 : vector<2x32xf32>
    %c8_194 = arith.constant 8 : index
    %c32_195 = arith.constant 32 : index
    %419 = vector.load %arg24[%c8_194, %c32_195] : memref<16x64xf32, #tpu.memory_space<vmem>>, vector<2x32xf32>
    tpu.vector_store %arg24[%c8_194, %c32_195], %418 {strides = array<i32>} : memref<16x64xf32, #tpu.memory_space<vmem>>, vector<2x32xf32>,
    %cst_196 = arith.constant dense<0.000000e+00> : vector<2x128xf32>
    %420 = tpu.matmul %400, %174, %cst_196 {dimension_numbers = #tpu.dot_dimension_numbers<[1], [0], [0], [1], [0, 0, 1, 1], [], []>} : vector<2x32xf32>, vector<32x128xf32>, vector<2x128xf32> -> vector<2x128xf32>
    %421 = arith.addf %208, %420 : vector<2x128xf32>
    %422 = arith.negf %421 : vector<2x128xf32>
    %423 = math.exp %422 : vector<2x128xf32>
    %cst_197 = arith.constant 1.000000e+00 : f32
    %424 = vector.broadcast %cst_197 : f32 to vector<2x128xf32>
    %425 = arith.addf %424, %423 : vector<2x128xf32>
    %426 = arith.divf %424, %425 : vector<2x128xf32>
    %427 = math.tanh %421 : vector<2x128xf32>
    %428 = vector.extract_strided_slice %426 {offsets = [0, 0], sizes = [2, 32], strides = [1, 1]} : vector<2x128xf32> to vector<2x32xf32>
    %429 = vector.extract_strided_slice %426 {offsets = [0, 32], sizes = [2, 32], strides = [1, 1]} : vector<2x128xf32> to vector<2x32xf32>
    %430 = vector.extract_strided_slice %427 {offsets = [0, 64], sizes = [2, 32], strides = [1, 1]} : vector<2x128xf32> to vector<2x32xf32>
    %431 = vector.extract_strided_slice %426 {offsets = [0, 96], sizes = [2, 32], strides = [1, 1]} : vector<2x128xf32> to vector<2x32xf32>
    %432 = arith.mulf %429, %398 : vector<2x32xf32>
    %433 = arith.mulf %428, %430 : vector<2x32xf32>
    %434 = arith.addf %432, %433 : vector<2x32xf32>
    %435 = math.tanh %434 : vector<2x32xf32>
    %436 = arith.mulf %431, %435 : vector<2x32xf32>
    %c8_198 = arith.constant 8 : index
    %c0_199 = arith.constant 0 : index
    %437 = vector.load %arg24[%c8_198, %c0_199] : memref<16x64xf32, #tpu.memory_space<vmem>>, vector<2x32xf32>
    tpu.vector_store %arg24[%c8_198, %c0_199], %436 {strides = array<i32>} : memref<16x64xf32, #tpu.memory_space<vmem>>, vector<2x32xf32>,
    %cst_200 = arith.constant dense<0.000000e+00> : vector<2x128xf32>
    %438 = tpu.matmul %418, %177, %cst_200 {dimension_numbers = #tpu.dot_dimension_numbers<[1], [0], [0], [1], [0, 0, 1, 1], [], []>} : vector<2x32xf32>, vector<32x128xf32>, vector<2x128xf32> -> vector<2x128xf32>
    %439 = arith.addf %250, %438 : vector<2x128xf32>
    %440 = arith.negf %439 : vector<2x128xf32>
    %441 = math.exp %440 : vector<2x128xf32>
    %cst_201 = arith.constant 1.000000e+00 : f32
    %442 = vector.broadcast %cst_201 : f32 to vector<2x128xf32>
    %443 = arith.addf %442, %441 : vector<2x128xf32>
    %444 = arith.divf %442, %443 : vector<2x128xf32>
    %445 = math.tanh %439 : vector<2x128xf32>
    %446 = vector.extract_strided_slice %444 {offsets = [0, 0], sizes = [2, 32], strides = [1, 1]} : vector<2x128xf32> to vector<2x32xf32>
    %447 = vector.extract_strided_slice %444 {offsets = [0, 32], sizes = [2, 32], strides = [1, 1]} : vector<2x128xf32> to vector<2x32xf32>
    %448 = vector.extract_strided_slice %445 {offsets = [0, 64], sizes = [2, 32], strides = [1, 1]} : vector<2x128xf32> to vector<2x32xf32>
    %449 = vector.extract_strided_slice %444 {offsets = [0, 96], sizes = [2, 32], strides = [1, 1]} : vector<2x128xf32> to vector<2x32xf32>
    %450 = arith.mulf %447, %416 : vector<2x32xf32>
    %451 = arith.mulf %446, %448 : vector<2x32xf32>
    %452 = arith.addf %450, %451 : vector<2x32xf32>
    %453 = math.tanh %452 : vector<2x32xf32>
    %454 = arith.mulf %449, %453 : vector<2x32xf32>
    %c6_202 = arith.constant 6 : index
    %c32_203 = arith.constant 32 : index
    %455 = vector.load %arg24[%c6_202, %c32_203] : memref<16x64xf32, #tpu.memory_space<vmem>>, vector<2x32xf32>
    tpu.vector_store %arg24[%c6_202, %c32_203], %454 {strides = array<i32>} : memref<16x64xf32, #tpu.memory_space<vmem>>, vector<2x32xf32>,
    %cst_204 = arith.constant dense<0.000000e+00> : vector<2x128xf32>
    %456 = tpu.matmul %436, %174, %cst_204 {dimension_numbers = #tpu.dot_dimension_numbers<[1], [0], [0], [1], [0, 0, 1, 1], [], []>} : vector<2x32xf32>, vector<32x128xf32>, vector<2x128xf32> -> vector<2x128xf32>
    %457 = arith.addf %214, %456 : vector<2x128xf32>
    %458 = arith.negf %457 : vector<2x128xf32>
    %459 = math.exp %458 : vector<2x128xf32>
    %cst_205 = arith.constant 1.000000e+00 : f32
    %460 = vector.broadcast %cst_205 : f32 to vector<2x128xf32>
    %461 = arith.addf %460, %459 : vector<2x128xf32>
    %462 = arith.divf %460, %461 : vector<2x128xf32>
    %463 = math.tanh %457 : vector<2x128xf32>
    %464 = vector.extract_strided_slice %462 {offsets = [0, 0], sizes = [2, 32], strides = [1, 1]} : vector<2x128xf32> to vector<2x32xf32>
    %465 = vector.extract_strided_slice %462 {offsets = [0, 32], sizes = [2, 32], strides = [1, 1]} : vector<2x128xf32> to vector<2x32xf32>
    %466 = vector.extract_strided_slice %463 {offsets = [0, 64], sizes = [2, 32], strides = [1, 1]} : vector<2x128xf32> to vector<2x32xf32>
    %467 = vector.extract_strided_slice %462 {offsets = [0, 96], sizes = [2, 32], strides = [1, 1]} : vector<2x128xf32> to vector<2x32xf32>
    %468 = arith.mulf %465, %434 : vector<2x32xf32>
    %469 = arith.mulf %464, %466 : vector<2x32xf32>
    %470 = arith.addf %468, %469 : vector<2x32xf32>
    %471 = math.tanh %470 : vector<2x32xf32>
    %472 = arith.mulf %467, %471 : vector<2x32xf32>
    %c10_206 = arith.constant 10 : index
    %c0_207 = arith.constant 0 : index
    %473 = vector.load %arg24[%c10_206, %c0_207] : memref<16x64xf32, #tpu.memory_space<vmem>>, vector<2x32xf32>
    tpu.vector_store %arg24[%c10_206, %c0_207], %472 {strides = array<i32>} : memref<16x64xf32, #tpu.memory_space<vmem>>, vector<2x32xf32>,
    %cst_208 = arith.constant dense<0.000000e+00> : vector<2x128xf32>
    %474 = tpu.matmul %454, %177, %cst_208 {dimension_numbers = #tpu.dot_dimension_numbers<[1], [0], [0], [1], [0, 0, 1, 1], [], []>} : vector<2x32xf32>, vector<32x128xf32>, vector<2x128xf32> -> vector<2x128xf32>
    %475 = arith.addf %244, %474 : vector<2x128xf32>
    %476 = arith.negf %475 : vector<2x128xf32>
    %477 = math.exp %476 : vector<2x128xf32>
    %cst_209 = arith.constant 1.000000e+00 : f32
    %478 = vector.broadcast %cst_209 : f32 to vector<2x128xf32>
    %479 = arith.addf %478, %477 : vector<2x128xf32>
    %480 = arith.divf %478, %479 : vector<2x128xf32>
    %481 = math.tanh %475 : vector<2x128xf32>
    %482 = vector.extract_strided_slice %480 {offsets = [0, 0], sizes = [2, 32], strides = [1, 1]} : vector<2x128xf32> to vector<2x32xf32>
    %483 = vector.extract_strided_slice %480 {offsets = [0, 32], sizes = [2, 32], strides = [1, 1]} : vector<2x128xf32> to vector<2x32xf32>
    %484 = vector.extract_strided_slice %481 {offsets = [0, 64], sizes = [2, 32], strides = [1, 1]} : vector<2x128xf32> to vector<2x32xf32>
    %485 = vector.extract_strided_slice %480 {offsets = [0, 96], sizes = [2, 32], strides = [1, 1]} : vector<2x128xf32> to vector<2x32xf32>
    %486 = arith.mulf %483, %452 : vector<2x32xf32>
    %487 = arith.mulf %482, %484 : vector<2x32xf32>
    %488 = arith.addf %486, %487 : vector<2x32xf32>
    %489 = math.tanh %488 : vector<2x32xf32>
    %490 = arith.mulf %485, %489 : vector<2x32xf32>
    %c4_210 = arith.constant 4 : index
    %c32_211 = arith.constant 32 : index
    %491 = vector.load %arg24[%c4_210, %c32_211] : memref<16x64xf32, #tpu.memory_space<vmem>>, vector<2x32xf32>
    tpu.vector_store %arg24[%c4_210, %c32_211], %490 {strides = array<i32>} : memref<16x64xf32, #tpu.memory_space<vmem>>, vector<2x32xf32>,
    %cst_212 = arith.constant dense<0.000000e+00> : vector<2x128xf32>
    %492 = tpu.matmul %472, %174, %cst_212 {dimension_numbers = #tpu.dot_dimension_numbers<[1], [0], [0], [1], [0, 0, 1, 1], [], []>} : vector<2x32xf32>, vector<32x128xf32>, vector<2x128xf32> -> vector<2x128xf32>
    %493 = arith.addf %220, %492 : vector<2x128xf32>
    %494 = arith.negf %493 : vector<2x128xf32>
    %495 = math.exp %494 : vector<2x128xf32>
    %cst_213 = arith.constant 1.000000e+00 : f32
    %496 = vector.broadcast %cst_213 : f32 to vector<2x128xf32>
    %497 = arith.addf %496, %495 : vector<2x128xf32>
    %498 = arith.divf %496, %497 : vector<2x128xf32>
    %499 = math.tanh %493 : vector<2x128xf32>
    %500 = vector.extract_strided_slice %498 {offsets = [0, 0], sizes = [2, 32], strides = [1, 1]} : vector<2x128xf32> to vector<2x32xf32>
    %501 = vector.extract_strided_slice %498 {offsets = [0, 32], sizes = [2, 32], strides = [1, 1]} : vector<2x128xf32> to vector<2x32xf32>
    %502 = vector.extract_strided_slice %499 {offsets = [0, 64], sizes = [2, 32], strides = [1, 1]} : vector<2x128xf32> to vector<2x32xf32>
    %503 = vector.extract_strided_slice %498 {offsets = [0, 96], sizes = [2, 32], strides = [1, 1]} : vector<2x128xf32> to vector<2x32xf32>
    %504 = arith.mulf %501, %470 : vector<2x32xf32>
    %505 = arith.mulf %500, %502 : vector<2x32xf32>
    %506 = arith.addf %504, %505 : vector<2x32xf32>
    %507 = math.tanh %506 : vector<2x32xf32>
    %508 = arith.mulf %503, %507 : vector<2x32xf32>
    %c12_214 = arith.constant 12 : index
    %c0_215 = arith.constant 0 : index
    %509 = vector.load %arg24[%c12_214, %c0_215] : memref<16x64xf32, #tpu.memory_space<vmem>>, vector<2x32xf32>
    tpu.vector_store %arg24[%c12_214, %c0_215], %508 {strides = array<i32>} : memref<16x64xf32, #tpu.memory_space<vmem>>, vector<2x32xf32>,
    %cst_216 = arith.constant dense<0.000000e+00> : vector<2x128xf32>
    %510 = tpu.matmul %490, %177, %cst_216 {dimension_numbers = #tpu.dot_dimension_numbers<[1], [0], [0], [1], [0, 0, 1, 1], [], []>} : vector<2x32xf32>, vector<32x128xf32>, vector<2x128xf32> -> vector<2x128xf32>
    %511 = arith.addf %238, %510 : vector<2x128xf32>
    %512 = arith.negf %511 : vector<2x128xf32>
    %513 = math.exp %512 : vector<2x128xf32>
    %cst_217 = arith.constant 1.000000e+00 : f32
    %514 = vector.broadcast %cst_217 : f32 to vector<2x128xf32>
    %515 = arith.addf %514, %513 : vector<2x128xf32>
    %516 = arith.divf %514, %515 : vector<2x128xf32>
    %517 = math.tanh %511 : vector<2x128xf32>
    %518 = vector.extract_strided_slice %516 {offsets = [0, 0], sizes = [2, 32], strides = [1, 1]} : vector<2x128xf32> to vector<2x32xf32>
    %519 = vector.extract_strided_slice %516 {offsets = [0, 32], sizes = [2, 32], strides = [1, 1]} : vector<2x128xf32> to vector<2x32xf32>
    %520 = vector.extract_strided_slice %517 {offsets = [0, 64], sizes = [2, 32], strides = [1, 1]} : vector<2x128xf32> to vector<2x32xf32>
    %521 = vector.extract_strided_slice %516 {offsets = [0, 96], sizes = [2, 32], strides = [1, 1]} : vector<2x128xf32> to vector<2x32xf32>
    %522 = arith.mulf %519, %488 : vector<2x32xf32>
    %523 = arith.mulf %518, %520 : vector<2x32xf32>
    %524 = arith.addf %522, %523 : vector<2x32xf32>
    %525 = math.tanh %524 : vector<2x32xf32>
    %526 = arith.mulf %521, %525 : vector<2x32xf32>
    %c2_218 = arith.constant 2 : index
    %c32_219 = arith.constant 32 : index
    %527 = vector.load %arg24[%c2_218, %c32_219] : memref<16x64xf32, #tpu.memory_space<vmem>>, vector<2x32xf32>
    tpu.vector_store %arg24[%c2_218, %c32_219], %526 {strides = array<i32>} : memref<16x64xf32, #tpu.memory_space<vmem>>, vector<2x32xf32>,
    %cst_220 = arith.constant dense<0.000000e+00> : vector<2x128xf32>
    %528 = tpu.matmul %508, %174, %cst_220 {dimension_numbers = #tpu.dot_dimension_numbers<[1], [0], [0], [1], [0, 0, 1, 1], [], []>} : vector<2x32xf32>, vector<32x128xf32>, vector<2x128xf32> -> vector<2x128xf32>
    %529 = arith.addf %226, %528 : vector<2x128xf32>
    %530 = arith.negf %529 : vector<2x128xf32>
    %531 = math.exp %530 : vector<2x128xf32>
    %cst_221 = arith.constant 1.000000e+00 : f32
    %532 = vector.broadcast %cst_221 : f32 to vector<2x128xf32>
    %533 = arith.addf %532, %531 : vector<2x128xf32>
    %534 = arith.divf %532, %533 : vector<2x128xf32>
    %535 = math.tanh %529 : vector<2x128xf32>
    %536 = vector.extract_strided_slice %534 {offsets = [0, 0], sizes = [2, 32], strides = [1, 1]} : vector<2x128xf32> to vector<2x32xf32>
    %537 = vector.extract_strided_slice %534 {offsets = [0, 32], sizes = [2, 32], strides = [1, 1]} : vector<2x128xf32> to vector<2x32xf32>
    %538 = vector.extract_strided_slice %535 {offsets = [0, 64], sizes = [2, 32], strides = [1, 1]} : vector<2x128xf32> to vector<2x32xf32>
    %539 = vector.extract_strided_slice %534 {offsets = [0, 96], sizes = [2, 32], strides = [1, 1]} : vector<2x128xf32> to vector<2x32xf32>
    %540 = arith.mulf %537, %506 : vector<2x32xf32>
    %541 = arith.mulf %536, %538 : vector<2x32xf32>
    %542 = arith.addf %540, %541 : vector<2x32xf32>
    %543 = math.tanh %542 : vector<2x32xf32>
    %544 = arith.mulf %539, %543 : vector<2x32xf32>
    %c14_222 = arith.constant 14 : index
    %c0_223 = arith.constant 0 : index
    %545 = vector.load %arg24[%c14_222, %c0_223] : memref<16x64xf32, #tpu.memory_space<vmem>>, vector<2x32xf32>
    tpu.vector_store %arg24[%c14_222, %c0_223], %544 {strides = array<i32>} : memref<16x64xf32, #tpu.memory_space<vmem>>, vector<2x32xf32>,
    %cst_224 = arith.constant dense<0.000000e+00> : vector<2x128xf32>
    %546 = tpu.matmul %526, %177, %cst_224 {dimension_numbers = #tpu.dot_dimension_numbers<[1], [0], [0], [1], [0, 0, 1, 1], [], []>} : vector<2x32xf32>, vector<32x128xf32>, vector<2x128xf32> -> vector<2x128xf32>
    %547 = arith.addf %232, %546 : vector<2x128xf32>
    %548 = arith.negf %547 : vector<2x128xf32>
    %549 = math.exp %548 : vector<2x128xf32>
    %cst_225 = arith.constant 1.000000e+00 : f32
    %550 = vector.broadcast %cst_225 : f32 to vector<2x128xf32>
    %551 = arith.addf %550, %549 : vector<2x128xf32>
    %552 = arith.divf %550, %551 : vector<2x128xf32>
    %553 = math.tanh %547 : vector<2x128xf32>
    %554 = vector.extract_strided_slice %552 {offsets = [0, 0], sizes = [2, 32], strides = [1, 1]} : vector<2x128xf32> to vector<2x32xf32>
    %555 = vector.extract_strided_slice %552 {offsets = [0, 32], sizes = [2, 32], strides = [1, 1]} : vector<2x128xf32> to vector<2x32xf32>
    %556 = vector.extract_strided_slice %553 {offsets = [0, 64], sizes = [2, 32], strides = [1, 1]} : vector<2x128xf32> to vector<2x32xf32>
    %557 = vector.extract_strided_slice %552 {offsets = [0, 96], sizes = [2, 32], strides = [1, 1]} : vector<2x128xf32> to vector<2x32xf32>
    %558 = arith.mulf %555, %524 : vector<2x32xf32>
    %559 = arith.mulf %554, %556 : vector<2x32xf32>
    %560 = arith.addf %558, %559 : vector<2x32xf32>
    %561 = math.tanh %560 : vector<2x32xf32>
    %562 = arith.mulf %557, %561 : vector<2x32xf32>
    %c0_226 = arith.constant 0 : index
    %c32_227 = arith.constant 32 : index
    %563 = vector.load %arg24[%c0_226, %c32_227] : memref<16x64xf32, #tpu.memory_space<vmem>>, vector<2x32xf32>
    tpu.vector_store %arg24[%c0_226, %c32_227], %562 {strides = array<i32>} : memref<16x64xf32, #tpu.memory_space<vmem>>, vector<2x32xf32>,
    %c0_228 = arith.constant 0 : index
    %c0_229 = arith.constant 0 : index
    %564 = vector.load %arg24[%c0_228, %c0_229] : memref<16x64xf32, #tpu.memory_space<vmem>>, vector<16x64xf32>
    %c0_230 = arith.constant 0 : index
    %c0_231 = arith.constant 0 : index
    %565 = vector.load %arg13[%c0_230, %c0_231] : memref<64x128xf32, #tpu.memory_space<vmem>>, vector<64x128xf32>
    %cst_232 = arith.constant dense<0.000000e+00> : vector<16x128xf32>
    %566 = tpu.matmul %564, %565, %cst_232 {dimension_numbers = #tpu.dot_dimension_numbers<[1], [0], [0], [1], [0, 0, 1, 1], [], []>} : vector<16x64xf32>, vector<64x128xf32>, vector<16x128xf32> -> vector<16x128xf32>
    %c0_233 = arith.constant 0 : index
    %c0_234 = arith.constant 0 : index
    %567 = vector.load %arg15[%c0_233, %c0_234] : memref<1x128xf32, #tpu.memory_space<vmem>>, vector<1x128xf32>
    %568 = vector.broadcast %567 : vector<1x128xf32> to vector<16x128xf32>
    %569 = arith.addf %566, %568 : vector<16x128xf32>
    %c0_235 = arith.constant 0 : index
    %c0_236 = arith.constant 0 : index
    %570 = vector.load %arg14[%c0_235, %c0_236] : memref<32x128xf32, #tpu.memory_space<vmem>>, vector<32x128xf32>
    %c0_237 = arith.constant 0 : index
    %c0_238 = arith.constant 0 : index
    %571 = vector.load %arg16[%c0_237, %c0_238] : memref<1x32xf32, #tpu.memory_space<vmem>>, vector<1x32xf32>
    %c0_239 = arith.constant 0 : index
    %c0_240 = arith.constant 0 : index
    %572 = vector.load %arg17[%c0_239, %c0_240] : memref<1x32xf32, #tpu.memory_space<vmem>>, vector<1x32xf32>
    %573 = tpu.iota {dimensions = array<i32: 1>} : vector<1x32xi32>
    %c30_i32 = arith.constant 30 : i32
    %574 = vector.broadcast %c30_i32 : i32 to vector<1x32xi32>
    %575 = arith.cmpi slt, %573, %574 : vector<1x32xi32>
    %576 = arith.extui %575 : vector<1x32xi1> to vector<1x32xi32>
    %577 = arith.sitofp %576 : vector<1x32xi32> to vector<1x32xf32>
    %578 = vector.extract_strided_slice %569 {offsets = [0, 0], sizes = [2, 128], strides = [1, 1]} : vector<16x128xf32> to vector<2x128xf32>
    %cst_241 = arith.constant dense<0.000000e+00> : vector<2x128xf32>
    %579 = tpu.matmul %275, %570, %cst_241 {dimension_numbers = #tpu.dot_dimension_numbers<[1], [0], [0], [1], [0, 0, 1, 1], [], []>} : vector<2x32xf32>, vector<32x128xf32>, vector<2x128xf32> -> vector<2x128xf32>
    %580 = arith.addf %578, %579 : vector<2x128xf32>
    %581 = arith.negf %580 : vector<2x128xf32>
    %582 = math.exp %581 : vector<2x128xf32>
    %cst_242 = arith.constant 1.000000e+00 : f32
    %583 = vector.broadcast %cst_242 : f32 to vector<2x128xf32>
    %584 = arith.addf %583, %582 : vector<2x128xf32>
    %585 = arith.divf %583, %584 : vector<2x128xf32>
    %586 = math.tanh %580 : vector<2x128xf32>
    %587 = vector.extract_strided_slice %585 {offsets = [0, 0], sizes = [2, 32], strides = [1, 1]} : vector<2x128xf32> to vector<2x32xf32>
    %588 = vector.extract_strided_slice %585 {offsets = [0, 32], sizes = [2, 32], strides = [1, 1]} : vector<2x128xf32> to vector<2x32xf32>
    %589 = vector.extract_strided_slice %586 {offsets = [0, 64], sizes = [2, 32], strides = [1, 1]} : vector<2x128xf32> to vector<2x32xf32>
    %590 = vector.extract_strided_slice %585 {offsets = [0, 96], sizes = [2, 32], strides = [1, 1]} : vector<2x128xf32> to vector<2x32xf32>
    %591 = arith.mulf %588, %275 : vector<2x32xf32>
    %592 = arith.mulf %587, %589 : vector<2x32xf32>
    %593 = arith.addf %591, %592 : vector<2x32xf32>
    %594 = math.tanh %593 : vector<2x32xf32>
    %595 = arith.mulf %590, %594 : vector<2x32xf32>
    %cst_243 = arith.constant dense<0.000000e+00> : vector<2xf32>
    %596 = vector.multi_reduction <add>, %595, %cst_243 [1] : vector<2x32xf32> to vector<2xf32>
    %597 = vector.shape_cast %596 : vector<2xf32> to vector<2x1xf32>
    %cst_244 = arith.constant 0.0333333351 : f32
    %598 = vector.broadcast %cst_244 : f32 to vector<2x1xf32>
    %599 = arith.mulf %597, %598 : vector<2x1xf32>
    %600 = vector.broadcast %599 : vector<2x1xf32> to vector<2x32xf32>
    %601 = arith.subf %595, %600 : vector<2x32xf32>
    %602 = vector.broadcast %577 : vector<1x32xf32> to vector<2x32xf32>
    %603 = arith.mulf %601, %602 : vector<2x32xf32>
    %604 = arith.mulf %603, %603 : vector<2x32xf32>
    %cst_245 = arith.constant dense<0.000000e+00> : vector<2xf32>
    %605 = vector.multi_reduction <add>, %604, %cst_245 [1] : vector<2x32xf32> to vector<2xf32>
    %606 = vector.shape_cast %605 : vector<2xf32> to vector<2x1xf32>
    %cst_246 = arith.constant 0.0333333351 : f32
    %607 = vector.broadcast %cst_246 : f32 to vector<2x1xf32>
    %608 = arith.mulf %606, %607 : vector<2x1xf32>
    %cst_247 = arith.constant 9.99999974E-6 : f32
    %609 = vector.broadcast %cst_247 : f32 to vector<2x1xf32>
    %610 = arith.addf %608, %609 : vector<2x1xf32>
    %611 = math.rsqrt %610 : vector<2x1xf32>
    %612 = vector.broadcast %611 : vector<2x1xf32> to vector<2x32xf32>
    %613 = arith.mulf %603, %612 : vector<2x32xf32>
    %614 = vector.broadcast %571 : vector<1x32xf32> to vector<2x32xf32>
    %615 = arith.mulf %613, %614 : vector<2x32xf32>
    %616 = vector.broadcast %572 : vector<1x32xf32> to vector<2x32xf32>
    %617 = arith.addf %615, %616 : vector<2x32xf32>
    %c0_248 = arith.constant 0 : index
    %c0_249 = arith.constant 0 : index
    %618 = vector.load %arg25[%c0_248, %c0_249] : memref<2x256xf32, #tpu.memory_space<vmem>>, vector<2x32xf32>
    tpu.vector_store %arg25[%c0_248, %c0_249], %617 {strides = array<i32>} : memref<2x256xf32, #tpu.memory_space<vmem>>, vector<2x32xf32>,
    %619 = vector.extract_strided_slice %569 {offsets = [2, 0], sizes = [2, 128], strides = [1, 1]} : vector<16x128xf32> to vector<2x128xf32>
    %cst_250 = arith.constant dense<0.000000e+00> : vector<2x128xf32>
    %620 = tpu.matmul %595, %570, %cst_250 {dimension_numbers = #tpu.dot_dimension_numbers<[1], [0], [0], [1], [0, 0, 1, 1], [], []>} : vector<2x32xf32>, vector<32x128xf32>, vector<2x128xf32> -> vector<2x128xf32>
    %621 = arith.addf %619, %620 : vector<2x128xf32>
    %622 = arith.negf %621 : vector<2x128xf32>
    %623 = math.exp %622 : vector<2x128xf32>
    %cst_251 = arith.constant 1.000000e+00 : f32
    %624 = vector.broadcast %cst_251 : f32 to vector<2x128xf32>
    %625 = arith.addf %624, %623 : vector<2x128xf32>
    %626 = arith.divf %624, %625 : vector<2x128xf32>
    %627 = math.tanh %621 : vector<2x128xf32>
    %628 = vector.extract_strided_slice %626 {offsets = [0, 0], sizes = [2, 32], strides = [1, 1]} : vector<2x128xf32> to vector<2x32xf32>
    %629 = vector.extract_strided_slice %626 {offsets = [0, 32], sizes = [2, 32], strides = [1, 1]} : vector<2x128xf32> to vector<2x32xf32>
    %630 = vector.extract_strided_slice %627 {offsets = [0, 64], sizes = [2, 32], strides = [1, 1]} : vector<2x128xf32> to vector<2x32xf32>
    %631 = vector.extract_strided_slice %626 {offsets = [0, 96], sizes = [2, 32], strides = [1, 1]} : vector<2x128xf32> to vector<2x32xf32>
    %632 = arith.mulf %629, %593 : vector<2x32xf32>
    %633 = arith.mulf %628, %630 : vector<2x32xf32>
    %634 = arith.addf %632, %633 : vector<2x32xf32>
    %635 = math.tanh %634 : vector<2x32xf32>
    %636 = arith.mulf %631, %635 : vector<2x32xf32>
    %cst_252 = arith.constant dense<0.000000e+00> : vector<2xf32>
    %637 = vector.multi_reduction <add>, %636, %cst_252 [1] : vector<2x32xf32> to vector<2xf32>
    %638 = vector.shape_cast %637 : vector<2xf32> to vector<2x1xf32>
    %cst_253 = arith.constant 0.0333333351 : f32
    %639 = vector.broadcast %cst_253 : f32 to vector<2x1xf32>
    %640 = arith.mulf %638, %639 : vector<2x1xf32>
    %641 = vector.broadcast %640 : vector<2x1xf32> to vector<2x32xf32>
    %642 = arith.subf %636, %641 : vector<2x32xf32>
    %643 = vector.broadcast %577 : vector<1x32xf32> to vector<2x32xf32>
    %644 = arith.mulf %642, %643 : vector<2x32xf32>
    %645 = arith.mulf %644, %644 : vector<2x32xf32>
    %cst_254 = arith.constant dense<0.000000e+00> : vector<2xf32>
    %646 = vector.multi_reduction <add>, %645, %cst_254 [1] : vector<2x32xf32> to vector<2xf32>
    %647 = vector.shape_cast %646 : vector<2xf32> to vector<2x1xf32>
    %cst_255 = arith.constant 0.0333333351 : f32
    %648 = vector.broadcast %cst_255 : f32 to vector<2x1xf32>
    %649 = arith.mulf %647, %648 : vector<2x1xf32>
    %cst_256 = arith.constant 9.99999974E-6 : f32
    %650 = vector.broadcast %cst_256 : f32 to vector<2x1xf32>
    %651 = arith.addf %649, %650 : vector<2x1xf32>
    %652 = math.rsqrt %651 : vector<2x1xf32>
    %653 = vector.broadcast %652 : vector<2x1xf32> to vector<2x32xf32>
    %654 = arith.mulf %644, %653 : vector<2x32xf32>
    %655 = vector.broadcast %571 : vector<1x32xf32> to vector<2x32xf32>
    %656 = arith.mulf %654, %655 : vector<2x32xf32>
    %657 = vector.broadcast %572 : vector<1x32xf32> to vector<2x32xf32>
    %658 = arith.addf %656, %657 : vector<2x32xf32>
    %c0_257 = arith.constant 0 : index
    %c32_258 = arith.constant 32 : index
    %659 = vector.load %arg25[%c0_257, %c32_258] : memref<2x256xf32, #tpu.memory_space<vmem>>, vector<2x32xf32>
    tpu.vector_store %arg25[%c0_257, %c32_258], %658 {strides = array<i32>} : memref<2x256xf32, #tpu.memory_space<vmem>>, vector<2x32xf32>,
    %660 = vector.extract_strided_slice %569 {offsets = [4, 0], sizes = [2, 128], strides = [1, 1]} : vector<16x128xf32> to vector<2x128xf32>
    %cst_259 = arith.constant dense<0.000000e+00> : vector<2x128xf32>
    %661 = tpu.matmul %636, %570, %cst_259 {dimension_numbers = #tpu.dot_dimension_numbers<[1], [0], [0], [1], [0, 0, 1, 1], [], []>} : vector<2x32xf32>, vector<32x128xf32>, vector<2x128xf32> -> vector<2x128xf32>
    %662 = arith.addf %660, %661 : vector<2x128xf32>
    %663 = arith.negf %662 : vector<2x128xf32>
    %664 = math.exp %663 : vector<2x128xf32>
    %cst_260 = arith.constant 1.000000e+00 : f32
    %665 = vector.broadcast %cst_260 : f32 to vector<2x128xf32>
    %666 = arith.addf %665, %664 : vector<2x128xf32>
    %667 = arith.divf %665, %666 : vector<2x128xf32>
    %668 = math.tanh %662 : vector<2x128xf32>
    %669 = vector.extract_strided_slice %667 {offsets = [0, 0], sizes = [2, 32], strides = [1, 1]} : vector<2x128xf32> to vector<2x32xf32>
    %670 = vector.extract_strided_slice %667 {offsets = [0, 32], sizes = [2, 32], strides = [1, 1]} : vector<2x128xf32> to vector<2x32xf32>
    %671 = vector.extract_strided_slice %668 {offsets = [0, 64], sizes = [2, 32], strides = [1, 1]} : vector<2x128xf32> to vector<2x32xf32>
    %672 = vector.extract_strided_slice %667 {offsets = [0, 96], sizes = [2, 32], strides = [1, 1]} : vector<2x128xf32> to vector<2x32xf32>
    %673 = arith.mulf %670, %634 : vector<2x32xf32>
    %674 = arith.mulf %669, %671 : vector<2x32xf32>
    %675 = arith.addf %673, %674 : vector<2x32xf32>
    %676 = math.tanh %675 : vector<2x32xf32>
    %677 = arith.mulf %672, %676 : vector<2x32xf32>
    %cst_261 = arith.constant dense<0.000000e+00> : vector<2xf32>
    %678 = vector.multi_reduction <add>, %677, %cst_261 [1] : vector<2x32xf32> to vector<2xf32>
    %679 = vector.shape_cast %678 : vector<2xf32> to vector<2x1xf32>
    %cst_262 = arith.constant 0.0333333351 : f32
    %680 = vector.broadcast %cst_262 : f32 to vector<2x1xf32>
    %681 = arith.mulf %679, %680 : vector<2x1xf32>
    %682 = vector.broadcast %681 : vector<2x1xf32> to vector<2x32xf32>
    %683 = arith.subf %677, %682 : vector<2x32xf32>
    %684 = vector.broadcast %577 : vector<1x32xf32> to vector<2x32xf32>
    %685 = arith.mulf %683, %684 : vector<2x32xf32>
    %686 = arith.mulf %685, %685 : vector<2x32xf32>
    %cst_263 = arith.constant dense<0.000000e+00> : vector<2xf32>
    %687 = vector.multi_reduction <add>, %686, %cst_263 [1] : vector<2x32xf32> to vector<2xf32>
    %688 = vector.shape_cast %687 : vector<2xf32> to vector<2x1xf32>
    %cst_264 = arith.constant 0.0333333351 : f32
    %689 = vector.broadcast %cst_264 : f32 to vector<2x1xf32>
    %690 = arith.mulf %688, %689 : vector<2x1xf32>
    %cst_265 = arith.constant 9.99999974E-6 : f32
    %691 = vector.broadcast %cst_265 : f32 to vector<2x1xf32>
    %692 = arith.addf %690, %691 : vector<2x1xf32>
    %693 = math.rsqrt %692 : vector<2x1xf32>
    %694 = vector.broadcast %693 : vector<2x1xf32> to vector<2x32xf32>
    %695 = arith.mulf %685, %694 : vector<2x32xf32>
    %696 = vector.broadcast %571 : vector<1x32xf32> to vector<2x32xf32>
    %697 = arith.mulf %695, %696 : vector<2x32xf32>
    %698 = vector.broadcast %572 : vector<1x32xf32> to vector<2x32xf32>
    %699 = arith.addf %697, %698 : vector<2x32xf32>
    %c0_266 = arith.constant 0 : index
    %c64_267 = arith.constant 64 : index
    %700 = vector.load %arg25[%c0_266, %c64_267] : memref<2x256xf32, #tpu.memory_space<vmem>>, vector<2x32xf32>
    tpu.vector_store %arg25[%c0_266, %c64_267], %699 {strides = array<i32>} : memref<2x256xf32, #tpu.memory_space<vmem>>, vector<2x32xf32>,
    %701 = vector.extract_strided_slice %569 {offsets = [6, 0], sizes = [2, 128], strides = [1, 1]} : vector<16x128xf32> to vector<2x128xf32>
    %cst_268 = arith.constant dense<0.000000e+00> : vector<2x128xf32>
    %702 = tpu.matmul %677, %570, %cst_268 {dimension_numbers = #tpu.dot_dimension_numbers<[1], [0], [0], [1], [0, 0, 1, 1], [], []>} : vector<2x32xf32>, vector<32x128xf32>, vector<2x128xf32> -> vector<2x128xf32>
    %703 = arith.addf %701, %702 : vector<2x128xf32>
    %704 = arith.negf %703 : vector<2x128xf32>
    %705 = math.exp %704 : vector<2x128xf32>
    %cst_269 = arith.constant 1.000000e+00 : f32
    %706 = vector.broadcast %cst_269 : f32 to vector<2x128xf32>
    %707 = arith.addf %706, %705 : vector<2x128xf32>
    %708 = arith.divf %706, %707 : vector<2x128xf32>
    %709 = math.tanh %703 : vector<2x128xf32>
    %710 = vector.extract_strided_slice %708 {offsets = [0, 0], sizes = [2, 32], strides = [1, 1]} : vector<2x128xf32> to vector<2x32xf32>
    %711 = vector.extract_strided_slice %708 {offsets = [0, 32], sizes = [2, 32], strides = [1, 1]} : vector<2x128xf32> to vector<2x32xf32>
    %712 = vector.extract_strided_slice %709 {offsets = [0, 64], sizes = [2, 32], strides = [1, 1]} : vector<2x128xf32> to vector<2x32xf32>
    %713 = vector.extract_strided_slice %708 {offsets = [0, 96], sizes = [2, 32], strides = [1, 1]} : vector<2x128xf32> to vector<2x32xf32>
    %714 = arith.mulf %711, %675 : vector<2x32xf32>
    %715 = arith.mulf %710, %712 : vector<2x32xf32>
    %716 = arith.addf %714, %715 : vector<2x32xf32>
    %717 = math.tanh %716 : vector<2x32xf32>
    %718 = arith.mulf %713, %717 : vector<2x32xf32>
    %cst_270 = arith.constant dense<0.000000e+00> : vector<2xf32>
    %719 = vector.multi_reduction <add>, %718, %cst_270 [1] : vector<2x32xf32> to vector<2xf32>
    %720 = vector.shape_cast %719 : vector<2xf32> to vector<2x1xf32>
    %cst_271 = arith.constant 0.0333333351 : f32
    %721 = vector.broadcast %cst_271 : f32 to vector<2x1xf32>
    %722 = arith.mulf %720, %721 : vector<2x1xf32>
    %723 = vector.broadcast %722 : vector<2x1xf32> to vector<2x32xf32>
    %724 = arith.subf %718, %723 : vector<2x32xf32>
    %725 = vector.broadcast %577 : vector<1x32xf32> to vector<2x32xf32>
    %726 = arith.mulf %724, %725 : vector<2x32xf32>
    %727 = arith.mulf %726, %726 : vector<2x32xf32>
    %cst_272 = arith.constant dense<0.000000e+00> : vector<2xf32>
    %728 = vector.multi_reduction <add>, %727, %cst_272 [1] : vector<2x32xf32> to vector<2xf32>
    %729 = vector.shape_cast %728 : vector<2xf32> to vector<2x1xf32>
    %cst_273 = arith.constant 0.0333333351 : f32
    %730 = vector.broadcast %cst_273 : f32 to vector<2x1xf32>
    %731 = arith.mulf %729, %730 : vector<2x1xf32>
    %cst_274 = arith.constant 9.99999974E-6 : f32
    %732 = vector.broadcast %cst_274 : f32 to vector<2x1xf32>
    %733 = arith.addf %731, %732 : vector<2x1xf32>
    %734 = math.rsqrt %733 : vector<2x1xf32>
    %735 = vector.broadcast %734 : vector<2x1xf32> to vector<2x32xf32>
    %736 = arith.mulf %726, %735 : vector<2x32xf32>
    %737 = vector.broadcast %571 : vector<1x32xf32> to vector<2x32xf32>
    %738 = arith.mulf %736, %737 : vector<2x32xf32>
    %739 = vector.broadcast %572 : vector<1x32xf32> to vector<2x32xf32>
    %740 = arith.addf %738, %739 : vector<2x32xf32>
    %c0_275 = arith.constant 0 : index
    %c96 = arith.constant 96 : index
    %741 = vector.load %arg25[%c0_275, %c96] : memref<2x256xf32, #tpu.memory_space<vmem>>, vector<2x32xf32>
    tpu.vector_store %arg25[%c0_275, %c96], %740 {strides = array<i32>} : memref<2x256xf32, #tpu.memory_space<vmem>>, vector<2x32xf32>,
    %742 = vector.extract_strided_slice %569 {offsets = [8, 0], sizes = [2, 128], strides = [1, 1]} : vector<16x128xf32> to vector<2x128xf32>
    %cst_276 = arith.constant dense<0.000000e+00> : vector<2x128xf32>
    %743 = tpu.matmul %718, %570, %cst_276 {dimension_numbers = #tpu.dot_dimension_numbers<[1], [0], [0], [1], [0, 0, 1, 1], [], []>} : vector<2x32xf32>, vector<32x128xf32>, vector<2x128xf32> -> vector<2x128xf32>
    %744 = arith.addf %742, %743 : vector<2x128xf32>
    %745 = arith.negf %744 : vector<2x128xf32>
    %746 = math.exp %745 : vector<2x128xf32>
    %cst_277 = arith.constant 1.000000e+00 : f32
    %747 = vector.broadcast %cst_277 : f32 to vector<2x128xf32>
    %748 = arith.addf %747, %746 : vector<2x128xf32>
    %749 = arith.divf %747, %748 : vector<2x128xf32>
    %750 = math.tanh %744 : vector<2x128xf32>
    %751 = vector.extract_strided_slice %749 {offsets = [0, 0], sizes = [2, 32], strides = [1, 1]} : vector<2x128xf32> to vector<2x32xf32>
    %752 = vector.extract_strided_slice %749 {offsets = [0, 32], sizes = [2, 32], strides = [1, 1]} : vector<2x128xf32> to vector<2x32xf32>
    %753 = vector.extract_strided_slice %750 {offsets = [0, 64], sizes = [2, 32], strides = [1, 1]} : vector<2x128xf32> to vector<2x32xf32>
    %754 = vector.extract_strided_slice %749 {offsets = [0, 96], sizes = [2, 32], strides = [1, 1]} : vector<2x128xf32> to vector<2x32xf32>
    %755 = arith.mulf %752, %716 : vector<2x32xf32>
    %756 = arith.mulf %751, %753 : vector<2x32xf32>
    %757 = arith.addf %755, %756 : vector<2x32xf32>
    %758 = math.tanh %757 : vector<2x32xf32>
    %759 = arith.mulf %754, %758 : vector<2x32xf32>
    %cst_278 = arith.constant dense<0.000000e+00> : vector<2xf32>
    %760 = vector.multi_reduction <add>, %759, %cst_278 [1] : vector<2x32xf32> to vector<2xf32>
    %761 = vector.shape_cast %760 : vector<2xf32> to vector<2x1xf32>
    %cst_279 = arith.constant 0.0333333351 : f32
    %762 = vector.broadcast %cst_279 : f32 to vector<2x1xf32>
    %763 = arith.mulf %761, %762 : vector<2x1xf32>
    %764 = vector.broadcast %763 : vector<2x1xf32> to vector<2x32xf32>
    %765 = arith.subf %759, %764 : vector<2x32xf32>
    %766 = vector.broadcast %577 : vector<1x32xf32> to vector<2x32xf32>
    %767 = arith.mulf %765, %766 : vector<2x32xf32>
    %768 = arith.mulf %767, %767 : vector<2x32xf32>
    %cst_280 = arith.constant dense<0.000000e+00> : vector<2xf32>
    %769 = vector.multi_reduction <add>, %768, %cst_280 [1] : vector<2x32xf32> to vector<2xf32>
    %770 = vector.shape_cast %769 : vector<2xf32> to vector<2x1xf32>
    %cst_281 = arith.constant 0.0333333351 : f32
    %771 = vector.broadcast %cst_281 : f32 to vector<2x1xf32>
    %772 = arith.mulf %770, %771 : vector<2x1xf32>
    %cst_282 = arith.constant 9.99999974E-6 : f32
    %773 = vector.broadcast %cst_282 : f32 to vector<2x1xf32>
    %774 = arith.addf %772, %773 : vector<2x1xf32>
    %775 = math.rsqrt %774 : vector<2x1xf32>
    %776 = vector.broadcast %775 : vector<2x1xf32> to vector<2x32xf32>
    %777 = arith.mulf %767, %776 : vector<2x32xf32>
    %778 = vector.broadcast %571 : vector<1x32xf32> to vector<2x32xf32>
    %779 = arith.mulf %777, %778 : vector<2x32xf32>
    %780 = vector.broadcast %572 : vector<1x32xf32> to vector<2x32xf32>
    %781 = arith.addf %779, %780 : vector<2x32xf32>
    %c0_283 = arith.constant 0 : index
    %c128 = arith.constant 128 : index
    %782 = vector.load %arg25[%c0_283, %c128] : memref<2x256xf32, #tpu.memory_space<vmem>>, vector<2x32xf32>
    tpu.vector_store %arg25[%c0_283, %c128], %781 {strides = array<i32>} : memref<2x256xf32, #tpu.memory_space<vmem>>, vector<2x32xf32>,
    %783 = vector.extract_strided_slice %569 {offsets = [10, 0], sizes = [2, 128], strides = [1, 1]} : vector<16x128xf32> to vector<2x128xf32>
    %cst_284 = arith.constant dense<0.000000e+00> : vector<2x128xf32>
    %784 = tpu.matmul %759, %570, %cst_284 {dimension_numbers = #tpu.dot_dimension_numbers<[1], [0], [0], [1], [0, 0, 1, 1], [], []>} : vector<2x32xf32>, vector<32x128xf32>, vector<2x128xf32> -> vector<2x128xf32>
    %785 = arith.addf %783, %784 : vector<2x128xf32>
    %786 = arith.negf %785 : vector<2x128xf32>
    %787 = math.exp %786 : vector<2x128xf32>
    %cst_285 = arith.constant 1.000000e+00 : f32
    %788 = vector.broadcast %cst_285 : f32 to vector<2x128xf32>
    %789 = arith.addf %788, %787 : vector<2x128xf32>
    %790 = arith.divf %788, %789 : vector<2x128xf32>
    %791 = math.tanh %785 : vector<2x128xf32>
    %792 = vector.extract_strided_slice %790 {offsets = [0, 0], sizes = [2, 32], strides = [1, 1]} : vector<2x128xf32> to vector<2x32xf32>
    %793 = vector.extract_strided_slice %790 {offsets = [0, 32], sizes = [2, 32], strides = [1, 1]} : vector<2x128xf32> to vector<2x32xf32>
    %794 = vector.extract_strided_slice %791 {offsets = [0, 64], sizes = [2, 32], strides = [1, 1]} : vector<2x128xf32> to vector<2x32xf32>
    %795 = vector.extract_strided_slice %790 {offsets = [0, 96], sizes = [2, 32], strides = [1, 1]} : vector<2x128xf32> to vector<2x32xf32>
    %796 = arith.mulf %793, %757 : vector<2x32xf32>
    %797 = arith.mulf %792, %794 : vector<2x32xf32>
    %798 = arith.addf %796, %797 : vector<2x32xf32>
    %799 = math.tanh %798 : vector<2x32xf32>
    %800 = arith.mulf %795, %799 : vector<2x32xf32>
    %cst_286 = arith.constant dense<0.000000e+00> : vector<2xf32>
    %801 = vector.multi_reduction <add>, %800, %cst_286 [1] : vector<2x32xf32> to vector<2xf32>
    %802 = vector.shape_cast %801 : vector<2xf32> to vector<2x1xf32>
    %cst_287 = arith.constant 0.0333333351 : f32
    %803 = vector.broadcast %cst_287 : f32 to vector<2x1xf32>
    %804 = arith.mulf %802, %803 : vector<2x1xf32>
    %805 = vector.broadcast %804 : vector<2x1xf32> to vector<2x32xf32>
    %806 = arith.subf %800, %805 : vector<2x32xf32>
    %807 = vector.broadcast %577 : vector<1x32xf32> to vector<2x32xf32>
    %808 = arith.mulf %806, %807 : vector<2x32xf32>
    %809 = arith.mulf %808, %808 : vector<2x32xf32>
    %cst_288 = arith.constant dense<0.000000e+00> : vector<2xf32>
    %810 = vector.multi_reduction <add>, %809, %cst_288 [1] : vector<2x32xf32> to vector<2xf32>
    %811 = vector.shape_cast %810 : vector<2xf32> to vector<2x1xf32>
    %cst_289 = arith.constant 0.0333333351 : f32
    %812 = vector.broadcast %cst_289 : f32 to vector<2x1xf32>
    %813 = arith.mulf %811, %812 : vector<2x1xf32>
    %cst_290 = arith.constant 9.99999974E-6 : f32
    %814 = vector.broadcast %cst_290 : f32 to vector<2x1xf32>
    %815 = arith.addf %813, %814 : vector<2x1xf32>
    %816 = math.rsqrt %815 : vector<2x1xf32>
    %817 = vector.broadcast %816 : vector<2x1xf32> to vector<2x32xf32>
    %818 = arith.mulf %808, %817 : vector<2x32xf32>
    %819 = vector.broadcast %571 : vector<1x32xf32> to vector<2x32xf32>
    %820 = arith.mulf %818, %819 : vector<2x32xf32>
    %821 = vector.broadcast %572 : vector<1x32xf32> to vector<2x32xf32>
    %822 = arith.addf %820, %821 : vector<2x32xf32>
    %c0_291 = arith.constant 0 : index
    %c160 = arith.constant 160 : index
    %823 = vector.load %arg25[%c0_291, %c160] : memref<2x256xf32, #tpu.memory_space<vmem>>, vector<2x32xf32>
    tpu.vector_store %arg25[%c0_291, %c160], %822 {strides = array<i32>} : memref<2x256xf32, #tpu.memory_space<vmem>>, vector<2x32xf32>,
    %824 = vector.extract_strided_slice %569 {offsets = [12, 0], sizes = [2, 128], strides = [1, 1]} : vector<16x128xf32> to vector<2x128xf32>
    %cst_292 = arith.constant dense<0.000000e+00> : vector<2x128xf32>
    %825 = tpu.matmul %800, %570, %cst_292 {dimension_numbers = #tpu.dot_dimension_numbers<[1], [0], [0], [1], [0, 0, 1, 1], [], []>} : vector<2x32xf32>, vector<32x128xf32>, vector<2x128xf32> -> vector<2x128xf32>
    %826 = arith.addf %824, %825 : vector<2x128xf32>
    %827 = arith.negf %826 : vector<2x128xf32>
    %828 = math.exp %827 : vector<2x128xf32>
    %cst_293 = arith.constant 1.000000e+00 : f32
    %829 = vector.broadcast %cst_293 : f32 to vector<2x128xf32>
    %830 = arith.addf %829, %828 : vector<2x128xf32>
    %831 = arith.divf %829, %830 : vector<2x128xf32>
    %832 = math.tanh %826 : vector<2x128xf32>
    %833 = vector.extract_strided_slice %831 {offsets = [0, 0], sizes = [2, 32], strides = [1, 1]} : vector<2x128xf32> to vector<2x32xf32>
    %834 = vector.extract_strided_slice %831 {offsets = [0, 32], sizes = [2, 32], strides = [1, 1]} : vector<2x128xf32> to vector<2x32xf32>
    %835 = vector.extract_strided_slice %832 {offsets = [0, 64], sizes = [2, 32], strides = [1, 1]} : vector<2x128xf32> to vector<2x32xf32>
    %836 = vector.extract_strided_slice %831 {offsets = [0, 96], sizes = [2, 32], strides = [1, 1]} : vector<2x128xf32> to vector<2x32xf32>
    %837 = arith.mulf %834, %798 : vector<2x32xf32>
    %838 = arith.mulf %833, %835 : vector<2x32xf32>
    %839 = arith.addf %837, %838 : vector<2x32xf32>
    %840 = math.tanh %839 : vector<2x32xf32>
    %841 = arith.mulf %836, %840 : vector<2x32xf32>
    %cst_294 = arith.constant dense<0.000000e+00> : vector<2xf32>
    %842 = vector.multi_reduction <add>, %841, %cst_294 [1] : vector<2x32xf32> to vector<2xf32>
    %843 = vector.shape_cast %842 : vector<2xf32> to vector<2x1xf32>
    %cst_295 = arith.constant 0.0333333351 : f32
    %844 = vector.broadcast %cst_295 : f32 to vector<2x1xf32>
    %845 = arith.mulf %843, %844 : vector<2x1xf32>
    %846 = vector.broadcast %845 : vector<2x1xf32> to vector<2x32xf32>
    %847 = arith.subf %841, %846 : vector<2x32xf32>
    %848 = vector.broadcast %577 : vector<1x32xf32> to vector<2x32xf32>
    %849 = arith.mulf %847, %848 : vector<2x32xf32>
    %850 = arith.mulf %849, %849 : vector<2x32xf32>
    %cst_296 = arith.constant dense<0.000000e+00> : vector<2xf32>
    %851 = vector.multi_reduction <add>, %850, %cst_296 [1] : vector<2x32xf32> to vector<2xf32>
    %852 = vector.shape_cast %851 : vector<2xf32> to vector<2x1xf32>
    %cst_297 = arith.constant 0.0333333351 : f32
    %853 = vector.broadcast %cst_297 : f32 to vector<2x1xf32>
    %854 = arith.mulf %852, %853 : vector<2x1xf32>
    %cst_298 = arith.constant 9.99999974E-6 : f32
    %855 = vector.broadcast %cst_298 : f32 to vector<2x1xf32>
    %856 = arith.addf %854, %855 : vector<2x1xf32>
    %857 = math.rsqrt %856 : vector<2x1xf32>
    %858 = vector.broadcast %857 : vector<2x1xf32> to vector<2x32xf32>
    %859 = arith.mulf %849, %858 : vector<2x32xf32>
    %860 = vector.broadcast %571 : vector<1x32xf32> to vector<2x32xf32>
    %861 = arith.mulf %859, %860 : vector<2x32xf32>
    %862 = vector.broadcast %572 : vector<1x32xf32> to vector<2x32xf32>
    %863 = arith.addf %861, %862 : vector<2x32xf32>
    %c0_299 = arith.constant 0 : index
    %c192 = arith.constant 192 : index
    %864 = vector.load %arg25[%c0_299, %c192] : memref<2x256xf32, #tpu.memory_space<vmem>>, vector<2x32xf32>
    tpu.vector_store %arg25[%c0_299, %c192], %863 {strides = array<i32>} : memref<2x256xf32, #tpu.memory_space<vmem>>, vector<2x32xf32>,
    %865 = vector.extract_strided_slice %569 {offsets = [14, 0], sizes = [2, 128], strides = [1, 1]} : vector<16x128xf32> to vector<2x128xf32>
    %cst_300 = arith.constant dense<0.000000e+00> : vector<2x128xf32>
    %866 = tpu.matmul %841, %570, %cst_300 {dimension_numbers = #tpu.dot_dimension_numbers<[1], [0], [0], [1], [0, 0, 1, 1], [], []>} : vector<2x32xf32>, vector<32x128xf32>, vector<2x128xf32> -> vector<2x128xf32>
    %867 = arith.addf %865, %866 : vector<2x128xf32>
    %868 = arith.negf %867 : vector<2x128xf32>
    %869 = math.exp %868 : vector<2x128xf32>
    %cst_301 = arith.constant 1.000000e+00 : f32
    %870 = vector.broadcast %cst_301 : f32 to vector<2x128xf32>
    %871 = arith.addf %870, %869 : vector<2x128xf32>
    %872 = arith.divf %870, %871 : vector<2x128xf32>
    %873 = math.tanh %867 : vector<2x128xf32>
    %874 = vector.extract_strided_slice %872 {offsets = [0, 0], sizes = [2, 32], strides = [1, 1]} : vector<2x128xf32> to vector<2x32xf32>
    %875 = vector.extract_strided_slice %872 {offsets = [0, 32], sizes = [2, 32], strides = [1, 1]} : vector<2x128xf32> to vector<2x32xf32>
    %876 = vector.extract_strided_slice %873 {offsets = [0, 64], sizes = [2, 32], strides = [1, 1]} : vector<2x128xf32> to vector<2x32xf32>
    %877 = vector.extract_strided_slice %872 {offsets = [0, 96], sizes = [2, 32], strides = [1, 1]} : vector<2x128xf32> to vector<2x32xf32>
    %878 = arith.mulf %875, %839 : vector<2x32xf32>
    %879 = arith.mulf %874, %876 : vector<2x32xf32>
    %880 = arith.addf %878, %879 : vector<2x32xf32>
    %881 = math.tanh %880 : vector<2x32xf32>
    %882 = arith.mulf %877, %881 : vector<2x32xf32>
    %cst_302 = arith.constant dense<0.000000e+00> : vector<2xf32>
    %883 = vector.multi_reduction <add>, %882, %cst_302 [1] : vector<2x32xf32> to vector<2xf32>
    %884 = vector.shape_cast %883 : vector<2xf32> to vector<2x1xf32>
    %cst_303 = arith.constant 0.0333333351 : f32
    %885 = vector.broadcast %cst_303 : f32 to vector<2x1xf32>
    %886 = arith.mulf %884, %885 : vector<2x1xf32>
    %887 = vector.broadcast %886 : vector<2x1xf32> to vector<2x32xf32>
    %888 = arith.subf %882, %887 : vector<2x32xf32>
    %889 = vector.broadcast %577 : vector<1x32xf32> to vector<2x32xf32>
    %890 = arith.mulf %888, %889 : vector<2x32xf32>
    %891 = arith.mulf %890, %890 : vector<2x32xf32>
    %cst_304 = arith.constant dense<0.000000e+00> : vector<2xf32>
    %892 = vector.multi_reduction <add>, %891, %cst_304 [1] : vector<2x32xf32> to vector<2xf32>
    %893 = vector.shape_cast %892 : vector<2xf32> to vector<2x1xf32>
    %cst_305 = arith.constant 0.0333333351 : f32
    %894 = vector.broadcast %cst_305 : f32 to vector<2x1xf32>
    %895 = arith.mulf %893, %894 : vector<2x1xf32>
    %cst_306 = arith.constant 9.99999974E-6 : f32
    %896 = vector.broadcast %cst_306 : f32 to vector<2x1xf32>
    %897 = arith.addf %895, %896 : vector<2x1xf32>
    %898 = math.rsqrt %897 : vector<2x1xf32>
    %899 = vector.broadcast %898 : vector<2x1xf32> to vector<2x32xf32>
    %900 = arith.mulf %890, %899 : vector<2x32xf32>
    %901 = vector.broadcast %571 : vector<1x32xf32> to vector<2x32xf32>
    %902 = arith.mulf %900, %901 : vector<2x32xf32>
    %903 = vector.broadcast %572 : vector<1x32xf32> to vector<2x32xf32>
    %904 = arith.addf %902, %903 : vector<2x32xf32>
    %c0_307 = arith.constant 0 : index
    %c224 = arith.constant 224 : index
    %905 = vector.load %arg25[%c0_307, %c224] : memref<2x256xf32, #tpu.memory_space<vmem>>, vector<2x32xf32>
    tpu.vector_store %arg25[%c0_307, %c224], %904 {strides = array<i32>} : memref<2x256xf32, #tpu.memory_space<vmem>>, vector<2x32xf32>,
    %c0_308 = arith.constant 0 : index
    %c0_309 = arith.constant 0 : index
    %906 = vector.load %arg25[%c0_308, %c0_309] : memref<2x256xf32, #tpu.memory_space<vmem>>, vector<2x256xf32>
    %c0_310 = arith.constant 0 : index
    %c0_311 = arith.constant 0 : index
    %907 = vector.load %arg18[%c0_310, %c0_311] : memref<256x128xf32, #tpu.memory_space<vmem>>, vector<256x128xf32>
    %cst_312 = arith.constant dense<0.000000e+00> : vector<2x128xf32>
    %908 = tpu.matmul %906, %907, %cst_312 {dimension_numbers = #tpu.dot_dimension_numbers<[1], [0], [0], [1], [0, 0, 1, 1], [], []>} : vector<2x256xf32>, vector<256x128xf32>, vector<2x128xf32> -> vector<2x128xf32>
    %c0_313 = arith.constant 0 : index
    %c0_314 = arith.constant 0 : index
    %909 = vector.load %arg19[%c0_313, %c0_314] : memref<80x128xf32, #tpu.memory_space<vmem>>, vector<80x128xf32>
    %cst_315 = arith.constant dense<0.000000e+00> : vector<2x128xf32>
    %910 = tpu.matmul %172, %909, %cst_315 {dimension_numbers = #tpu.dot_dimension_numbers<[1], [0], [0], [1], [0, 0, 1, 1], [], []>} : vector<2x80xf32>, vector<80x128xf32>, vector<2x128xf32> -> vector<2x128xf32>
    %911 = arith.addf %908, %910 : vector<2x128xf32>
    %c0_316 = arith.constant 0 : index
    %c0_317 = arith.constant 0 : index
    %912 = vector.load %arg20[%c0_316, %c0_317] : memref<1x128xf32, #tpu.memory_space<vmem>>, vector<1x128xf32>
    %913 = vector.broadcast %912 : vector<1x128xf32> to vector<2x128xf32>
    %914 = arith.addf %911, %913 : vector<2x128xf32>
    %c0_318 = arith.constant 0 : index
    %c0_319 = arith.constant 0 : index
    %915 = vector.load %arg21[%c0_318, %c0_319] : memref<2x128xf32, #tpu.memory_space<vmem>>, vector<2x128xf32>
    tpu.vector_store %arg21[%c0_318, %c0_319], %914 {strides = array<i32>} : memref<2x128xf32, #tpu.memory_space<vmem>>, vector<2x128xf32>,
    return
  }
}

</mosaic_0001>

<bundles_post_ra>
// kernel: hybrid_lstm_forward.1
= control target key start
LH: loop header
LB: loop body
LE: loop exit
PB: predicated region body
PF: predicated region fallthrough
CT: control target
= control target key end

     0   :  { %v5497_v0 = vmov 3   ;;  %v5498_v2 = vmov 4   ;;  %v5499_v3 = vmov 0   ;;  %v5500_v4 = vmov 7   ;;  %s6920_s0 = inlined_call_operand.vmem [shape: f32[2,8], index: 0, kind: input, shape index: {}]   ;;  %s6921_s3 = inlined_call_operand.vmem [shape: f32[5,128,64], index: 3, kind: input, shape index: {}]   ;;  %s6922_s1 = inlined_call_operand.vmem [shape: f32[2,64], index: 1, kind: input, shape index: {}]   ;;  %s6923_s7 = inlined_call_operand.vmem [shape: f32[1,128], index: 7, kind: input, shape index: {}]   ;;  %s6924_s10 = inlined_call_operand.vmem [shape: f32[1,128], index: 10, kind: input, shape index: {}]   ;;  %s6925_s2 = inlined_call_operand.vmem [shape: f32[1,64], index: 2, kind: input, shape index: {}]   ;;  %s6926_s9 = inlined_call_operand.vmem [shape: f32[1,128], index: 9, kind: input, shape index: {}]   ;;  %s6927_s12 = inlined_call_operand.vmem [shape: f32[1,128], index: 12, kind: input, shape index: {}]   ;;  %s6928_s4 = inlined_call_operand.vmem [shape: f32[5,1,64], index: 4, kind: input, shape index: {}]   ;;  %s6929_s8 = inlined_call_operand.vmem [shape: f32[32,128], index: 8, kind: input, shape index: {}]   ;;  %s6930_s11 = inlined_call_operand.vmem [shape: f32[32,128], index: 11, kind: input, shape index: {}]   ;;  %s6931_s5 = inlined_call_operand.vmem [shape: f32[128,80], index: 5, kind: input, shape index: {}]   ;;  %s6932_s13 = inlined_call_operand.vmem [shape: f32[64,128], index: 13, kind: input, shape index: {}]   ;;  %s6933_s14 = inlined_call_operand.vmem [shape: f32[32,128], index: 14, kind: input, shape index: {}]   ;;  %s6934_s15 = inlined_call_operand.vmem [shape: f32[1,128], index: 15, kind: input, shape index: {}]   ;;  %s6935_s19 = inlined_call_operand.vmem [shape: f32[80,128], index: 19, kind: input, shape index: {}]   ;;  %s6936_s6 = inlined_call_operand.vmem [shape: f32[1,80], index: 6, kind: input, shape index: {}]   ;;  %s6937_s17 = inlined_call_operand.vmem [shape: f32[1,32], index: 17, kind: input, shape index: {}]   ;;  %s6938_s16 = inlined_call_operand.vmem [shape: f32[1,32], index: 16, kind: input, shape index: {}]   ;;  %s6939_s18 = inlined_call_operand.vmem [shape: f32[256,128], index: 18, kind: input, shape index: {}]   ;;  %s6940_s20 = inlined_call_operand.vmem [shape: f32[1,128], index: 20, kind: input, shape index: {}]   ;;  %s6941_s21 = inlined_call_operand.vmem [shape: f32[2,128], index: 21, kind: output, shape index: {}]  }
   0x1   :  { %6943 = sst [smem:[#allocation6_spill]] %s6920_s0  ;;  %5280 = vset.pattern.permute.xlu0 %v5497_v0  ;;  %5282 = vset.pattern.permute.xlu1 %v5498_v2  ;;  %v5501_v5 = vmov 1   ;;  %v5502_v6 = vmov 5   ;;  %v5503_v7 = vmov 2   ;;  %v5504_v8 = vmov 6  }
   0x2   :  { %6944 = sst [smem:[#allocation7_spill]] %s6921_s3  ;;  %s6949_s26 = sld [smem:[#allocation6_spill]]  ;;  %v5505_v9 = vmov 0.0|0.0   ;;  %v76_v22 = vlaneseq  ;;  %v5685_v34 = vld [vmem:[%s6926_s9] ss:$0 sm:$0xff]  ;;  %vm89_vm0 = vcmask 517120  }
   0x3   :  { %6945 = sst [smem:[#allocation8_spill]] %s6922_s1  ;;  %4914 = vmatprep.subr.bf16.mxu0 %v5505_v9  ;;  %s6950_s28 = sld [smem:[#allocation7_spill]]  ;;  %4938 = vmatprep.subr.bf16.mxu1 %v5505_v9  ;;  %v5698_v39 = vld [vmem:[%s6927_s12] ss:$0 sm:$0xff]  ;;  %v5506_v53 = vmov 0.0   ;;  %vm5508_vm1 = vmmov 0  }
   0x4   :  { %6946 = sst [smem:[#allocation9_spill]] %s6923_s7  ;;  %v5656_v23 = vshrl.u32 %v76_v22, 7  ;;  %146 = vst.msk [vmem:[#allocation2] sm:$0x3] %vm89_vm0, %v5506_v53  ;;  %4430 = vmatprep.mubr.msk.f32.mxu0 %vm5508_vm1, %v5506_v53  ;;  %4465 = vmatprep.mubr.msk.f32.mxu1 %vm5508_vm1, %v5506_v53  ;;  %vm151_vm2 = vcmask 1041920   ;;  %vm264_vm3 = vcmask 521216  }
   0x5   :  { %6947 = sst [smem:[#allocation10_spill]] %s6924_s10  ;;  %s6951_s10 = sld [smem:[#allocation8_spill]]  ;;  %vm378_vm4 = vcmask 519168   ;;  %vm710_vm5 = vcmask 523264   ;;  %vm977_vm6 = vcmask 254976   ;;  %vm874_vm7 = vcmask 261120  }
   0x6   :  { %6948 = sst [smem:[#allocation11_spill]] %s6925_s2  ;;  %v97_v24 = vsub.s32 0, %v5656_v23  ;;  %v78_v25 = vsub.s32 1, %v5656_v23  ;;  %s6952_s22 = sld [smem:[#allocation9_spill]]  ;;  %vm1078_vm8 = vcmask 517376   ;;  %vm3819_vm9 = vcmask 654336  }
   0x7   :  { %s6953_s24 = sld [smem:[#allocation10_spill]]  ;;  %vm2889_vm10 = vcmask 257026   ;;  %vm3033_vm11 = vcmask 259076   ;;  %vm3178_vm12 = vcmask 261126   ;;  %vm3066_vm14 = vcmask 779776  }
   0x8   :  { %v68_v1 = vld [vmem:[%s6949_s26] sm:$0x3]  ;;  %s6954_s26 = sld [smem:[#allocation11_spill]]  ;;  %vm3210_vm15 = vcmask 1042176  }
   0x9   :  { %110 = vperm.xlu0 %5280, %v68_v1   ;;  %116 = vperm.xlu1 %5282, %v68_v1   ;;  %v170_v10 = vld [vmem:[%s6950_s28] sm:$0xff]  ;;  %v171_v11 = vld [vmem:[%s6950_s28 + $0x8] sm:$0xff]  ;;  %v172_v12 = vld [vmem:[%s6950_s28 + $0x10] sm:$0xff] }
   0xa   :  { %v4915_v13 = vpack.c.bf16 %v171_v11, %v170_v10  ;;  %v173_v14 = vld [vmem:[%s6950_s28 + $0x18] sm:$0xff]  ;;  %v174_v16 = vld [vmem:[%s6950_s28 + $0x20] sm:$0xff]  ;;  %v175_v17 = vld [vmem:[%s6950_s28 + $0x28] sm:$0xff] }
   0xb   :  { %v4918_v15 = vpack.c.bf16 %v173_v14, %v172_v12  ;;  %v4921_v18 = vpack.c.bf16 %v175_v17, %v174_v16  ;;  %v176_v19 = vld [vmem:[%s6950_s28 + $0x30] sm:$0xff]  ;;  %v177_v20 = vld [vmem:[%s6950_s28 + $0x38] sm:$0xff]  ;;  %v69_v26 = vld [vmem:[%s6951_s10] sm:$0x3]  ;;  %s5507_s10 = smov 64  }
   0xc   :  { %4916 = vmatpush3.bf16.msra.mxu0 %v4915_v13  ;;  %v4924_v21 = vpack.c.bf16 %v177_v20, %v176_v19  ;;  %v5663_v27 = vrot.slane %v69_v26, %v97_v24  ;;  %v5665_v28 = vrot.slane %v69_v26, %v78_v25  ;;  %v5670_v29 = vld [vmem:[%s6952_s22] ss:$0 sm:$0xff]  ;;  %v179_v38 = vld [vmem:[%s6950_s28 + $0x48] sm:$0xff]  ;;  %v180_v54 = vld [vmem:[%s6950_s28 + $0x50] sm:$0xff] }
   0xd   :  { %5281 = vset.pattern.permute.xlu0 %v5499_v3  ;;  %5283 = vset.pattern.permute.xlu1 %v5500_v4  ;;  %v5675_v30 = vld [vmem:[%s6953_s24] ss:$0 sm:$0xff]  ;;  %v181_v55 = vld [vmem:[%s6950_s28 + $0x58] sm:$0xff] }
   0xe   :  { %73 = vperm.xlu0 %5281, %v68_v1   ;;  %138 = vperm.xlu1 %5283, %v68_v1   ;;  %v5680_v31 = vld [vmem:[%s6954_s26] ss:$0 sm:$0xff]  ;;  %v4930_v58 = vpack.c.bf16 %v181_v55, %v180_v54  ;;  %v185_v16 = vld [vmem:[%s6950_s28 + $0x78] sm:$0xff] }
   0xf   :  { %4917 = vmatprep.subr.bf16.mxu0 %v5505_v9  ;;  %v178_v37 = vld [vmem:[%s6950_s28 + $0x40] sm:$0xff] }
  0x10   :  { %4919 = vmatpush3.bf16.msra.mxu0 %v4918_v15  ;;  %v4927_v42 = vpack.c.bf16 %v179_v38, %v178_v37  ;;  %v182_v0 = vld [vmem:[%s6950_s28 + $0x60] sm:$0xff]  ;;  %v184_v15 = vld [vmem:[%s6950_s28 + $0x70] sm:$0xff] }
  0x11   :  { %4920 = vmatprep.subr.bf16.mxu0 %v5505_v9  ;;  %v4936_v20 = vpack.c.bf16 %v185_v16, %v184_v15  ;;  %v3998_v15 = vld [vmem:[%s6950_s28 + $0xc8] sm:$0xff] }
  0x12   :  { %5284 = vset.pattern.permute.xlu1 %v5501_v5  ;;  %5285 = vset.pattern.permute.xlu0 %v5502_v6 }
  0x13   :  { %92 = vperm.xlu1 %5284, %v68_v1   ;;  %124 = vperm.xlu0 %5285, %v68_v1  }
  0x14   :  { %4922 = vmatpush3.bf16.msra.mxu0 %v4921_v18 }
  0x15   :  { %4923 = vmatprep.subr.bf16.mxu0 %v5505_v9 }
  0x17   :  { %5286 = vset.pattern.permute.xlu1 %v5503_v7  ;;  %5288 = vset.pattern.permute.xlu0 %v5500_v4 }
  0x18   :  { %102 = vperm.xlu1 %5286, %v68_v1   ;;  %4925 = vmatpush3.bf16.msra.mxu0 %v4924_v21 }
  0x19   :  { %4926 = vmatprep.subr.bf16.mxu0 %v5505_v9 }
  0x1c   :  { %5287 = vset.pattern.permute.xlu1 %v5504_v8  ;;  %4928 = vmatpush3.bf16.msra.mxu0 %v4927_v42 }
  0x1d   :  { %130 = vperm.xlu1 %5287, %v68_v1   ;;  %4929 = vmatprep.subr.bf16.mxu0 %v5505_v9  ;;  %v183_v1 = vld [vmem:[%s6950_s28 + $0x68] sm:$0xff] }
  0x1e   :  { %v4933_v8 = vpack.c.bf16 %v183_v1, %v182_v0  ;;  %v3990_v0 = vld [vmem:[%s6950_s28 + $0x88] sm:$0xff]  ;;  %v3991_v1 = vld [vmem:[%s6950_s28 + $0x90] sm:$0xff] }
  0x20   :  { %4931 = vmatpush3.bf16.msra.mxu0 %v4930_v58 }
  0x21   :  { %4932 = vmatprep.subr.bf16.mxu0 %v5505_v9 }
  0x24   :  { %4934 = vmatpush3.bf16.msra.mxu0 %v4933_v8  ;;  %v3994_v8 = vld [vmem:[%s6950_s28 + $0xa8] sm:$0xff] }
  0x25   :  { %4935 = vmatprep.subr.bf16.mxu0 %v5505_v9 }
  0x28   :  { %4937 = vmatpush3.bf16.msra.mxu0 %v4936_v20  ;;  %v4000_v20 = vld [vmem:[%s6950_s28 + $0xd8] sm:$0xff] }
  0x29   :  { %4962 = vmatprep.subr.bf16.mxu0 %v5505_v9 }
  0x88   :  { %v111_v32 = vpop.permute.xlu0 %110  ;;  %v117_v33 = vpop.permute.xlu1 %116 }
  0x89   :  { %v113_v35 = vmul.f32 %v111_v32, %v5663_v27  ;;  %v119_v36 = vmul.f32 %v117_v33, %v5665_v28  ;;  %v836_v40 = vmul.f32 %v5670_v29, %v111_v32  ;;  %v866_v41 = vmul.f32 %v5675_v30, %v117_v33 }
  0x8a   :  { %v838_v43 = vmul.f32 %v5670_v29, %v117_v33  ;;  %v864_v44 = vmul.f32 %v5675_v30, %v111_v32 }
  0x8b   :  { %v114_v45 = vadd.f32 %v5680_v31, %v113_v35  ;;  %v5706_v46 = vadd.f32 %v5685_v34, %v836_v40  ;;  %v5709_v47 = vadd.f32 %v5698_v39, %v866_v41 }
  0x8c   :  { %v5712_v48 = vadd.f32 %v5685_v34, %v838_v43  ;;  %v5715_v49 = vadd.f32 %v5698_v39, %v864_v44 }
  0x8d   :  { %v120_v50 = vadd.f32 %v119_v36, %v114_v45  ;;  %v5717_v51 = vpop.permute.xlu0 %73  ;;  %v5719_v52 = vpop.permute.xlu1 %138 }
  0x8e   :  { %v80_v56 = vmul.f32 %v5665_v28, %v5717_v51  ;;  %v141_v57 = vmul.f32 %v5719_v52, %v5663_v27  ;;  %v844_v60 = vmul.f32 %v5670_v29, %v5719_v52  ;;  %v852_v61 = vmul.f32 %v5675_v30, %v5717_v51 }
  0x8f   :  { %v121_v59 = vmax.f32 %v120_v50, 0.0 }
  0x90   :  { %v87_v62 = vadd.f32 %v5680_v31, %v80_v56  ;;  %v142_v63 = vadd.f32 %v5680_v31, %v141_v57  ;;  %v5749_v2 = vadd.f32 %v5685_v34, %v844_v60  ;;  %v5752_v3 = vadd.f32 %v5698_v39, %v852_v61 }
  0x91   :  { %122 = vst.msk [vmem:[#allocation3 + $0x4] sm:$0x3] %vm89_vm0, %v121_v59 }
  0x92   :  { %v88_v4 = vmax.f32 %v87_v62, 0.0  ;;  %v143_v5 = vmax.f32 %v142_v63, 0.0  ;;  %v93_v6 = vpop.permute.xlu1 %92  ;;  %v125_v7 = vpop.permute.xlu0 %124  ;;  %v3989_v63 = vld [vmem:[%s6950_s28 + $0x80] sm:$0xff] }
  0x93   :  { %v99_v10 = vmul.f32 %v5663_v27, %v93_v6  ;;  %v832_v11 = vmul.f32 %v5670_v29, %v93_v6  ;;  %v868_v12 = vmul.f32 %v5675_v30, %v125_v7  ;;  %v840_v13 = vmul.f32 %v5670_v29, %v125_v7 }
  0x94   :  { %90 = vst.msk [vmem:[#allocation3] sm:$0x3] %vm89_vm0, %v88_v4  ;;  %144 = vst.msk [vmem:[#allocation3 + $0x8] sm:$0x3] %vm89_vm0, %v143_v5  ;;  %v860_v14 = vmul.f32 %v5675_v30, %v93_v6  ;;  %v127_v26 = vmul.f32 %v125_v7, %v5663_v27  ;;  %v4939_v4 = vpack.c.bf16 %v3990_v0, %v3989_v63  ;;  %v3992_v5 = vld [vmem:[%s6950_s28 + $0x98] sm:$0xff]  ;;  %v3993_v7 = vld [vmem:[%s6950_s28 + $0xa0] sm:$0xff] }
  0x95   :  { %v5769_v17 = vadd.f32 %v5685_v34, %v832_v11  ;;  %v5772_v18 = vadd.f32 %v5698_v39, %v868_v12  ;;  %v100_v19 = vadd.f32 %v5680_v31, %v99_v10  ;;  %v5776_v21 = vadd.f32 %v5685_v34, %v840_v13  ;;  %v3995_v11 = vld [vmem:[%s6950_s28 + $0xb0] sm:$0xff]  ;;  %v3996_v12 = vld [vmem:[%s6950_s28 + $0xb8] sm:$0xff]  ;;  %v4011_v0 = vld [vmem:[%s6950_s28 + $0x120] sm:$0xff] }
  0x96   :  { %v5779_v24 = vadd.f32 %v5698_v39, %v860_v14  ;;  %v128_v41 = vadd.f32 %v5680_v31, %v127_v26  ;;  %4940 = vmatpush3.bf16.msra.mxu1 %v4939_v4  ;;  %v4942_v6 = vpack.c.bf16 %v3992_v5, %v3991_v1  ;;  %v4945_v10 = vpack.c.bf16 %v3994_v8, %v3993_v7  ;;  %v3997_v14 = vld [vmem:[%s6950_s28 + $0xc0] sm:$0xff]  ;;  %v4012_v1 = vld [vmem:[%s6950_s28 + $0x128] sm:$0xff]  ;;  %v4013_v5 = vld [vmem:[%s6950_s28 + $0x130] sm:$0xff] }
  0x97   :  { %v103_v25 = vpop.permute.xlu1 %102  ;;  %4941 = vmatprep.subr.bf16.mxu1 %v5505_v9  ;;  %v4948_v13 = vpack.c.bf16 %v3996_v12, %v3995_v11  ;;  %v4951_v16 = vpack.c.bf16 %v3998_v15, %v3997_v14  ;;  %v3988_v26 = vld [vmem:[%s6928_s4] ss:$0 sm:$0xff]  ;;  %v4969_v4 = vpack.c.bf16 %v4012_v1, %v4011_v0  ;;  %v4017_v12 = vld [vmem:[%s6950_s28 + $0x150] sm:$0xff]  ;;  %v4006_v15 = vld [vmem:[%s6928_s4 + $0x1] ss:$0 sm:$0xff] }
  0x98   :  { %v154_v32 = vld [vmem:[#allocation3 + $0x4] sm:$0x3]  ;;  %v105_v33 = vmul.f32 %v103_v25, %v5665_v28  ;;  %v834_v35 = vmul.f32 %v5670_v29, %v103_v25  ;;  %v862_v36 = vmul.f32 %v5675_v30, %v103_v25  ;;  %v4015_v8 = vld [vmem:[%s6950_s28 + $0x140] sm:$0xff]  ;;  %v4034_v0 = vld [vmem:[%s6950_s28 + $0x1c8] sm:$0xff] }
  0x99   :  { %157 = vrot.lane.b32.xlu1 %v154_v32, %s5507_s10  ;;  %v4001_v32 = vld [vmem:[%s6950_s28 + $0xe0] sm:$0xff] }
  0x9a   :  { %v106_v37 = vadd.f32 %v105_v33, %v100_v19  ;;  %v5792_v27 = vadd.f32 %v5685_v34, %v834_v35  ;;  %v5795_v38 = vadd.f32 %v5698_v39, %v862_v36  ;;  %4943 = vmatpush3.bf16.msra.mxu1 %v4942_v6  ;;  %v3999_v19 = vld [vmem:[%s6950_s28 + $0xd0] sm:$0xff]  ;;  %v4002_v33 = vld [vmem:[%s6950_s28 + $0xe8] sm:$0xff]  ;;  %v4014_v6 = vld [vmem:[%s6950_s28 + $0x138] sm:$0xff] }
  0x9b   :  { %v145_v40 = vld [vmem:[#allocation3] sm:$0x3]  ;;  %v162_v44 = vld [vmem:[#allocation3 + $0x8] sm:$0x3]  ;;  %4944 = vmatprep.subr.bf16.mxu1 %v5505_v9  ;;  %v4954_v25 = vpack.c.bf16 %v4000_v20, %v3999_v19  ;;  %v4957_v35 = vpack.c.bf16 %v4002_v33, %v4001_v32  ;;  %v4972_v7 = vpack.c.bf16 %v4014_v6, %v4013_v5  ;;  %v4020_v19 = vld [vmem:[%s6950_s28 + $0x168] sm:$0xff] }
  0x9c   :  { %148 = vrot.lane.b32.xlu0 %v145_v40, %s5507_s10  ;;  %v107_v42 = vmax.f32 %v106_v37, 0.0  ;;  %v131_v43 = vpop.permute.xlu1 %130  ;;  %v4021_v33 = vld [vmem:[%s6950_s28 + $0x170] sm:$0xff]  ;;  %v4036_v5 = vld [vmem:[%s6950_s28 + $0x1d8] sm:$0xff] }
  0x9d   :  { %v133_v45 = vmul.f32 %v131_v43, %v5665_v28  ;;  %v870_v50 = vmul.f32 %v5675_v30, %v131_v43  ;;  %v842_v54 = vmul.f32 %v5670_v29, %v131_v43 }
  0x9e   :  { %108 = vst.msk [vmem:[#allocation3 + $0x2] sm:$0x3] %vm89_vm0, %v107_v42  ;;  %4946 = vmatpush3.bf16.msra.mxu1 %v4945_v10  ;;  %v4004_v42 = vld [vmem:[%s6950_s28 + $0xf8] sm:$0xff]  ;;  %v4016_v10 = vld [vmem:[%s6950_s28 + $0x148] sm:$0xff] }
  0x9f   :  { %v134_v55 = vadd.f32 %v133_v45, %v128_v41  ;;  %v5804_v56 = vadd.f32 %v5698_v39, %v870_v50  ;;  %v5807_v57 = vadd.f32 %v5685_v34, %v842_v54  ;;  %4947 = vmatprep.subr.bf16.mxu1 %v5505_v9  ;;  %v4003_v41 = vld [vmem:[%s6950_s28 + $0xf0] sm:$0xff]  ;;  %v4975_v11 = vpack.c.bf16 %v4016_v10, %v4015_v8  ;;  %v4037_v8 = vld [vmem:[%s6950_s28 + $0x1e0] sm:$0xff]  ;;  %v4038_v10 = vld [vmem:[%s6950_s28 + $0x1e8] sm:$0xff] }
  0xa0   :  { %165 = vrot.lane.b32.xlu0 %v162_v44, %s5507_s10  ;;  %v4960_v44 = vpack.c.bf16 %v4004_v42, %v4003_v41 }
  0xa1   :  { %v135_v31 = vmax.f32 %v134_v55, 0.0 }
  0xa2   :  { %4949 = vmatpush3.bf16.msra.mxu1 %v4948_v13  ;;  %v4018_v13 = vld [vmem:[%s6950_s28 + $0x158] sm:$0xff] }
  0xa3   :  { %136 = vst.msk [vmem:[#allocation3 + $0x6] sm:$0x3] %vm89_vm0, %v135_v31  ;;  %4950 = vmatprep.subr.bf16.mxu1 %v5505_v9  ;;  %v4978_v14 = vpack.c.bf16 %v4018_v13, %v4017_v12  ;;  %v4039_v13 = vld [vmem:[%s6950_s28 + $0x1f0] sm:$0xff] }
  0xa5   :  { %v153_v58 = vld [vmem:[#allocation3 + $0x2] sm:$0x3] }
  0xa6   :  { %155 = vst.msk [vmem:[#allocation2 + $0x2] sm:$0x3] %vm89_vm0, %v153_v58  ;;  %4952 = vmatpush3.bf16.msra.mxu1 %v4951_v16  ;;  %v4019_v16 = vld [vmem:[%s6950_s28 + $0x160] sm:$0xff] }
  0xa7   :  { %4953 = vmatprep.subr.bf16.mxu1 %v5505_v9  ;;  %v4981_v20 = vpack.c.bf16 %v4020_v19, %v4019_v16 }
  0xaa   :  { %v161_v28 = vld [vmem:[#allocation3 + $0x6] sm:$0x3]  ;;  %4955 = vmatpush3.bf16.msra.mxu1 %v4954_v25 }
  0xab   :  { %163 = vst.msk [vmem:[#allocation2 + $0x4] sm:$0x3] %vm89_vm0, %v161_v28  ;;  %4956 = vmatprep.subr.bf16.mxu1 %v5505_v9  ;;  %v4007_v28 = vld [vmem:[%s6950_s28 + $0x100] sm:$0xff] }
  0xae   :  { %4958 = vmatpush3.bf16.msra.mxu1 %v4957_v35  ;;  %v4022_v35 = vld [vmem:[%s6950_s28 + $0x178] sm:$0xff] }
  0xaf   :  { %4959 = vmatprep.subr.bf16.mxu1 %v5505_v9 }
  0xb2   :  { %4961 = vmatpush3.bf16.msra.mxu1 %v4960_v44  ;;  %v4025_v44 = vld [vmem:[%s6950_s28 + $0x180] sm:$0xff] }
  0xb3   :  { %4986 = vmatprep.subr.bf16.mxu1 %v5505_v9 }
 0x10b   :  { %v158_v59 = vpop.permute.xlu1 %157 }
 0x10c   :  { %160 = vst.msk [vmem:[#allocation2 + $0x2] sm:$0x3] %vm151_vm2, %v158_v59  ;;  %v4008_v59 = vld [vmem:[%s6950_s28 + $0x108] sm:$0xff] }
 0x10e   :  { %v149_v60 = vpop.permute.xlu0 %148 }
 0x10f   :  { %152 = vst.msk [vmem:[#allocation2] sm:$0x3] %vm151_vm2, %v149_v60  ;;  %v4009_v60 = vld [vmem:[%s6950_s28 + $0x110] sm:$0xff] }
 0x112   :  { %v166_v61 = vpop.permute.xlu0 %165 }
 0x113   :  { %168 = vst.msk [vmem:[#allocation2 + $0x4] sm:$0x3] %vm151_vm2, %v166_v61  ;;  %v4963_v61 = vpack.c.bf16 %v4008_v59, %v4007_v28  ;;  %v4030_v28 = vld [vmem:[%s6950_s28 + $0x1a8] sm:$0xff] }
 0x11a   :  { %v169_v62 = vld [vmem:[#allocation2] sm:$0x3f] }
 0x11b   :  { %267 = vst.msk [vmem:[#allocation2] sm:$0x3] %vm89_vm0, %v5506_v53  ;;  %4431 = vmatmul.mubr.f32.vlgmr.msra.gmra.mrb[0].mxu0 %v169_v62  ;;  %v4010_v62 = vld [vmem:[%s6950_s28 + $0x118] sm:$0xff] }
 0x11c   :  { %4500 = vmatprep.mubr.msk.f32.mxu0 %vm5508_vm1, %v5506_v53  ;;  %4964 = vmatpush3.bf16.msra.mxu0 %v4963_v61  ;;  %v4966_v63 = vpack.c.bf16 %v4010_v62, %v4009_v60  ;;  %v4031_v60 = vld [vmem:[%s6950_s28 + $0x1b0] sm:$0xff]  ;;  %v4032_v61 = vld [vmem:[%s6950_s28 + $0x1b8] sm:$0xff] }
 0x11d   :  { %4965 = vmatprep.subr.bf16.mxu0 %v5505_v9  ;;  %v4996_v62 = vpack.c.bf16 %v4032_v61, %v4031_v60  ;;  %v4054_v60 = vld [vmem:[%s6950_s28 + $0x258] sm:$0xff] }
 0x120   :  { %4967 = vmatpush3.bf16.msra.mxu0 %v4966_v63  ;;  %v4033_v63 = vld [vmem:[%s6950_s28 + $0x1c0] sm:$0xff] }
 0x121   :  { %4968 = vmatprep.subr.bf16.mxu0 %v5505_v9  ;;  %v4999_v1 = vpack.c.bf16 %v4034_v0, %v4033_v63  ;;  %v4056_v63 = vld [vmem:[%s6950_s28 + $0x268] sm:$0xff]  ;;  %v4042_v0 = vld [vmem:[%s6928_s4 + $0x3] ss:$0 sm:$0xff] }
 0x124   :  { %4970 = vmatpush3.bf16.msra.mxu0 %v4969_v4  ;;  %v4035_v4 = vld [vmem:[%s6950_s28 + $0x1d0] sm:$0xff] }
 0x125   :  { %4971 = vmatprep.subr.bf16.mxu0 %v5505_v9  ;;  %v5002_v6 = vpack.c.bf16 %v4036_v5, %v4035_v4  ;;  %v4057_v5 = vld [vmem:[%s6950_s28 + $0x270] sm:$0xff] }
 0x128   :  { %4973 = vmatpush3.bf16.msra.mxu0 %v4972_v7  ;;  %v4024_v7 = vld [vmem:[%s6928_s4 + $0x2] ss:$0 sm:$0xff] }
 0x129   :  { %4974 = vmatprep.subr.bf16.mxu0 %v5505_v9 }
 0x12c   :  { %4976 = vmatpush3.bf16.msra.mxu0 %v4975_v11  ;;  %v5005_v11 = vpack.c.bf16 %v4038_v10, %v4037_v8 }
 0x12d   :  { %4977 = vmatprep.subr.bf16.mxu0 %v5505_v9 }
 0x130   :  { %4979 = vmatpush3.bf16.msra.mxu0 %v4978_v14  ;;  %v4040_v14 = vld [vmem:[%s6950_s28 + $0x1f8] sm:$0xff] }
 0x131   :  { %4980 = vmatprep.subr.bf16.mxu0 %v5505_v9  ;;  %v5008_v19 = vpack.c.bf16 %v4040_v14, %v4039_v13 }
 0x134   :  { %4982 = vmatpush3.bf16.msra.mxu0 %v4981_v20 }
 0x135   :  { %4983 = vmatprep.subr.bf16.mxu0 %v5505_v9 }
 0x1ee   :  { %v259_v36 = vpop.f32.mrb[0].mxu0 }
 0x1ef   :  { %v260_v37 = vadd.f32 %v3988_v26, %v259_v36  ;;  %v4432_v40 = vpop.f32.mrb[1].mxu0 }
 0x1f1   :  { %v263_v43 = vmax.f32 %v260_v37, 0.0  ;;  %v4984_v37 = vpack.c.bf16 %v4022_v35, %v4021_v33  ;;  %v4043_v35 = vld [vmem:[%s6950_s28 + $0x200] sm:$0xff] }
 0x1f3   :  { %265 = vst.msk [vmem:[#allocation3] sm:$0x3f] %vm264_vm3, %v263_v43  ;;  %4985 = vmatpush3.bf16.msra.mxu0 %v4984_v37  ;;  %v4045_v37 = vld [vmem:[%s6950_s28 + $0x210] sm:$0xff] }
 0x1f4   :  { %5010 = vmatprep.subr.bf16.mxu0 %v5505_v9 }
 0x1fa   :  { %v274_v45 = vld [vmem:[#allocation3 + $0x4] sm:$0x3]  ;;  %v266_v50 = vld [vmem:[#allocation3] sm:$0x3]  ;;  %v273_v54 = vld [vmem:[#allocation3 + $0x2] sm:$0x3] }
 0x1fb   :  { %277 = vrot.lane.b32.xlu0 %v274_v45, %s5507_s10  ;;  %269 = vrot.lane.b32.xlu1 %v266_v50, %s5507_s10  ;;  %275 = vst.msk [vmem:[#allocation2 + $0x2] sm:$0x3] %vm89_vm0, %v273_v54  ;;  %v4026_v45 = vld [vmem:[%s6950_s28 + $0x188] sm:$0xff]  ;;  %v4027_v50 = vld [vmem:[%s6950_s28 + $0x190] sm:$0xff] }
 0x1fc   :  { %v4987_v54 = vpack.c.bf16 %v4026_v45, %v4025_v44  ;;  %v4048_v44 = vld [vmem:[%s6950_s28 + $0x228] sm:$0xff] }
 0x26d   :  { %v278_v55 = vpop.permute.xlu0 %277  ;;  %v270_v31 = vpop.permute.xlu1 %269 }
 0x26e   :  { %280 = vst.msk [vmem:[#allocation2 + $0x2] sm:$0x3] %vm151_vm2, %v278_v55  ;;  %272 = vst.msk [vmem:[#allocation2] sm:$0x3] %vm151_vm2, %v270_v31  ;;  %v4028_v55 = vld [vmem:[%s6950_s28 + $0x198] sm:$0xff] }
 0x26f   :  { %v4990_v31 = vpack.c.bf16 %v4028_v55, %v4027_v50  ;;  %v4049_v50 = vld [vmem:[%s6950_s28 + $0x230] sm:$0xff] }
 0x275   :  { %v281_v58 = vld [vmem:[#allocation2] sm:$0xf] }
 0x276   :  { %381 = vst.msk [vmem:[#allocation2] sm:$0x3] %vm89_vm0, %v5506_v53  ;;  %4466 = vmatmul.mubr.f32.vlgmr.msra.gmra.mrb[0].mxu1 %v281_v58  ;;  %v4029_v58 = vld [vmem:[%s6950_s28 + $0x1a0] sm:$0xff] }
 0x277   :  { %4535 = vmatprep.mubr.msk.f32.mxu1 %vm5508_vm1, %v5506_v53  ;;  %4988 = vmatpush3.bf16.msra.mxu1 %v4987_v54  ;;  %v4993_v59 = vpack.c.bf16 %v4030_v28, %v4029_v58  ;;  %v4050_v54 = vld [vmem:[%s6950_s28 + $0x238] sm:$0xff]  ;;  %v4052_v58 = vld [vmem:[%s6950_s28 + $0x248] sm:$0xff] }
 0x278   :  { %4989 = vmatprep.subr.bf16.mxu1 %v5505_v9  ;;  %v5020_v55 = vpack.c.bf16 %v4050_v54, %v4049_v50  ;;  %v824_v54 = vmul.f32 %v5670_v29, %v5717_v51 }
 0x27b   :  { %4991 = vmatpush3.bf16.msra.mxu1 %v4990_v31  ;;  %v4051_v31 = vld [vmem:[%s6950_s28 + $0x240] sm:$0xff] }
 0x27c   :  { %4992 = vmatprep.subr.bf16.mxu1 %v5505_v9  ;;  %v5023_v28 = vpack.c.bf16 %v4052_v58, %v4051_v31 }
 0x27f   :  { %4994 = vmatpush3.bf16.msra.mxu1 %v4993_v59  ;;  %v4053_v59 = vld [vmem:[%s6950_s28 + $0x250] sm:$0xff] }
 0x280   :  { %4995 = vmatprep.subr.bf16.mxu1 %v5505_v9  ;;  %v5026_v61 = vpack.c.bf16 %v4054_v60, %v4053_v59  ;;  %v872_v59 = vmul.f32 %v5675_v30, %v5719_v52 }
 0x282   :  { %v873_v60 = vadd.f32 %v5698_v39, %v872_v59 }
 0x283   :  { %4997 = vmatpush3.bf16.msra.mxu1 %v4996_v62  ;;  %v4055_v62 = vld [vmem:[%s6950_s28 + $0x260] sm:$0xff] }
 0x284   :  { %4998 = vmatprep.subr.bf16.mxu1 %v5505_v9 }
 0x287   :  { %5000 = vmatpush3.bf16.msra.mxu1 %v4999_v1  ;;  %v5029_v1 = vpack.c.bf16 %v4056_v63, %v4055_v62 }
 0x288   :  { %5001 = vmatprep.subr.bf16.mxu1 %v5505_v9 }
 0x28b   :  { %5003 = vmatpush3.bf16.msra.mxu1 %v5002_v6  ;;  %v4058_v6 = vld [vmem:[%s6950_s28 + $0x278] sm:$0xff] }
 0x28c   :  { %5004 = vmatprep.subr.bf16.mxu1 %v5505_v9  ;;  %v5032_v10 = vpack.c.bf16 %v4058_v6, %v4057_v5 }
 0x28f   :  { %5006 = vmatpush3.bf16.msra.mxu1 %v5005_v11 }
 0x290   :  { %5007 = vmatprep.subr.bf16.mxu1 %v5505_v9 }
 0x293   :  { %5009 = vmatpush3.bf16.msra.mxu1 %v5008_v19 }
 0x294   :  { %5034 = vmatprep.subr.bf16.mxu1 %v5505_v9 }
 0x349   :  { %v373_v25 = vpop.f32.mrb[0].mxu1 }
 0x34a   :  { %v374_v26 = vadd.f32 %v4006_v15, %v373_v25  ;;  %v4467_v32 = vpop.f32.mrb[1].mxu1 }
 0x34c   :  { %v377_v36 = vmax.f32 %v374_v26, 0.0 }
 0x34e   :  { %379 = vst.msk [vmem:[#allocation3] sm:$0xf] %vm378_vm4, %v377_v36  ;;  %v4044_v36 = vld [vmem:[%s6950_s28 + $0x208] sm:$0xff] }
 0x355   :  { %v387_v40 = vld [vmem:[#allocation3 + $0x2] sm:$0x3]  ;;  %v380_v41 = vld [vmem:[#allocation3] sm:$0x3] }
 0x356   :  { %388 = vst.msk [vmem:[#allocation2 + $0x2] sm:$0x3] %vm89_vm0, %v387_v40  ;;  %383 = vrot.lane.b32.xlu1 %v380_v41, %s5507_s10  ;;  %v5011_v40 = vpack.c.bf16 %v4044_v36, %v4043_v35  ;;  %v4046_v41 = vld [vmem:[%s6950_s28 + $0x218] sm:$0xff]  ;;  %v814_v35 = vld [vmem:[%s6930_s11 + $0x8] sm:$0xff] }
 0x357   :  { %389 = vst.msk [vmem:[#allocation2 + $0x2] sm:$0x3] %vm151_vm2, %v5506_v53 }
 0x3c8   :  { %v384_v42 = vpop.permute.xlu1 %383 }
 0x3c9   :  { %386 = vst.msk [vmem:[#allocation2] sm:$0x3] %vm151_vm2, %v384_v42  ;;  %v5014_v42 = vpack.c.bf16 %v4046_v41, %v4045_v37  ;;  %v815_v37 = vld [vmem:[%s6930_s11 + $0x10] sm:$0xff] }
 0x3d0   :  { %v390_v43 = vld [vmem:[#allocation2] sm:$0xf] }
 0x3d1   :  { %489 = vst.msk [vmem:[#allocation2] sm:$0x3] %vm89_vm0, %v5506_v53  ;;  %4501 = vmatmul.mubr.f32.vlgmr.msra.gmra.mrb[2].mxu0 %v390_v43  ;;  %v4047_v43 = vld [vmem:[%s6950_s28 + $0x220] sm:$0xff] }
 0x3d2   :  { %4570 = vmatprep.mubr.msk.f32.mxu0 %vm5508_vm1, %v5506_v53  ;;  %5012 = vmatpush3.bf16.msra.mxu0 %v5011_v40  ;;  %v5017_v45 = vpack.c.bf16 %v4048_v44, %v4047_v43  ;;  %v816_v40 = vld [vmem:[%s6930_s11 + $0x18] sm:$0xff] }
 0x3d3   :  { %5013 = vmatprep.subr.bf16.mxu0 %v5505_v9  ;;  %v6129_v41 = vpack.c.bf16 %v816_v40, %v815_v37  ;;  %v720_v40 = vld [vmem:[%s6931_s5 + $0x40] sm:$0xff] }
 0x3d6   :  { %5015 = vmatpush3.bf16.msra.mxu0 %v5014_v42  ;;  %v4060_v42 = vld [vmem:[%s6928_s4 + $0x4] ss:$0 sm:$0xff]  ;;  %s5509_s4 = smov 32  }
 0x3d7   :  { %5016 = vmatprep.subr.bf16.mxu0 %v5505_v9 }
 0x3da   :  { %5018 = vmatpush3.bf16.msra.mxu0 %v5017_v45 }
 0x3db   :  { %5019 = vmatprep.subr.bf16.mxu0 %v5505_v9 }
 0x3de   :  { %5021 = vmatpush3.bf16.msra.mxu0 %v5020_v55  ;;  %v831_v55 = vadd.f32 %v5685_v34, %v824_v54  ;;  %v723_v54 = vld [vmem:[%s6931_s5 + $0x58] sm:$0xff] }
 0x3df   :  { %5022 = vmatprep.subr.bf16.mxu0 %v5505_v9 }
 0x3e2   :  { %5024 = vmatpush3.bf16.msra.mxu0 %v5023_v28 }
 0x3e3   :  { %5025 = vmatprep.subr.bf16.mxu0 %v5505_v9 }
 0x3e6   :  { %5027 = vmatpush3.bf16.msra.mxu0 %v5026_v61 }
 0x3e7   :  { %5028 = vmatprep.subr.bf16.mxu0 %v5505_v9 }
 0x3ea   :  { %5030 = vmatpush3.bf16.msra.mxu0 %v5029_v1 }
 0x3eb   :  { %5031 = vmatprep.subr.bf16.mxu0 %v5505_v9 }
 0x3ee   :  { %5033 = vmatpush3.bf16.msra.mxu0 %v5032_v10 }
 0x3ef   :  { %5058 = vmatprep.subr.bf16.mxu0 %v5505_v9 }
 0x4a4   :  { %v482_v12 = vpop.f32.mrb[2].mxu0 }
 0x4a5   :  { %v483_v15 = vadd.f32 %v4024_v7, %v482_v12  ;;  %v4502_v16 = vpop.f32.mrb[3].mxu0 }
 0x4a6   :  { %v808_v16 = vld [vmem:[%s6929_s8 + $0x8] sm:$0xff] }
 0x4a7   :  { %v486_v20 = vmax.f32 %v483_v15, 0.0  ;;  %v807_v15 = vld [vmem:[%s6929_s8] sm:$0xff] }
 0x4a8   :  { %v6097_v19 = vpack.c.bf16 %v808_v16, %v807_v15  ;;  %v715_v15 = vld [vmem:[%s6931_s5 + $0x18] sm:$0xff] }
 0x4a9   :  { %487 = vst.msk [vmem:[#allocation3] sm:$0xf] %vm378_vm4, %v486_v20  ;;  %v809_v20 = vld [vmem:[%s6929_s8 + $0x10] sm:$0xff] }
 0x4b0   :  { %v488_v25 = vld [vmem:[#allocation3] sm:$0x3]  ;;  %v495_v26 = vld [vmem:[#allocation3 + $0x2] sm:$0x3] }
 0x4b1   :  { %491 = vrot.lane.b32.xlu0 %v488_v25, %s5507_s10  ;;  %496 = vst.msk [vmem:[#allocation2 + $0x2] sm:$0x3] %vm89_vm0, %v495_v26  ;;  %v810_v25 = vld [vmem:[%s6929_s8 + $0x18] sm:$0xff] }
 0x4b2   :  { %497 = vst.msk [vmem:[#allocation2 + $0x2] sm:$0x3] %vm151_vm2, %v5506_v53 }
 0x523   :  { %v492_v32 = vpop.permute.xlu0 %491 }
 0x524   :  { %494 = vst.msk [vmem:[#allocation2] sm:$0x3] %vm151_vm2, %v492_v32  ;;  %v6106_v32 = vpack.c.bf16 %v810_v25, %v809_v20  ;;  %v716_v20 = vld [vmem:[%s6931_s5 + $0x20] sm:$0xff]  ;;  %v717_v25 = vld [vmem:[%s6931_s5 + $0x28] sm:$0xff] }
 0x52b   :  { %v498_v33 = vld [vmem:[#allocation2] sm:$0xf] }
 0x52c   :  { %4536 = vmatmul.mubr.f32.vlgmr.msra.gmra.mrb[2].mxu1 %v498_v33  ;;  %597 = vst.msk [vmem:[#allocation2] sm:$0x3] %vm89_vm0, %v5506_v53  ;;  %v813_v33 = vld [vmem:[%s6930_s11] sm:$0xff] }
 0x52d   :  { %4605 = vmatprep.mubr.msk.f32.mxu1 %vm5508_vm1, %v5506_v53  ;;  %v6118_v36 = vpack.c.bf16 %v814_v35, %v813_v33  ;;  %v718_v33 = vld [vmem:[%s6931_s5 + $0x30] sm:$0xff]  ;;  %v719_v35 = vld [vmem:[%s6931_s5 + $0x38] sm:$0xff] }
 0x52e   :  { %v5044_v37 = vpack.c.bf16 %v719_v35, %v718_v33 }
 0x5ff   :  { %v590_v4 = vpop.f32.mrb[2].mxu1 }
 0x600   :  { %v591_v7 = vadd.f32 %v4042_v0, %v590_v4  ;;  %v4537_v8 = vpop.f32.mrb[3].mxu1 }
 0x602   :  { %v594_v11 = vmax.f32 %v591_v7, 0.0 }
 0x604   :  { %595 = vst.msk [vmem:[#allocation3] sm:$0xf] %vm378_vm4, %v594_v11  ;;  %v712_v11 = vld [vmem:[%s6931_s5] sm:$0xff] }
 0x60b   :  { %v596_v12 = vld [vmem:[#allocation3] sm:$0x3]  ;;  %v603_v13 = vld [vmem:[#allocation3 + $0x2] sm:$0x3] }
 0x60c   :  { %599 = vrot.lane.b32.xlu1 %v596_v12, %s5507_s10  ;;  %604 = vst.msk [vmem:[#allocation2 + $0x2] sm:$0x3] %vm89_vm0, %v603_v13  ;;  %v713_v12 = vld [vmem:[%s6931_s5 + $0x8] sm:$0xff]  ;;  %v714_v13 = vld [vmem:[%s6931_s5 + $0x10] sm:$0xff] }
 0x60d   :  { %605 = vst.msk [vmem:[#allocation2 + $0x2] sm:$0x3] %vm151_vm2, %v5506_v53  ;;  %v5038_v16 = vpack.c.bf16 %v715_v15, %v714_v13 }
 0x67e   :  { %v600_v14 = vpop.permute.xlu1 %599 }
 0x67f   :  { %602 = vst.msk [vmem:[#allocation2] sm:$0x3] %vm151_vm2, %v600_v14  ;;  %v5035_v14 = vpack.c.bf16 %v713_v12, %v712_v11 }
 0x681   :  { %5036 = vmatpush3.bf16.msra.mxu1 %v5035_v14 }
 0x682   :  { %5037 = vmatprep.subr.bf16.mxu1 %v5505_v9 }
 0x685   :  { %5039 = vmatpush3.bf16.msra.mxu1 %v5038_v16 }
 0x686   :  { %v606_v26 = vld [vmem:[#allocation2] sm:$0xf]  ;;  %5040 = vmatprep.subr.bf16.mxu1 %v5505_v9 }
 0x687   :  { %4571 = vmatmul.mubr.f32.vlgmr.msra.gmra.mrb[4].mxu0 %v606_v26  ;;  %v5041_v26 = vpack.c.bf16 %v717_v25, %v716_v20 }
 0x688   :  { %5060 = vmatpush3.bf16.msra.mxu0 %v6097_v19  ;;  %4616 = vmatprep.mubr.msk.f32.mxu0 %vm5508_vm1, %v5506_v53 }
 0x689   :  { %5061 = vmatprep.subr.bf16.mxu0 %v5505_v9  ;;  %5042 = vmatpush3.bf16.msra.mxu1 %v5041_v26 }
 0x68a   :  { %5043 = vmatprep.subr.bf16.mxu1 %v5505_v9 }
 0x68c   :  { %5063 = vmatpush3.bf16.msra.mxu0 %v6106_v32 }
 0x68d   :  { %5064 = vmatprep.subr.bf16.mxu0 %v5505_v9  ;;  %5045 = vmatpush3.bf16.msra.mxu1 %v5044_v37 }
 0x68e   :  { %5046 = vmatprep.subr.bf16.mxu1 %v5505_v9 }
 0x68f   :  { %4617 = vmatmul.mubr.f32.vlgmr.msra.gmra.mrb[6].mxu0 %v5506_v53 }
 0x690   :  { %5066 = vmatpush3.bf16.msra.mxu0 %v6118_v36  ;;  %4627 = vmatprep.mubr.msk.f32.mxu0 %vm5508_vm1, %v5506_v53 }
 0x691   :  { %5067 = vmatprep.subr.bf16.mxu0 %v5505_v9 }
 0x694   :  { %5069 = vmatpush3.bf16.msra.mxu0 %v6129_v41 }
 0x695   :  { %5070 = vmatprep.subr.bf16.mxu0 %v5505_v9 }
 0x697   :  { %4628 = vmatmul.mubr.f32.vlgmr.msra.gmra.mrb[8].mxu0 %v5506_v53 }
 0x698   :  { %5072 = vmatpush3.bf16.msra.mxu0 %v6097_v19  ;;  %4638 = vmatprep.mubr.msk.f32.mxu0 %vm5508_vm1, %v5506_v53 }
 0x699   :  { %5073 = vmatprep.subr.bf16.mxu0 %v5505_v9 }
 0x69c   :  { %5075 = vmatpush3.bf16.msra.mxu0 %v6106_v32 }
 0x69d   :  { %5082 = vmatprep.subr.bf16.mxu0 %v5505_v9 }
 0x75a   :  { %v698_v43 = vpop.f32.mrb[4].mxu0 }
 0x75b   :  { %v699_v44 = vadd.f32 %v4060_v42, %v698_v43  ;;  %v4572_v45 = vpop.f32.mrb[5].mxu0  ;;  %v721_v42 = vld [vmem:[%s6931_s5 + $0x48] sm:$0xff] }
 0x75c   :  { %v5047_v43 = vpack.c.bf16 %v721_v42, %v720_v40 }
 0x75d   :  { %v702_v50 = vmax.f32 %v699_v44, 0.0 }
 0x75e   :  { %5048 = vmatpush3.bf16.msra.mxu1 %v5047_v43 }
 0x75f   :  { %703 = vst.msk [vmem:[#allocation3] sm:$0xf] %vm378_vm4, %v702_v50  ;;  %5049 = vmatprep.subr.bf16.mxu1 %v5505_v9  ;;  %v722_v50 = vld [vmem:[%s6931_s5 + $0x50] sm:$0xff] }
 0x762   :  { %v944_v31 = vpop.f32.mrb[6].mxu0 }
 0x763   :  { %v948_v58 = vadd.f32 %v944_v31, %v831_v55  ;;  %v4618_v28 = vpop.f32.mrb[7].mxu0  ;;  %v5050_v31 = vpack.c.bf16 %v723_v54, %v722_v50 }
 0x764   :  { %v725_v28 = vld [vmem:[%s6931_s5 + $0x68] sm:$0xff] }
 0x765   :  { %5289 = vtanh.f32 %v948_v58  ;;  %v4066_v34 = vmul.f32 -1.442695, %v948_v58  ;;  %5051 = vmatpush3.bf16.msra.mxu1 %v5050_v31  ;;  %v724_v58 = vld [vmem:[%s6931_s5 + $0x60] sm:$0xff] }
 0x766   :  { %5052 = vmatprep.subr.bf16.mxu1 %v5505_v9  ;;  %v5053_v59 = vpack.c.bf16 %v725_v28, %v724_v58 }
 0x769   :  { %5054 = vmatpush3.bf16.msra.mxu1 %v5053_v59 }
 0x76a   :  { %v1045_v61 = vpop.f32.mrb[8].mxu0  ;;  %5055 = vmatprep.subr.bf16.mxu1 %v5505_v9 }
 0x76b   :  { %v1049_v62 = vadd.f32 %v1045_v61, %v873_v60  ;;  %v4629_v63 = vpop.f32.mrb[9].mxu0 }
 0x76c   :  { %v727_v63 = vld [vmem:[%s6931_s5 + $0x78] sm:$0xff] }
 0x76d   :  { %5291 = vtanh.f32 %v1049_v62  ;;  %v4067_v51 = vmul.f32 -1.442695, %v1049_v62  ;;  %v726_v62 = vld [vmem:[%s6931_s5 + $0x70] sm:$0xff] }
 0x76e   :  { %5293 = vpow2.f32 %v4066_v34 }
 0x76f   :  { %v5290_v0 = vpop.eup %5289  ;;  %5295 = vpow2.f32 %v4067_v51 }
 0x770   :  { %958 = vrot.lane.b32.xlu1 %v5290_v0, %s5507_s10 }
 0x777   :  { %v5292_v29 = vpop.eup %5291 }
 0x778   :  { %1059 = vrot.lane.b32.xlu0 %v5292_v29, %s5507_s10  ;;  %v5294_v1 = vpop.eup %5293  ;;  %v5056_v29 = vpack.c.bf16 %v727_v63, %v726_v62 }
 0x779   :  { %v952_v4 = vadd.f32 1.0, %v5294_v1  ;;  %v5296_v30 = vpop.eup %5295  ;;  %v705_v1 = vld [vmem:[#allocation3 + $0x2] sm:$0x3] }
 0x77a   :  { %v1053_v52 = vadd.f32 1.0, %v5296_v30  ;;  %5057 = vmatpush3.bf16.msra.mxu1 %v5056_v29 }
 0x77b   :  { %5297 = vrcp.f32 %v952_v4  ;;  %5076 = vmatprep.subr.bf16.mxu1 %v5505_v9 }
 0x77c   :  { %5299 = vrcp.f32 %v1053_v52 }
 0x785   :  { %v6155_v39 = vpop.eup %5297 }
 0x786   :  { %v6159_v7 = vpop.eup %5299  ;;  %v956_v44 = vmul.f32 0.0, %v6155_v39 }
 0x787   :  { %v1057_v60 = vmul.f32 0.0, %v6159_v7 }
 0x7e2   :  { %v959_v5 = vpop.permute.xlu1 %958 }
 0x7e3   :  { %v961_v6 = vmul.f32 %v6155_v39, %v959_v5 }
 0x7e5   :  { %963 = vrot.lane.b32.xlu1 %v961_v6, %s5509_s4  ;;  %v704_v6 = vld [vmem:[#allocation3] sm:$0x3] }
 0x7ea   :  { %v1060_v8 = vpop.permute.xlu0 %1059 }
 0x7eb   :  { %v1062_v10 = vmul.f32 %v6159_v7, %v1060_v8 }
 0x7ed   :  { %1064 = vrot.lane.b32.xlu0 %v1062_v10, %s5509_s4 }
 0x857   :  { %v964_v45 = vpop.permute.xlu1 %963 }
 0x858   :  { %v6205_v55 = vadd.f32 %v964_v45, %v956_v44 }
 0x85a   :  { %5301 = vtanh.f32 %v6205_v55 }
 0x85f   :  { %v1065_v61 = vpop.permute.xlu0 %1064 }
 0x860   :  { %v6223_v0 = vadd.f32 %v1065_v61, %v1057_v60 }
 0x862   :  { %5303 = vtanh.f32 %v6223_v0 }
 0x864   :  { %v5302_v34 = vpop.eup %5301 }
 0x865   :  { %969 = vrot.lane.b32.xlu1 %v5302_v34, %s5507_s10 }
 0x86c   :  { %v5304_v51 = vpop.eup %5303 }
 0x86d   :  { %1070 = vrot.lane.b32.xlu0 %v5304_v51, %s5507_s10 }
 0x871   :  { %707 = vrot.lane.b32.xlu0 %v705_v1, %s5507_s10 }
 0x8d7   :  { %v970_v4 = vpop.permute.xlu1 %969 }
 0x8d8   :  { %v972_v30 = vmul.f32 %v6155_v39, %v970_v4 }
 0x8da   :  { %974 = vrot.lane.b32.xlu0 %v972_v30, %s5509_s4 }
 0x8df   :  { %v1071_v52 = vpop.permute.xlu0 %1070 }
 0x8e0   :  { %v6233_v5 = vmul.f32 %v6159_v7, %v1071_v52 }
 0x8e2   :  { %1182 = vrot.lane.b32.xlu1 %v6233_v5, %s5509_s4 }
 0x8e3   :  { %v708_v8 = vpop.permute.xlu0 %707 }
 0x8e4   :  { %v711_v10 = vsel %vm710_vm5, %v704_v6, %v708_v8 }
 0x8e5   :  { %4606 = vmatmul.mubr.f32.vlgmr.msra.gmra.mrb[4].mxu1 %v711_v10 }
 0x8e6   :  { %5078 = vmatpush3.bf16.msra.mxu1 %v6118_v36  ;;  %4649 = vmatprep.mubr.msk.f32.mxu1 %vm5508_vm1, %v5506_v53 }
 0x8e7   :  { %5079 = vmatprep.subr.bf16.mxu1 %v5505_v9 }
 0x8ea   :  { %5081 = vmatpush3.bf16.msra.mxu1 %v6129_v41 }
 0x8eb   :  { %5088 = vmatprep.subr.bf16.mxu1 %v5505_v9 }
 0x94c   :  { %v975_v39 = vpop.permute.xlu0 %974 }
 0x94d   :  { %978 = vst.msk [vmem:[#allocation4] sm:$0x3] %vm977_vm6, %v975_v39  ;;  %4639 = vmatmul.mubr.msk.f32.vlgmr.msra.gmra.mrb[10].mxu0 %vm874_vm7, %v975_v39 }
 0x94e   :  { %5084 = vmatpush3.bf16.msra.mxu0 %v6097_v19  ;;  %4660 = vmatprep.mubr.msk.f32.mxu0 %vm5508_vm1, %v5506_v53 }
 0x94f   :  { %5085 = vmatprep.subr.bf16.mxu0 %v5505_v9 }
 0x952   :  { %5087 = vmatpush3.bf16.msra.mxu0 %v6106_v32 }
 0x953   :  { %5094 = vmatprep.subr.bf16.mxu0 %v5505_v9 }
 0x954   :  { %v1183_v7 = vpop.permute.xlu1 %1182 }
 0x955   :  { %4650 = vmatmul.mubr.msk.f32.vlgmr.msra.gmra.mrb[6].mxu1 %vm874_vm7, %v1183_v7 }
 0x956   :  { %5090 = vmatpush3.bf16.msra.mxu1 %v6118_v36  ;;  %4671 = vmatprep.mubr.msk.f32.mxu1 %vm5508_vm1, %v5506_v53 }
 0x957   :  { %5091 = vmatprep.subr.bf16.mxu1 %v5505_v9 }
 0x95a   :  { %5093 = vmatpush3.bf16.msra.mxu1 %v6129_v41 }
 0x95b   :  { %5100 = vmatprep.subr.bf16.mxu1 %v5505_v9 }
 0x9b8   :  { %v6259_v11 = vpop.f32.mrb[4].mxu1 }
 0x9b9   :  { %v4607_v12 = vpop.f32.mrb[5].mxu1 }
 0xa20   :  { %v1148_v13 = vpop.f32.mrb[10].mxu0 }
 0xa21   :  { %v1152_v14 = vadd.f32 %v1148_v13, %v5769_v17  ;;  %v4640_v15 = vpop.f32.mrb[11].mxu0 }
 0xa23   :  { %5305 = vtanh.f32 %v1152_v14  ;;  %v4069_v35 = vmul.f32 -1.442695, %v1152_v14 }
 0xa28   :  { %v1252_v16 = vpop.f32.mrb[6].mxu1 }
 0xa29   :  { %v1256_v20 = vadd.f32 %v1252_v16, %v5804_v56  ;;  %v4651_v25 = vpop.f32.mrb[7].mxu1 }
 0xa2b   :  { %5307 = vtanh.f32 %v1256_v20  ;;  %v4071_v37 = vmul.f32 -1.442695, %v1256_v20 }
 0xa2c   :  { %5309 = vpow2.f32 %v4069_v35 }
 0xa2d   :  { %v5306_v26 = vpop.eup %5305  ;;  %5311 = vpow2.f32 %v4071_v37 }
 0xa2e   :  { %1162 = vrot.lane.b32.xlu0 %v5306_v26, %s5507_s10 }
 0xa35   :  { %v5308_v33 = vpop.eup %5307 }
 0xa36   :  { %1266 = vrot.lane.b32.xlu1 %v5308_v33, %s5507_s10  ;;  %v5310_v40 = vpop.eup %5309 }
 0xa37   :  { %v1156_v42 = vadd.f32 1.0, %v5310_v40  ;;  %v5312_v17 = vpop.eup %5311 }
 0xa38   :  { %v1260_v43 = vadd.f32 1.0, %v5312_v17 }
 0xa39   :  { %5313 = vrcp.f32 %v1156_v42 }
 0xa3a   :  { %5315 = vrcp.f32 %v1260_v43 }
 0xa43   :  { %v5314_v44 = vpop.eup %5313 }
 0xa44   :  { %v5316_v50 = vpop.eup %5315  ;;  %v1160_v58 = vmul.f32 %v5314_v44, %v6205_v55 }
 0xa45   :  { %v1264_v60 = vmul.f32 %v5316_v50, %v6223_v0 }
 0xaa0   :  { %v1163_v56 = vpop.permute.xlu0 %1162 }
 0xaa1   :  { %v1165_v45 = vmul.f32 %v5314_v44, %v1163_v56 }
 0xaa3   :  { %1167 = vrot.lane.b32.xlu0 %v1165_v45, %s5509_s4 }
 0xaa8   :  { %v1267_v54 = vpop.permute.xlu1 %1266 }
 0xaa9   :  { %v1269_v31 = vmul.f32 %v5316_v50, %v1267_v54 }
 0xaab   :  { %1271 = vrot.lane.b32.xlu1 %v1269_v31, %s5509_s4 }
 0xb15   :  { %v1168_v28 = vpop.permute.xlu0 %1167 }
 0xb16   :  { %v1170_v59 = vadd.f32 %v1168_v28, %v1160_v58 }
 0xb18   :  { %5317 = vtanh.f32 %v1170_v59 }
 0xb1d   :  { %v1272_v61 = vpop.permute.xlu1 %1271 }
 0xb1e   :  { %v1274_v62 = vadd.f32 %v1272_v61, %v1264_v60 }
 0xb20   :  { %5319 = vtanh.f32 %v1274_v62 }
 0xb22   :  { %v5318_v63 = vpop.eup %5317 }
 0xb23   :  { %1173 = vrot.lane.b32.xlu0 %v5318_v63, %s5507_s10 }
 0xb2a   :  { %v5320_v29 = vpop.eup %5319 }
 0xb2b   :  { %1277 = vrot.lane.b32.xlu1 %v5320_v29, %s5507_s10 }
 0xb95   :  { %v1174_v34 = vpop.permute.xlu0 %1173 }
 0xb96   :  { %v1176_v51 = vmul.f32 %v5314_v44, %v1174_v34 }
 0xb98   :  { %1178 = vrot.lane.b32.xlu0 %v1176_v51, %s5509_s4 }
 0xb9d   :  { %v1278_v1 = vpop.permute.xlu1 %1277 }
 0xb9e   :  { %v6272_v55 = vmul.f32 %v5316_v50, %v1278_v1 }
 0xba0   :  { %1388 = vrot.lane.b32.xlu1 %v6272_v55, %s5509_s4 }
 0xc0a   :  { %v1179_v0 = vpop.permute.xlu0 %1178 }
 0xc0b   :  { %1181 = vst.msk [vmem:[#allocation4 + $0x2] sm:$0x3] %vm977_vm6, %v1179_v0  ;;  %4661 = vmatmul.mubr.msk.f32.vlgmr.msra.gmra.mrb[12].mxu0 %vm874_vm7, %v1179_v0 }
 0xc0c   :  { %5096 = vmatpush3.bf16.msra.mxu0 %v6097_v19  ;;  %4682 = vmatprep.mubr.msk.f32.mxu0 %vm5508_vm1, %v5506_v53 }
 0xc0d   :  { %5097 = vmatprep.subr.bf16.mxu0 %v5505_v9 }
 0xc10   :  { %5099 = vmatpush3.bf16.msra.mxu0 %v6106_v32 }
 0xc11   :  { %5106 = vmatprep.subr.bf16.mxu0 %v5505_v9 }
 0xc12   :  { %v1389_v4 = vpop.permute.xlu1 %1388 }
 0xc13   :  { %4672 = vmatmul.mubr.msk.f32.vlgmr.msra.gmra.mrb[8].mxu1 %vm874_vm7, %v1389_v4 }
 0xc14   :  { %5102 = vmatpush3.bf16.msra.mxu1 %v6118_v36  ;;  %4693 = vmatprep.mubr.msk.f32.mxu1 %vm5508_vm1, %v5506_v53 }
 0xc15   :  { %5103 = vmatprep.subr.bf16.mxu1 %v5505_v9 }
 0xc18   :  { %5105 = vmatpush3.bf16.msra.mxu1 %v6129_v41 }
 0xc19   :  { %5112 = vmatprep.subr.bf16.mxu1 %v5505_v9 }
 0xcde   :  { %v1354_v30 = vpop.f32.mrb[12].mxu0 }
 0xcdf   :  { %v1358_v52 = vadd.f32 %v1354_v30, %v5792_v27  ;;  %v4662_v6 = vpop.f32.mrb[13].mxu0 }
 0xce1   :  { %5321 = vtanh.f32 %v1358_v52  ;;  %v4073_v13 = vmul.f32 -1.442695, %v1358_v52 }
 0xce6   :  { %v1458_v8 = vpop.f32.mrb[8].mxu1 }
 0xce7   :  { %v1462_v10 = vadd.f32 %v1458_v8, %v5772_v18  ;;  %v4673_v39 = vpop.f32.mrb[9].mxu1 }
 0xce9   :  { %5323 = vtanh.f32 %v1462_v10  ;;  %v4075_v14 = vmul.f32 -1.442695, %v1462_v10 }
 0xcea   :  { %5325 = vpow2.f32 %v4073_v13 }
 0xceb   :  { %v5322_v7 = vpop.eup %5321  ;;  %5327 = vpow2.f32 %v4075_v14 }
 0xcec   :  { %1368 = vrot.lane.b32.xlu0 %v5322_v7, %s5507_s10 }
 0xcf3   :  { %v5324_v12 = vpop.eup %5323 }
 0xcf4   :  { %1472 = vrot.lane.b32.xlu1 %v5324_v12, %s5507_s10  ;;  %v5326_v15 = vpop.eup %5325 }
 0xcf5   :  { %v1362_v16 = vadd.f32 1.0, %v5326_v15  ;;  %v5328_v27 = vpop.eup %5327 }
 0xcf6   :  { %v1466_v20 = vadd.f32 1.0, %v5328_v27 }
 0xcf7   :  { %5329 = vrcp.f32 %v1362_v16 }
 0xcf8   :  { %5331 = vrcp.f32 %v1466_v20 }
 0xd01   :  { %v5330_v25 = vpop.eup %5329 }
 0xd02   :  { %v5332_v33 = vpop.eup %5331  ;;  %v1366_v40 = vmul.f32 %v5330_v25, %v1170_v59 }
 0xd03   :  { %v1470_v43 = vmul.f32 %v5332_v33, %v1274_v62 }
 0xd5e   :  { %v1369_v18 = vpop.permute.xlu0 %1368 }
 0xd5f   :  { %v1371_v26 = vmul.f32 %v5330_v25, %v1369_v18 }
 0xd61   :  { %1373 = vrot.lane.b32.xlu0 %v1371_v26, %s5509_s4 }
 0xd66   :  { %v1473_v35 = vpop.permute.xlu1 %1472 }
 0xd67   :  { %v1475_v37 = vmul.f32 %v5332_v33, %v1473_v35 }
 0xd69   :  { %1477 = vrot.lane.b32.xlu1 %v1475_v37, %s5509_s4 }
 0xdd3   :  { %v1374_v42 = vpop.permute.xlu0 %1373 }
 0xdd4   :  { %v1376_v17 = vadd.f32 %v1374_v42, %v1366_v40 }
 0xdd6   :  { %5333 = vtanh.f32 %v1376_v17 }
 0xddb   :  { %v1478_v44 = vpop.permute.xlu1 %1477 }
 0xddc   :  { %v1480_v56 = vadd.f32 %v1478_v44, %v1470_v43 }
 0xdde   :  { %5335 = vtanh.f32 %v1480_v56 }
 0xde0   :  { %v5334_v45 = vpop.eup %5333 }
 0xde1   :  { %1379 = vrot.lane.b32.xlu0 %v5334_v45, %s5507_s10 }
 0xde8   :  { %v5336_v50 = vpop.eup %5335 }
 0xde9   :  { %1483 = vrot.lane.b32.xlu1 %v5336_v50, %s5507_s10 }
 0xe53   :  { %v1380_v54 = vpop.permute.xlu0 %1379 }
 0xe54   :  { %v1382_v31 = vmul.f32 %v5330_v25, %v1380_v54 }
 0xe56   :  { %1384 = vrot.lane.b32.xlu0 %v1382_v31, %s5509_s4 }
 0xe5b   :  { %v1484_v58 = vpop.permute.xlu1 %1483 }
 0xe5c   :  { %v6300_v28 = vmul.f32 %v5332_v33, %v1484_v58 }
 0xe5e   :  { %1594 = vrot.lane.b32.xlu1 %v6300_v28, %s5509_s4 }
 0xec8   :  { %v1385_v59 = vpop.permute.xlu0 %1384 }
 0xec9   :  { %1387 = vst.msk [vmem:[#allocation4 + $0x4] sm:$0x3] %vm977_vm6, %v1385_v59  ;;  %4683 = vmatmul.mubr.msk.f32.vlgmr.msra.gmra.mrb[14].mxu0 %vm874_vm7, %v1385_v59 }
 0xeca   :  { %5108 = vmatpush3.bf16.msra.mxu0 %v6097_v19  ;;  %4704 = vmatprep.mubr.msk.f32.mxu0 %vm5508_vm1, %v5506_v53 }
 0xecb   :  { %5109 = vmatprep.subr.bf16.mxu0 %v5505_v9 }
 0xece   :  { %5111 = vmatpush3.bf16.msra.mxu0 %v6106_v32 }
 0xecf   :  { %5118 = vmatprep.subr.bf16.mxu0 %v5505_v9 }
 0xed0   :  { %v1595_v60 = vpop.permute.xlu1 %1594 }
 0xed1   :  { %4694 = vmatmul.mubr.msk.f32.vlgmr.msra.gmra.mrb[10].mxu1 %vm874_vm7, %v1595_v60 }
 0xed2   :  { %5114 = vmatpush3.bf16.msra.mxu1 %v6118_v36  ;;  %4715 = vmatprep.mubr.msk.f32.mxu1 %vm5508_vm1, %v5506_v53 }
 0xed3   :  { %5115 = vmatprep.subr.bf16.mxu1 %v5505_v9 }
 0xed6   :  { %5117 = vmatpush3.bf16.msra.mxu1 %v6129_v41 }
 0xed7   :  { %5124 = vmatprep.subr.bf16.mxu1 %v5505_v9 }
 0xf9c   :  { %v1560_v61 = vpop.f32.mrb[14].mxu0 }
 0xf9d   :  { %v1564_v62 = vadd.f32 %v1560_v61, %v5706_v46  ;;  %v4684_v63 = vpop.f32.mrb[15].mxu0 }
 0xf9f   :  { %5337 = vtanh.f32 %v1564_v62  ;;  %v4077_v4 = vmul.f32 -1.442695, %v1564_v62 }
 0xfa4   :  { %v1664_v29 = vpop.f32.mrb[10].mxu1 }
 0xfa5   :  { %v1668_v34 = vadd.f32 %v1664_v29, %v5709_v47  ;;  %v4695_v51 = vpop.f32.mrb[11].mxu1 }
 0xfa7   :  { %5339 = vtanh.f32 %v1668_v34  ;;  %v4079_v30 = vmul.f32 -1.442695, %v1668_v34 }
 0xfa8   :  { %5341 = vpow2.f32 %v4077_v4 }
 0xfa9   :  { %v5338_v1 = vpop.eup %5337  ;;  %5343 = vpow2.f32 %v4079_v30 }
 0xfaa   :  { %1574 = vrot.lane.b32.xlu0 %v5338_v1, %s5507_s10 }
 0xfb1   :  { %v5340_v0 = vpop.eup %5339 }
 0xfb2   :  { %1678 = vrot.lane.b32.xlu1 %v5340_v0, %s5507_s10  ;;  %v5342_v52 = vpop.eup %5341 }
 0xfb3   :  { %v1568_v6 = vadd.f32 1.0, %v5342_v52  ;;  %v5344_v46 = vpop.eup %5343 }
 0xfb4   :  { %v1672_v8 = vadd.f32 1.0, %v5344_v46 }
 0xfb5   :  { %5345 = vrcp.f32 %v1568_v6 }
 0xfb6   :  { %5347 = vrcp.f32 %v1672_v8 }
 0xfbf   :  { %v5346_v10 = vpop.eup %5345 }
 0xfc0   :  { %v5348_v7 = vpop.eup %5347  ;;  %v1572_v14 = vmul.f32 %v5346_v10, %v1376_v17 }
 0xfc1   :  { %v1676_v27 = vmul.f32 %v5348_v7, %v1480_v56 }
0x101c   :  { %v1575_v47 = vpop.permute.xlu0 %1574 }
0x101d   :  { %v1577_v39 = vmul.f32 %v5346_v10, %v1575_v47 }
0x101f   :  { %1579 = vrot.lane.b32.xlu0 %v1577_v39, %s5509_s4 }
0x1024   :  { %v1679_v12 = vpop.permute.xlu1 %1678 }
0x1025   :  { %v1681_v13 = vmul.f32 %v5348_v7, %v1679_v12 }
0x1027   :  { %1683 = vrot.lane.b32.xlu1 %v1681_v13, %s5509_s4 }
0x1091   :  { %v1580_v15 = vpop.permute.xlu0 %1579 }
0x1092   :  { %v1582_v16 = vadd.f32 %v1580_v15, %v1572_v14 }
0x1094   :  { %5349 = vtanh.f32 %v1582_v16 }
0x1099   :  { %v1684_v20 = vpop.permute.xlu1 %1683 }
0x109a   :  { %v1686_v25 = vadd.f32 %v1684_v20, %v1676_v27 }
0x109c   :  { %5351 = vtanh.f32 %v1686_v25 }
0x109e   :  { %v5350_v18 = vpop.eup %5349 }
0x109f   :  { %1585 = vrot.lane.b32.xlu0 %v5350_v18, %s5507_s10 }
0x10a6   :  { %v5352_v26 = vpop.eup %5351 }
0x10a7   :  { %1689 = vrot.lane.b32.xlu1 %v5352_v26, %s5507_s10 }
0x1111   :  { %v1586_v33 = vpop.permute.xlu0 %1585 }
0x1112   :  { %v1588_v35 = vmul.f32 %v5346_v10, %v1586_v33 }
0x1114   :  { %1590 = vrot.lane.b32.xlu0 %v1588_v35, %s5509_s4 }
0x1119   :  { %v1690_v37 = vpop.permute.xlu1 %1689 }
0x111a   :  { %v6328_v40 = vmul.f32 %v5348_v7, %v1690_v37 }
0x111c   :  { %1800 = vrot.lane.b32.xlu1 %v6328_v40, %s5509_s4 }
0x1186   :  { %v1591_v42 = vpop.permute.xlu0 %1590 }
0x1187   :  { %1593 = vst.msk [vmem:[#allocation4 + $0x6] sm:$0x3] %vm977_vm6, %v1591_v42  ;;  %4705 = vmatmul.mubr.msk.f32.vlgmr.msra.gmra.mrb[16].mxu0 %vm874_vm7, %v1591_v42 }
0x1188   :  { %5120 = vmatpush3.bf16.msra.mxu0 %v6097_v19  ;;  %4726 = vmatprep.mubr.msk.f32.mxu0 %vm5508_vm1, %v5506_v53 }
0x1189   :  { %5121 = vmatprep.subr.bf16.mxu0 %v5505_v9 }
0x118c   :  { %5123 = vmatpush3.bf16.msra.mxu0 %v6106_v32 }
0x118d   :  { %5130 = vmatprep.subr.bf16.mxu0 %v5505_v9 }
0x118e   :  { %v1801_v17 = vpop.permute.xlu1 %1800 }
0x118f   :  { %4716 = vmatmul.mubr.msk.f32.vlgmr.msra.gmra.mrb[12].mxu1 %vm874_vm7, %v1801_v17 }
0x1190   :  { %5126 = vmatpush3.bf16.msra.mxu1 %v6118_v36  ;;  %4737 = vmatprep.mubr.msk.f32.mxu1 %vm5508_vm1, %v5506_v53 }
0x1191   :  { %5127 = vmatprep.subr.bf16.mxu1 %v5505_v9 }
0x1194   :  { %5129 = vmatpush3.bf16.msra.mxu1 %v6129_v41 }
0x1195   :  { %5136 = vmatprep.subr.bf16.mxu1 %v5505_v9 }
0x125a   :  { %v1766_v43 = vpop.f32.mrb[16].mxu0 }
0x125b   :  { %v1770_v44 = vadd.f32 %v1766_v43, %v5712_v48  ;;  %v4706_v56 = vpop.f32.mrb[17].mxu0 }
0x125d   :  { %5353 = vtanh.f32 %v1770_v44  ;;  %v4081_v59 = vmul.f32 -1.442695, %v1770_v44 }
0x1262   :  { %v1870_v45 = vpop.f32.mrb[12].mxu1 }
0x1263   :  { %v1874_v50 = vadd.f32 %v1870_v45, %v5715_v49  ;;  %v4717_v54 = vpop.f32.mrb[13].mxu1 }
0x1265   :  { %5355 = vtanh.f32 %v1874_v50  ;;  %v4083_v60 = vmul.f32 -1.442695, %v1874_v50 }
0x1266   :  { %5357 = vpow2.f32 %v4081_v59 }
0x1267   :  { %v5354_v31 = vpop.eup %5353  ;;  %5359 = vpow2.f32 %v4083_v60 }
0x1268   :  { %1780 = vrot.lane.b32.xlu0 %v5354_v31, %s5507_s10 }
0x126f   :  { %v5356_v58 = vpop.eup %5355 }
0x1270   :  { %1884 = vrot.lane.b32.xlu1 %v5356_v58, %s5507_s10  ;;  %v5358_v61 = vpop.eup %5357 }
0x1271   :  { %v1774_v62 = vadd.f32 1.0, %v5358_v61  ;;  %v5360_v48 = vpop.eup %5359 }
0x1272   :  { %v1878_v63 = vadd.f32 1.0, %v5360_v48 }
0x1273   :  { %5361 = vrcp.f32 %v1774_v62 }
0x1274   :  { %5363 = vrcp.f32 %v1878_v63 }
0x127d   :  { %v5362_v29 = vpop.eup %5361 }
0x127e   :  { %v5364_v51 = vpop.eup %5363  ;;  %v1778_v4 = vmul.f32 %v5362_v29, %v1582_v16 }
0x127f   :  { %v1882_v6 = vmul.f32 %v5364_v51, %v1686_v25 }
0x12da   :  { %v1781_v49 = vpop.permute.xlu0 %1780 }
0x12db   :  { %v1783_v34 = vmul.f32 %v5362_v29, %v1781_v49 }
0x12dd   :  { %1785 = vrot.lane.b32.xlu0 %v1783_v34, %s5509_s4 }
0x12e2   :  { %v1885_v1 = vpop.permute.xlu1 %1884 }
0x12e3   :  { %v1887_v0 = vmul.f32 %v5364_v51, %v1885_v1 }
0x12e5   :  { %1889 = vrot.lane.b32.xlu1 %v1887_v0, %s5509_s4 }
0x134f   :  { %v1786_v30 = vpop.permute.xlu0 %1785 }
0x1350   :  { %v1788_v52 = vadd.f32 %v1786_v30, %v1778_v4 }
0x1352   :  { %5365 = vtanh.f32 %v1788_v52 }
0x1357   :  { %v1890_v46 = vpop.permute.xlu1 %1889 }
0x1358   :  { %v1892_v8 = vadd.f32 %v1890_v46, %v1882_v6 }
0x135a   :  { %5367 = vtanh.f32 %v1892_v8 }
0x135c   :  { %v5366_v10 = vpop.eup %5365 }
0x135d   :  { %1791 = vrot.lane.b32.xlu0 %v5366_v10, %s5507_s10 }
0x1364   :  { %v5368_v47 = vpop.eup %5367 }
0x1365   :  { %1895 = vrot.lane.b32.xlu1 %v5368_v47, %s5507_s10 }
0x13cf   :  { %v1792_v39 = vpop.permute.xlu0 %1791 }
0x13d0   :  { %v1794_v7 = vmul.f32 %v5362_v29, %v1792_v39 }
0x13d2   :  { %1796 = vrot.lane.b32.xlu0 %v1794_v7, %s5509_s4 }
0x13d7   :  { %v1896_v12 = vpop.permute.xlu1 %1895 }
0x13d8   :  { %v6356_v13 = vmul.f32 %v5364_v51, %v1896_v12 }
0x13da   :  { %2006 = vrot.lane.b32.xlu1 %v6356_v13, %s5509_s4 }
0x1444   :  { %v6360_v14 = vpop.permute.xlu0 %1796 }
0x1445   :  { %4727 = vmatmul.mubr.msk.f32.vlgmr.msra.gmra.mrb[18].mxu0 %vm874_vm7, %v6360_v14 }
0x1446   :  { %5132 = vmatpush3.bf16.msra.mxu0 %v6097_v19  ;;  %4748 = vmatprep.mubr.msk.f32.mxu0 %vm5508_vm1, %v5506_v53 }
0x1447   :  { %5133 = vmatprep.subr.bf16.mxu0 %v5505_v9 }
0x144a   :  { %5135 = vmatpush3.bf16.msra.mxu0 %v6106_v32 }
0x144b   :  { %5142 = vmatprep.subr.bf16.mxu0 %v5505_v9 }
0x144c   :  { %v2007_v15 = vpop.permute.xlu1 %2006 }
0x144d   :  { %4738 = vmatmul.mubr.msk.f32.vlgmr.msra.gmra.mrb[14].mxu1 %vm874_vm7, %v2007_v15 }
0x144e   :  { %5138 = vmatpush3.bf16.msra.mxu1 %v6118_v36  ;;  %4759 = vmatprep.mubr.msk.f32.mxu1 %vm5508_vm1, %v5506_v53 }
0x144f   :  { %5139 = vmatprep.subr.bf16.mxu1 %v5505_v9 }
0x1452   :  { %5141 = vmatpush3.bf16.msra.mxu1 %v6129_v41 }
0x1453   :  { %5148 = vmatprep.subr.bf16.mxu1 %v5505_v9 }
0x1518   :  { %v1972_v16 = vpop.f32.mrb[18].mxu0 }
0x1519   :  { %v1976_v27 = vadd.f32 %v1972_v16, %v5776_v21  ;;  %v4728_v20 = vpop.f32.mrb[19].mxu0 }
0x151b   :  { %5369 = vtanh.f32 %v1976_v27  ;;  %v4085_v37 = vmul.f32 -1.442695, %v1976_v27 }
0x1520   :  { %v2076_v25 = vpop.f32.mrb[14].mxu1 }
0x1521   :  { %v2080_v18 = vadd.f32 %v2076_v25, %v5795_v38  ;;  %v4739_v26 = vpop.f32.mrb[15].mxu1 }
0x1523   :  { %5371 = vtanh.f32 %v2080_v18  ;;  %v4087_v42 = vmul.f32 -1.442695, %v2080_v18 }
0x1524   :  { %5373 = vpow2.f32 %v4085_v37 }
0x1525   :  { %v5370_v33 = vpop.eup %5369  ;;  %5375 = vpow2.f32 %v4087_v42 }
0x1526   :  { %1986 = vrot.lane.b32.xlu0 %v5370_v33, %s5507_s10 }
0x152d   :  { %v5372_v35 = vpop.eup %5371 }
0x152e   :  { %2090 = vrot.lane.b32.xlu1 %v5372_v35, %s5507_s10  ;;  %v5374_v17 = vpop.eup %5373 }
0x152f   :  { %v1980_v43 = vadd.f32 1.0, %v5374_v17  ;;  %v5376_v21 = vpop.eup %5375 }
0x1530   :  { %v2084_v44 = vadd.f32 1.0, %v5376_v21 }
0x1531   :  { %5377 = vrcp.f32 %v1980_v43 }
0x1532   :  { %5379 = vrcp.f32 %v2084_v44 }
0x153b   :  { %v5378_v56 = vpop.eup %5377 }
0x153c   :  { %v5380_v50 = vpop.eup %5379  ;;  %v1984_v58 = vmul.f32 %v5378_v56, %v1788_v52 }
0x153d   :  { %v2088_v61 = vmul.f32 %v5380_v50, %v1892_v8 }
0x1598   :  { %v1987_v38 = vpop.permute.xlu0 %1986 }
0x1599   :  { %v1989_v45 = vmul.f32 %v5378_v56, %v1987_v38 }
0x159b   :  { %1991 = vrot.lane.b32.xlu0 %v1989_v45, %s5509_s4 }
0x15a0   :  { %v2091_v54 = vpop.permute.xlu1 %2090 }
0x15a1   :  { %v2093_v31 = vmul.f32 %v5380_v50, %v2091_v54 }
0x15a3   :  { %2095 = vrot.lane.b32.xlu1 %v2093_v31, %s5509_s4 }
0x160d   :  { %v1992_v59 = vpop.permute.xlu0 %1991 }
0x160e   :  { %v1994_v60 = vadd.f32 %v1992_v59, %v1984_v58 }
0x1610   :  { %5381 = vtanh.f32 %v1994_v60 }
0x1615   :  { %v2096_v62 = vpop.permute.xlu1 %2095 }
0x1616   :  { %v2098_v48 = vadd.f32 %v2096_v62, %v2088_v61 }
0x1618   :  { %5383 = vtanh.f32 %v2098_v48 }
0x161a   :  { %v5382_v63 = vpop.eup %5381 }
0x161b   :  { %1997 = vrot.lane.b32.xlu0 %v5382_v63, %s5507_s10 }
0x1622   :  { %v5384_v29 = vpop.eup %5383 }
0x1623   :  { %2101 = vrot.lane.b32.xlu1 %v5384_v29, %s5507_s10 }
0x168d   :  { %v1998_v49 = vpop.permute.xlu0 %1997 }
0x168e   :  { %v2000_v34 = vmul.f32 %v5378_v56, %v1998_v49 }
0x1690   :  { %2002 = vrot.lane.b32.xlu0 %v2000_v34, %s5509_s4 }
0x1695   :  { %v2102_v51 = vpop.permute.xlu1 %2101 }
0x1696   :  { %v6386_v1 = vmul.f32 %v5380_v50, %v2102_v51 }
0x1698   :  { %2212 = vrot.lane.b32.xlu1 %v6386_v1, %s5509_s4 }
0x1702   :  { %v6390_v0 = vpop.permute.xlu0 %2002 }
0x1703   :  { %4749 = vmatmul.mubr.msk.f32.vlgmr.msra.gmra.mrb[20].mxu0 %vm874_vm7, %v6390_v0 }
0x1704   :  { %5144 = vmatpush3.bf16.msra.mxu0 %v6097_v19  ;;  %4770 = vmatprep.mubr.msk.f32.mxu0 %vm5508_vm1, %v5506_v53 }
0x1705   :  { %5145 = vmatprep.subr.bf16.mxu0 %v5505_v9 }
0x1708   :  { %5147 = vmatpush3.bf16.msra.mxu0 %v6106_v32 }
0x170a   :  { %v2213_v4 = vpop.permute.xlu1 %2212 }
0x170b   :  { %4760 = vmatmul.mubr.msk.f32.vlgmr.msra.gmra.mrb[16].mxu1 %vm874_vm7, %v2213_v4 }
0x170c   :  { %5150 = vmatpush3.bf16.msra.mxu1 %v6118_v36  ;;  %4781 = vmatprep.mubr.msk.f32.mxu1 %vm5508_vm1, %v5506_v53 }
0x170d   :  { %5151 = vmatprep.subr.bf16.mxu1 %v5505_v9 }
0x1710   :  { %5153 = vmatpush3.bf16.msra.mxu1 %v6129_v41 }
0x1711   :  { %5170 = vmatprep.subr.bf16.mxu1 %v5505_v9 }
0x17d6   :  { %v2178_v19 = vpop.f32.mrb[20].mxu0 }
0x17d7   :  { %v2182_v30 = vadd.f32 %v2178_v19, %v5807_v57  ;;  %v4750_v52 = vpop.f32.mrb[21].mxu0 }
0x17d9   :  { %5385 = vtanh.f32 %v2182_v30  ;;  %v4089_v10 = vmul.f32 -1.442695, %v2182_v30 }
0x17de   :  { %v2282_v32 = vpop.f32.mrb[16].mxu1 }
0x17df   :  { %v2286_v6 = vadd.f32 %v2282_v32, %v5779_v24  ;;  %v4761_v46 = vpop.f32.mrb[17].mxu1 }
0x17e1   :  { %5387 = vtanh.f32 %v2286_v6  ;;  %v4091_v41 = vmul.f32 -1.442695, %v2286_v6 }
0x17e2   :  { %5389 = vpow2.f32 %v4089_v10 }
0x17e3   :  { %v5386_v36 = vpop.eup %5385  ;;  %5391 = vpow2.f32 %v4091_v41 }
0x17e4   :  { %2192 = vrot.lane.b32.xlu0 %v5386_v36, %s5507_s10 }
0x17eb   :  { %v5388_v8 = vpop.eup %5387 }
0x17ec   :  { %2296 = vrot.lane.b32.xlu1 %v5388_v8, %s5507_s10  ;;  %v5390_v47 = vpop.eup %5389 }
0x17ed   :  { %v2186_v39 = vadd.f32 1.0, %v5390_v47  ;;  %v5392_v57 = vpop.eup %5391 }
0x17ee   :  { %v2290_v7 = vadd.f32 1.0, %v5392_v57  ;;  %v2529_v57 = vld [vmem:[%s6932_s13 + $0x28] sm:$0xff] }
0x17ef   :  { %5393 = vrcp.f32 %v2186_v39  ;;  %v2528_v39 = vld [vmem:[%s6932_s13 + $0x20] sm:$0xff] }
0x17f0   :  { %5395 = vrcp.f32 %v2290_v7  ;;  %v5162_v7 = vpack.c.bf16 %v2529_v57, %v2528_v39 }
0x17f9   :  { %v5394_v12 = vpop.eup %5393 }
0x17fa   :  { %v5396_v16 = vpop.eup %5395  ;;  %v2190_v25 = vmul.f32 %v5394_v12, %v1994_v60 }
0x17fb   :  { %v2294_v33 = vmul.f32 %v5396_v16, %v2098_v48 }
0x1856   :  { %v2193_v24 = vpop.permute.xlu0 %2192 }
0x1857   :  { %v2195_v15 = vmul.f32 %v5394_v12, %v2193_v24  ;;  %v2531_v24 = vld [vmem:[%s6932_s13 + $0x38] sm:$0xff] }
0x1859   :  { %2197 = vrot.lane.b32.xlu0 %v2195_v15, %s5509_s4  ;;  %v2620_v15 = vld [vmem:[%s6933_s14] sm:$0xff] }
0x185e   :  { %v2297_v27 = vpop.permute.xlu1 %2296 }
0x185f   :  { %v2299_v20 = vmul.f32 %v5396_v16, %v2297_v27 }
0x1861   :  { %2301 = vrot.lane.b32.xlu1 %v2299_v20, %s5509_s4 }
0x18cb   :  { %v2198_v18 = vpop.permute.xlu0 %2197 }
0x18cc   :  { %v2200_v26 = vadd.f32 %v2198_v18, %v2190_v25 }
0x18ce   :  { %5397 = vtanh.f32 %v2200_v26 }
0x18d3   :  { %v2302_v35 = vpop.permute.xlu1 %2301 }
0x18d4   :  { %v2304_v37 = vadd.f32 %v2302_v35, %v2294_v33  ;;  %v2623_v33 = vld [vmem:[%s6933_s14 + $0x18] sm:$0xff] }
0x18d6   :  { %5399 = vtanh.f32 %v2304_v37 }
0x18d8   :  { %v5398_v42 = vpop.eup %5397 }
0x18d9   :  { %2203 = vrot.lane.b32.xlu0 %v5398_v42, %s5507_s10 }
0x18e0   :  { %v5400_v17 = vpop.eup %5399 }
0x18e1   :  { %2307 = vrot.lane.b32.xlu1 %v5400_v17, %s5507_s10 }
0x194b   :  { %v2204_v43 = vpop.permute.xlu0 %2203 }
0x194c   :  { %v2206_v21 = vmul.f32 %v5394_v12, %v2204_v43  ;;  %v2530_v12 = vld [vmem:[%s6932_s13 + $0x30] sm:$0xff] }
0x194d   :  { %v5166_v27 = vpack.c.bf16 %v2531_v24, %v2530_v12 }
0x194e   :  { %2208 = vrot.lane.b32.xlu0 %v2206_v21, %s5509_s4 }
0x1953   :  { %v2308_v44 = vpop.permute.xlu1 %2307 }
0x1954   :  { %v2310_v56 = vmul.f32 %v5396_v16, %v2308_v44  ;;  %v2621_v16 = vld [vmem:[%s6933_s14 + $0x8] sm:$0xff] }
0x1955   :  { %v6478_v25 = vpack.c.bf16 %v2621_v16, %v2620_v15 }
0x1956   :  { %2418 = vrot.lane.b32.xlu1 %v2310_v56, %s5509_s4 }
0x19c0   :  { %v6416_v38 = vpop.permute.xlu0 %2208 }
0x19c1   :  { %4771 = vmatmul.mubr.msk.f32.vlgmr.msra.gmra.mrb[22].mxu0 %vm874_vm7, %v6416_v38 }
0x19c8   :  { %v2419_v45 = vpop.permute.xlu1 %2418 }
0x19c9   :  { %4782 = vmatmul.mubr.msk.f32.vlgmr.msra.gmra.mrb[18].mxu1 %vm874_vm7, %v2419_v45 }
0x19ca   :  { %4811 = vmatprep.mubr.msk.f32.mxu1 %vm5508_vm1, %v5506_v53  ;;  %5172 = vmatpush3.bf16.msra.mxu1 %v6478_v25 }
0x19cb   :  { %5173 = vmatprep.subr.bf16.mxu1 %v5505_v9 }
0x1a94   :  { %v2384_v50 = vpop.f32.mrb[22].mxu0 }
0x1a95   :  { %v2388_v54 = vadd.f32 %v2384_v50, %v5749_v2  ;;  %v4772_v31 = vpop.f32.mrb[23].mxu0 }
0x1a97   :  { %5401 = vtanh.f32 %v2388_v54  ;;  %v4093_v48 = vmul.f32 -1.442695, %v2388_v54 }
0x1a9c   :  { %v2488_v58 = vpop.f32.mrb[18].mxu1 }
0x1a9d   :  { %v2492_v59 = vadd.f32 %v2488_v58, %v5752_v3  ;;  %v4783_v60 = vpop.f32.mrb[19].mxu1 }
0x1a9f   :  { %5403 = vtanh.f32 %v2492_v59  ;;  %v4095_v63 = vmul.f32 -1.442695, %v2492_v59  ;;  %v4096_v59 = vld [vmem:[%s6934_s15] ss:$0 sm:$0xff] }
0x1aa0   :  { %5405 = vpow2.f32 %v4093_v48 }
0x1aa1   :  { %v5402_v61 = vpop.eup %5401  ;;  %5407 = vpow2.f32 %v4095_v63 }
0x1aa2   :  { %2398 = vrot.lane.b32.xlu0 %v5402_v61, %s5507_s10 }
0x1aa9   :  { %v5404_v62 = vpop.eup %5403 }
0x1aaa   :  { %2502 = vrot.lane.b32.xlu1 %v5404_v62, %s5507_s10  ;;  %v5406_v29 = vpop.eup %5405 }
0x1aab   :  { %v2392_v49 = vadd.f32 1.0, %v5406_v29  ;;  %v5408_v2 = vpop.eup %5407 }
0x1aac   :  { %v2496_v34 = vadd.f32 1.0, %v5408_v2 }
0x1aad   :  { %5409 = vrcp.f32 %v2392_v49 }
0x1aae   :  { %5411 = vrcp.f32 %v2496_v34 }
0x1ab7   :  { %v5410_v51 = vpop.eup %5409 }
0x1ab8   :  { %v6428_v19 = vpop.eup %5411  ;;  %v2396_v32 = vmul.f32 %v5410_v51, %v2200_v26  ;;  %v2622_v26 = vld [vmem:[%s6933_s14 + $0x10] sm:$0xff] }
0x1ab9   :  { %v2500_v36 = vmul.f32 %v6428_v19, %v2304_v37  ;;  %v6489_v37 = vpack.c.bf16 %v2623_v33, %v2622_v26 }
0x1abb   :  { %5175 = vmatpush3.bf16.msra.mxu1 %v6489_v37 }
0x1abc   :  { %5176 = vmatprep.subr.bf16.mxu1 %v5505_v9 }
0x1abe   :  { %4812 = vmatmul.mubr.f32.vlgmr.msra.gmra.mrb[20].mxu1 %v5506_v53 }
0x1abf   :  { %5178 = vmatpush3.bf16.msra.mxu1 %v6478_v25  ;;  %4822 = vmatprep.mubr.msk.f32.mxu1 %vm5508_vm1, %v5506_v53 }
0x1ac0   :  { %5179 = vmatprep.subr.bf16.mxu1 %v5505_v9 }
0x1ac3   :  { %5181 = vmatpush3.bf16.msra.mxu1 %v6489_v37 }
0x1ac4   :  { %5188 = vmatprep.subr.bf16.mxu1 %v5505_v9 }
0x1b14   :  { %v2399_v3 = vpop.permute.xlu0 %2398 }
0x1b15   :  { %v2401_v4 = vmul.f32 %v5410_v51, %v2399_v3 }
0x1b17   :  { %2403 = vrot.lane.b32.xlu0 %v2401_v4, %s5509_s4 }
0x1b1c   :  { %v2503_v30 = vpop.permute.xlu1 %2502 }
0x1b1d   :  { %v2505_v52 = vmul.f32 %v6428_v19, %v2503_v30 }
0x1b1f   :  { %2507 = vrot.lane.b32.xlu1 %v2505_v52, %s5509_s4 }
0x1b89   :  { %v2404_v6 = vpop.permute.xlu0 %2403 }
0x1b8a   :  { %v2406_v46 = vadd.f32 %v2404_v6, %v2396_v32 }
0x1b8c   :  { %5413 = vtanh.f32 %v2406_v46 }
0x1b91   :  { %v2508_v8 = vpop.permute.xlu1 %2507 }
0x1b92   :  { %v2510_v10 = vadd.f32 %v2508_v8, %v2500_v36 }
0x1b94   :  { %5415 = vtanh.f32 %v2510_v10 }
0x1b96   :  { %v5414_v41 = vpop.eup %5413 }
0x1b97   :  { %2409 = vrot.lane.b32.xlu0 %v5414_v41, %s5507_s10 }
0x1b9b   :  { %1282 = vrot.lane.b32.xlu0 %v6272_v55, %s5507_s10  ;;  %v2524_v55 = vld [vmem:[%s6932_s13] sm:$0xff] }
0x1b9e   :  { %v5416_v47 = vpop.eup %5415 }
0x1b9f   :  { %2513 = vrot.lane.b32.xlu1 %v5416_v47, %s5507_s10  ;;  %1694 = vrot.lane.b32.xlu0 %v6328_v40, %s5507_s10  ;;  %v2525_v40 = vld [vmem:[%s6932_s13 + $0x8] sm:$0xff] }
0x1ba3   :  { %1075 = vrot.lane.b32.xlu1 %v6233_v5, %s5507_s10  ;;  %2106 = vrot.lane.b32.xlu0 %v6386_v1, %s5507_s10  ;;  %v5154_v5 = vpack.c.bf16 %v2525_v40, %v2524_v55  ;;  %v2526_v1 = vld [vmem:[%s6932_s13 + $0x10] sm:$0xff] }
0x1ba5   :  { %5155 = vmatprep.subr.bf16.mxu0 %v5154_v5 }
0x1ba6   :  { %5157 = vmatpush3.bf16.msra.mxu0 %v5154_v5 }
0x1ba7   :  { %1488 = vrot.lane.b32.xlu1 %v6300_v28, %s5507_s10  ;;  %v2527_v28 = vld [vmem:[%s6932_s13 + $0x18] sm:$0xff] }
0x1bab   :  { %1900 = vrot.lane.b32.xlu1 %v6356_v13, %s5507_s10  ;;  %v5158_v13 = vpack.c.bf16 %v2527_v28, %v2526_v1 }
0x1bad   :  { %5159 = vmatprep.subr.bf16.mxu0 %v5158_v13 }
0x1bae   :  { %5161 = vmatpush3.bf16.msra.mxu0 %v5158_v13 }
0x1baf   :  { %2312 = vrot.lane.b32.xlu1 %v2310_v56, %s5507_s10  ;;  %5163 = vmatprep.subr.bf16.mxu0 %v5162_v7 }
0x1bb2   :  { %5165 = vmatpush3.bf16.msra.mxu0 %v5162_v7 }
0x1bb3   :  { %5167 = vmatprep.subr.bf16.mxu0 %v5166_v27 }
0x1bb6   :  { %5169 = vmatpush3.bf16.msra.mxu0 %v5166_v27 }
0x1bb7   :  { %5182 = vmatprep.subr.bf16.mxu0 %v5505_v9 }
0x1c09   :  { %v2410_v20 = vpop.permute.xlu0 %2409 }
0x1c0a   :  { %v2412_v18 = vmul.f32 %v5410_v51, %v2410_v20 }
0x1c0c   :  { %2414 = vrot.lane.b32.xlu1 %v2412_v18, %s5509_s4 }
0x1c0d   :  { %v1283_v35 = vpop.permute.xlu0 %1282 }
0x1c0e   :  { %1285 = vst.msk [vmem:[#allocation4 + $0xc] sm:$0x3] %vm1078_vm8, %v1283_v35 }
0x1c0f   :  { %2211 = vst.msk [vmem:[#allocation4 + $0xc] sm:$0x3] %vm977_vm6, %v6416_v38 }
0x1c11   :  { %v2514_v42 = vpop.permute.xlu1 %2513  ;;  %v1695_v17 = vpop.permute.xlu0 %1694 }
0x1c12   :  { %v2516_v43 = vmul.f32 %v6428_v19, %v2514_v42  ;;  %1697 = vst.msk [vmem:[#allocation4 + $0x8] sm:$0x3] %vm1078_vm8, %v1695_v17 }
0x1c13   :  { %1799 = vst.msk [vmem:[#allocation4 + $0x8] sm:$0x3] %vm977_vm6, %v6360_v14 }
0x1c14   :  { %2518 = vrot.lane.b32.xlu0 %v2516_v43, %s5507_s10 }
0x1c15   :  { %v1076_v21 = vpop.permute.xlu1 %1075  ;;  %v2107_v44 = vpop.permute.xlu0 %2106 }
0x1c16   :  { %1079 = vst.msk [vmem:[#allocation4 + $0xe] sm:$0x3] %vm1078_vm8, %v1076_v21  ;;  %2109 = vst.msk [vmem:[#allocation4 + $0x4] sm:$0x3] %vm1078_vm8, %v2107_v44 }
0x1c19   :  { %v1489_v14 = vpop.permute.xlu1 %1488 }
0x1c1a   :  { %1491 = vst.msk [vmem:[#allocation4 + $0xa] sm:$0x3] %vm1078_vm8, %v1489_v14 }
0x1c1b   :  { %2005 = vst.msk [vmem:[#allocation4 + $0xa] sm:$0x3] %vm977_vm6, %v6390_v0  ;;  %v2697_v0 = vpop.f32.mrb[20].mxu1 }
0x1c1c   :  { %v4813_v58 = vpop.f32.mrb[21].mxu1 }
0x1c1d   :  { %v1901_v56 = vpop.permute.xlu1 %1900 }
0x1c1e   :  { %1903 = vst.msk [vmem:[#allocation4 + $0x6] sm:$0x3] %vm1078_vm8, %v1901_v56 }
0x1c21   :  { %v2313_v38 = vpop.permute.xlu1 %2312 }
0x1c22   :  { %2315 = vst.msk [vmem:[#allocation4 + $0x2] sm:$0x3] %vm1078_vm8, %v2313_v38 }
0x1c7e   :  { %v2415_v45 = vpop.permute.xlu1 %2414 }
0x1c7f   :  { %2417 = vst.msk [vmem:[#allocation4 + $0xe] sm:$0x3] %vm977_vm6, %v2415_v45 }
0x1c86   :  { %v2519_v50 = vpop.permute.xlu0 %2518  ;;  %v2523_v31 = vld [vmem:[#allocation4 + $0x8] sm:$0xff] }
0x1c87   :  { %2521 = vst.msk [vmem:[#allocation4] sm:$0x3] %vm1078_vm8, %v2519_v50 }
0x1c8e   :  { %v2522_v54 = vld [vmem:[#allocation4] sm:$0xff] }
0x1c8f   :  { %4800 = vmatprep.mubr.msk.f32.mxu0 %vm710_vm5, %v2522_v54 }
0x1c90   :  { %4801 = vmatmul.mubr.msk.f32.vlgmr.msra.gmra.mrb[24].mxu0 %vm710_vm5, %v2523_v31 }
0x1c91   :  { %5184 = vmatpush3.bf16.msra.mxu0 %v6478_v25  ;;  %4833 = vmatprep.mubr.msk.f32.mxu0 %vm5508_vm1, %v5506_v53 }
0x1c92   :  { %5185 = vmatprep.subr.bf16.mxu0 %v5505_v9 }
0x1c95   :  { %5187 = vmatpush3.bf16.msra.mxu0 %v6489_v37 }
0x1c96   :  { %5194 = vmatprep.subr.bf16.mxu0 %v5505_v9 }
0x1d63   :  { %v4802_v60 = vpop.f32.mrb[24].mxu0 }
0x1d64   :  { %v6529_v61 = vadd.f32 %v4802_v60, %v4096_v59  ;;  %v2611_v62 = vpop.f32.mrb[25].mxu0 }
0x1d65   :  { %v6531_v48 = vadd.f32 %v4096_v59, %v2611_v62 }
0x1d67   :  { %v2701_v63 = vadd.f32 %v2697_v0, %v6531_v48 }
0x1d69   :  { %5417 = vtanh.f32 %v2701_v63  ;;  %v4100_v49 = vmul.f32 -1.442695, %v2701_v63 }
0x1d6b   :  { %5419 = vpow2.f32 %v4100_v49 }
0x1d73   :  { %v5418_v29 = vpop.eup %5417 }
0x1d74   :  { %2711 = vrot.lane.b32.xlu0 %v5418_v29, %s5507_s10 }
0x1d75   :  { %v5420_v2 = vpop.eup %5419 }
0x1d76   :  { %v2705_v34 = vadd.f32 1.0, %v5420_v2 }
0x1d78   :  { %5421 = vrcp.f32 %v2705_v34 }
0x1d82   :  { %v5422_v51 = vpop.eup %5421 }
0x1d83   :  { %v2709_v19 = vmul.f32 0.0, %v5422_v51 }
0x1de6   :  { %v2712_v3 = vpop.permute.xlu0 %2711 }
0x1de7   :  { %v2714_v4 = vmul.f32 %v5422_v51, %v2712_v3 }
0x1de9   :  { %2716 = vrot.lane.b32.xlu1 %v2714_v4, %s5509_s4 }
0x1e5b   :  { %v2717_v30 = vpop.permute.xlu1 %2716 }
0x1e5c   :  { %v2719_v52 = vadd.f32 %v2717_v30, %v2709_v19 }
0x1e5e   :  { %5423 = vtanh.f32 %v2719_v52  ;;  %v2866_v57 = vrot.slane %v2719_v52, 6 }
0x1e68   :  { %v5424_v32 = vpop.eup %5423 }
0x1e69   :  { %2722 = vrot.lane.b32.xlu0 %v5424_v32, %s5507_s10 }
0x1edb   :  { %v2723_v6 = vpop.permute.xlu0 %2722 }
0x1edc   :  { %v6537_v46 = vmul.f32 %v5422_v51, %v2723_v6 }
0x1ede   :  { %2727 = vrot.lane.b32.xlu1 %v6537_v46, %s5509_s4 }
0x1f50   :  { %v6541_v36 = vpop.permute.xlu1 %2727 }
0x1f51   :  { %4823 = vmatmul.mubr.msk.f32.vlgmr.msra.gmra.mrb[22].mxu1 %vm874_vm7, %v6541_v36 }
0x1f52   :  { %5190 = vmatpush3.bf16.msra.mxu1 %v6478_v25  ;;  %4844 = vmatprep.mubr.msk.f32.mxu1 %vm5508_vm1, %v5506_v53 }
0x1f53   :  { %5191 = vmatprep.subr.bf16.mxu1 %v5505_v9 }
0x1f56   :  { %5193 = vmatpush3.bf16.msra.mxu1 %v6489_v37 }
0x1f57   :  { %5200 = vmatprep.subr.bf16.mxu1 %v5505_v9 }
0x2024   :  { %v2850_v8 = vpop.f32.mrb[22].mxu1 }
0x2025   :  { %v2855_v10 = vrot.slane %v2850_v8, 6  ;;  %v4824_v41 = vpop.f32.mrb[23].mxu1 }
0x2027   :  { %v2857_v47 = vadd.f32 %v2855_v10, %v6531_v48 }
0x2029   :  { %5425 = vtanh.f32 %v2857_v47  ;;  %v4104_v40 = vmul.f32 -1.442695, %v2857_v47 }
0x202b   :  { %5427 = vpow2.f32 %v4104_v40 }
0x2033   :  { %v5426_v55 = vpop.eup %5425 }
0x2034   :  { %2870 = vrot.lane.b32.xlu0 %v5426_v55, %s5507_s10 }
0x2035   :  { %v5428_v5 = vpop.eup %5427 }
0x2036   :  { %v2861_v1 = vadd.f32 1.0, %v5428_v5 }
0x2038   :  { %5429 = vrcp.f32 %v2861_v1 }
0x2042   :  { %v5430_v28 = vpop.eup %5429 }
0x2043   :  { %v2868_v7 = vmul.f32 %v5430_v28, %v2866_v57 }
0x20a6   :  { %v2871_v13 = vpop.permute.xlu0 %2870 }
0x20a7   :  { %v2873_v39 = vmul.f32 %v5430_v28, %v2871_v13 }
0x20a9   :  { %2875 = vrot.lane.b32.xlu1 %v2873_v39, %s5509_s4 }
0x211b   :  { %v2876_v12 = vpop.permute.xlu1 %2875 }
0x211c   :  { %v2878_v24 = vadd.f32 %v2876_v12, %v2868_v7 }
0x211e   :  { %5431 = vtanh.f32 %v2878_v24  ;;  %v3010_v45 = vrot.slane %v2878_v24, 6 }
0x2128   :  { %v5432_v15 = vpop.eup %5431 }
0x2129   :  { %2881 = vrot.lane.b32.xlu0 %v5432_v15, %s5507_s10 }
0x219b   :  { %v2882_v16 = vpop.permute.xlu0 %2881 }
0x219c   :  { %v6555_v27 = vmul.f32 %v5430_v28, %v2882_v16 }
0x219e   :  { %v2923_v20 = vrot.slane %v6555_v27, 2 }
0x21a0   :  { %2924 = vrot.lane.b32.xlu1 %v2923_v20, %s5509_s4 }
0x2212   :  { %v2925_v18 = vpop.permute.xlu1 %2924 }
0x2213   :  { %4834 = vmatmul.mubr.msk.f32.vlgmr.msra.gmra.mrb[26].mxu0 %vm874_vm7, %v2925_v18 }
0x2214   :  { %5196 = vmatpush3.bf16.msra.mxu0 %v6478_v25  ;;  %4855 = vmatprep.mubr.msk.f32.mxu0 %vm5508_vm1, %v5506_v53 }
0x2215   :  { %5197 = vmatprep.subr.bf16.mxu0 %v5505_v9 }
0x2218   :  { %5199 = vmatpush3.bf16.msra.mxu0 %v6489_v37 }
0x2219   :  { %5206 = vmatprep.subr.bf16.mxu0 %v5505_v9 }
0x22e6   :  { %v2994_v26 = vpop.f32.mrb[26].mxu0 }
0x22e7   :  { %v2999_v33 = vrot.slane %v2994_v26, 4  ;;  %v4835_v35 = vpop.f32.mrb[27].mxu0 }
0x22e9   :  { %v3001_v42 = vadd.f32 %v2999_v33, %v6531_v48 }
0x22eb   :  { %5433 = vtanh.f32 %v3001_v42  ;;  %v4106_v43 = vmul.f32 -1.442695, %v3001_v42 }
0x22ed   :  { %5435 = vpow2.f32 %v4106_v43 }
0x22f5   :  { %v5434_v17 = vpop.eup %5433 }
0x22f6   :  { %3014 = vrot.lane.b32.xlu0 %v5434_v17, %s5507_s10 }
0x22f7   :  { %v5436_v21 = vpop.eup %5435 }
0x22f8   :  { %v3005_v44 = vadd.f32 1.0, %v5436_v21 }
0x22fa   :  { %5437 = vrcp.f32 %v3005_v44 }
0x2304   :  { %v5438_v14 = vpop.eup %5437 }
0x2305   :  { %v3012_v50 = vmul.f32 %v5438_v14, %v3010_v45 }
0x2368   :  { %v3015_v56 = vpop.permute.xlu0 %3014 }
0x2369   :  { %v3017_v38 = vmul.f32 %v5438_v14, %v3015_v56 }
0x236b   :  { %3019 = vrot.lane.b32.xlu1 %v3017_v38, %s5509_s4 }
0x23dd   :  { %v3020_v54 = vpop.permute.xlu1 %3019 }
0x23de   :  { %v3022_v31 = vadd.f32 %v3020_v54, %v3012_v50 }
0x23e0   :  { %5439 = vtanh.f32 %v3022_v31  ;;  %v3155_v32 = vrot.slane %v3022_v31, 6 }
0x23ea   :  { %v5440_v0 = vpop.eup %5439 }
0x23eb   :  { %3025 = vrot.lane.b32.xlu0 %v5440_v0, %s5507_s10 }
0x245d   :  { %v3026_v58 = vpop.permute.xlu0 %3025 }
0x245e   :  { %v6570_v59 = vmul.f32 %v5438_v14, %v3026_v58 }
0x2460   :  { %v3068_v60 = vrot.slane %v6570_v59, 4 }
0x2462   :  { %3069 = vrot.lane.b32.xlu1 %v3068_v60, %s5509_s4 }
0x24d4   :  { %v3070_v62 = vpop.permute.xlu1 %3069 }
0x24d5   :  { %4845 = vmatmul.mubr.msk.f32.vlgmr.msra.gmra.mrb[24].mxu1 %vm874_vm7, %v3070_v62 }
0x24d6   :  { %5202 = vmatpush3.bf16.msra.mxu1 %v6478_v25  ;;  %4866 = vmatprep.mubr.msk.f32.mxu1 %vm5508_vm1, %v5506_v53 }
0x24d7   :  { %5203 = vmatprep.subr.bf16.mxu1 %v5505_v9 }
0x24da   :  { %5205 = vmatpush3.bf16.msra.mxu1 %v6489_v37 }
0x24db   :  { %5212 = vmatprep.subr.bf16.mxu1 %v5505_v9 }
0x25a8   :  { %v3139_v63 = vpop.f32.mrb[24].mxu1 }
0x25a9   :  { %v3144_v29 = vrot.slane %v3139_v63, 2  ;;  %v4846_v49 = vpop.f32.mrb[25].mxu1 }
0x25ab   :  { %v3146_v2 = vadd.f32 %v3144_v29, %v6531_v48 }
0x25ad   :  { %5441 = vtanh.f32 %v3146_v2  ;;  %v4108_v51 = vmul.f32 -1.442695, %v3146_v2  ;;  %v3809_v2 = vld [vmem:[%s6935_s19] sm:$0xff] }
0x25af   :  { %5443 = vpow2.f32 %v4108_v51 }
0x25b7   :  { %v5442_v34 = vpop.eup %5441 }
0x25b8   :  { %3159 = vrot.lane.b32.xlu0 %v5442_v34, %s5507_s10  ;;  %v3810_v34 = vld [vmem:[%s6935_s19 + $0x8] sm:$0xff] }
0x25b9   :  { %v5444_v3 = vpop.eup %5443  ;;  %v5219_v51 = vpack.c.bf16 %v3810_v34, %v3809_v2 }
0x25ba   :  { %v3150_v4 = vadd.f32 1.0, %v5444_v3  ;;  %v3811_v3 = vld [vmem:[%s6935_s19 + $0x10] sm:$0xff] }
0x25bc   :  { %5445 = vrcp.f32 %v3150_v4  ;;  %v3812_v4 = vld [vmem:[%s6935_s19 + $0x18] sm:$0xff] }
0x25c6   :  { %v5446_v19 = vpop.eup %5445 }
0x25c7   :  { %v3157_v6 = vmul.f32 %v5446_v19, %v3155_v32  ;;  %v3814_v32 = vld [vmem:[%s6935_s19 + $0x28] sm:$0xff] }
0x262a   :  { %v3160_v30 = vpop.permute.xlu0 %3159 }
0x262b   :  { %v3162_v52 = vmul.f32 %v5446_v19, %v3160_v30  ;;  %v5222_v30 = vpack.c.bf16 %v3812_v4, %v3811_v3 }
0x262d   :  { %3164 = vrot.lane.b32.xlu1 %v3162_v52, %s5509_s4  ;;  %v3813_v52 = vld [vmem:[%s6935_s19 + $0x20] sm:$0xff] }
0x269f   :  { %v3165_v8 = vpop.permute.xlu1 %3164 }
0x26a0   :  { %v3167_v10 = vadd.f32 %v3165_v8, %v3157_v6  ;;  %v5225_v6 = vpack.c.bf16 %v3814_v32, %v3813_v52  ;;  %v3815_v8 = vld [vmem:[%s6935_s19 + $0x30] sm:$0xff] }
0x26a2   :  { %5447 = vtanh.f32 %v3167_v10  ;;  %v3296_v16 = vrot.slane %v3167_v10, 6  ;;  %v3816_v10 = vld [vmem:[%s6935_s19 + $0x38] sm:$0xff] }
0x26ac   :  { %v5448_v48 = vpop.eup %5447 }
0x26ad   :  { %3170 = vrot.lane.b32.xlu0 %v5448_v48, %s5507_s10  ;;  %v5228_v48 = vpack.c.bf16 %v3816_v10, %v3815_v8 }
0x271f   :  { %v3171_v41 = vpop.permute.xlu0 %3170 }
0x2720   :  { %v6585_v47 = vmul.f32 %v5446_v19, %v3171_v41  ;;  %v3817_v41 = vld [vmem:[%s6935_s19 + $0x40] sm:$0xff] }
0x2722   :  { %v3212_v55 = vrot.slane %v6585_v47, 6 }
0x2724   :  { %3213 = vrot.lane.b32.xlu1 %v3212_v55, %s5509_s4  ;;  %v3818_v55 = vld [vmem:[%s6935_s19 + $0x48] sm:$0xff] }
0x2796   :  { %v3214_v40 = vpop.permute.xlu1 %3213 }
0x2797   :  { %4856 = vmatmul.mubr.msk.f32.vlgmr.msra.gmra.mrb[28].mxu0 %vm874_vm7, %v3214_v40  ;;  %v4061_v40 = vld [vmem:[%s6936_s6] ss:$0 sm:$0xff]  ;;  %s5510_s6 = smov 96  }
0x2798   :  { %5208 = vmatpush3.bf16.msra.mxu0 %v6478_v25  ;;  %4877 = vmatprep.mubr.msk.f32.mxu0 %vm5508_vm1, %v5506_v53 }
0x2799   :  { %5209 = vmatprep.subr.bf16.mxu0 %v5505_v9 }
0x279c   :  { %5211 = vmatpush3.bf16.msra.mxu0 %v6489_v37 }
0x279d   :  { %5218 = vmatprep.subr.bf16.mxu0 %v5505_v9 }
0x286a   :  { %v3283_v5 = vpop.f32.mrb[28].mxu0 }
0x286b   :  { %v3287_v1 = vadd.f32 %v3283_v5, %v6529_v61  ;;  %v4857_v28 = vpop.f32.mrb[29].mxu0  ;;  %v5231_v5 = vpack.c.bf16 %v3818_v55, %v3817_v41  ;;  %v2730_v55 = vsel %vm977_vm6, %v6541_v36, 0.0 }
0x286d   :  { %5449 = vtanh.f32 %v3287_v1  ;;  %v4110_v39 = vmul.f32 -1.442695, %v3287_v1  ;;  %v802_v1 = vadd.f32 %v4061_v40, %v6259_v11 }
0x286f   :  { %5451 = vpow2.f32 %v4110_v39  ;;  %v805_v28 = vmax.f32 %v802_v1, 0.0 }
0x2877   :  { %v5450_v13 = vpop.eup %5449 }
0x2878   :  { %3300 = vrot.lane.b32.xlu0 %v5450_v13, %s5507_s10 }
0x2879   :  { %v5452_v57 = vpop.eup %5451 }
0x287a   :  { %v3291_v7 = vadd.f32 1.0, %v5452_v57 }
0x287c   :  { %5453 = vrcp.f32 %v3291_v7 }
0x2886   :  { %v5454_v12 = vpop.eup %5453 }
0x2887   :  { %v3298_v20 = vmul.f32 %v5454_v12, %v3296_v16 }
0x28ea   :  { %v3301_v24 = vpop.permute.xlu0 %3300 }
0x28eb   :  { %v3303_v15 = vmul.f32 %v5454_v12, %v3301_v24 }
0x28ed   :  { %3305 = vrot.lane.b32.xlu1 %v3303_v15, %s5509_s4 }
0x295f   :  { %v3306_v18 = vpop.permute.xlu1 %3305 }
0x2960   :  { %v3308_v26 = vadd.f32 %v3306_v18, %v3298_v20 }
0x2962   :  { %5455 = vtanh.f32 %v3308_v26 }
0x296c   :  { %v5456_v33 = vpop.eup %5455 }
0x296d   :  { %3311 = vrot.lane.b32.xlu0 %v5456_v33, %s5507_s10 }
0x29df   :  { %v3312_v35 = vpop.permute.xlu0 %3311 }
0x29e0   :  { %v6600_v42 = vmul.f32 %v5454_v12, %v3312_v35 }
0x29e2   :  { %3316 = vrot.lane.b32.xlu1 %v6600_v42, %s5509_s4 }
0x2a54   :  { %v6604_v17 = vpop.permute.xlu1 %3316 }
0x2a55   :  { %4867 = vmatmul.mubr.msk.f32.vlgmr.msra.gmra.mrb[26].mxu1 %vm874_vm7, %v6604_v17 }
0x2a56   :  { %5214 = vmatpush3.bf16.msra.mxu1 %v6478_v25  ;;  %4888 = vmatprep.mubr.msk.f32.mxu1 %vm5508_vm1, %v5506_v53 }
0x2a57   :  { %5215 = vmatprep.subr.bf16.mxu1 %v5505_v9 }
0x2a5a   :  { %5217 = vmatpush3.bf16.msra.mxu1 %v6489_v37  ;;  %v3435_v37 = vrot.slane %v3308_v26, 6 }
0x2b28   :  { %v3419_v43 = vpop.f32.mrb[26].mxu1 }
0x2b29   :  { %v3424_v21 = vrot.slane %v3419_v43, 6  ;;  %v4868_v44 = vpop.f32.mrb[27].mxu1 }
0x2b2b   :  { %v3426_v14 = vadd.f32 %v3424_v21, %v6529_v61 }
0x2b2d   :  { %5457 = vtanh.f32 %v3426_v14  ;;  %v4112_v38 = vmul.f32 -1.442695, %v3426_v14 }
0x2b2f   :  { %5459 = vpow2.f32 %v4112_v38 }
0x2b37   :  { %v5458_v56 = vpop.eup %5457 }
0x2b38   :  { %3439 = vrot.lane.b32.xlu0 %v5458_v56, %s5507_s10 }
0x2b39   :  { %v5460_v45 = vpop.eup %5459 }
0x2b3a   :  { %v3430_v25 = vadd.f32 1.0, %v5460_v45 }
0x2b3c   :  { %5461 = vrcp.f32 %v3430_v25 }
0x2b46   :  { %v5462_v50 = vpop.eup %5461 }
0x2b47   :  { %v3437_v0 = vmul.f32 %v5462_v50, %v3435_v37 }
0x2baa   :  { %v3440_v54 = vpop.permute.xlu0 %3439 }
0x2bab   :  { %v3442_v31 = vmul.f32 %v5462_v50, %v3440_v54 }
0x2bad   :  { %3444 = vrot.lane.b32.xlu1 %v3442_v31, %s5509_s4 }
0x2c1f   :  { %v3445_v58 = vpop.permute.xlu1 %3444 }
0x2c20   :  { %v3447_v60 = vadd.f32 %v3445_v58, %v3437_v0 }
0x2c22   :  { %5463 = vtanh.f32 %v3447_v60  ;;  %v3578_v33 = vrot.slane %v3447_v60, 6 }
0x2c2c   :  { %v5464_v62 = vpop.eup %5463 }
0x2c2d   :  { %3450 = vrot.lane.b32.xlu0 %v5464_v62, %s5507_s10 }
0x2c9f   :  { %v3451_v63 = vpop.permute.xlu0 %3450 }
0x2ca0   :  { %v6617_v29 = vmul.f32 %v5462_v50, %v3451_v63 }
0x2ca2   :  { %v3491_v49 = vrot.slane %v6617_v29, 2 }
0x2ca4   :  { %3492 = vrot.lane.b32.xlu1 %v3491_v49, %s5509_s4 }
0x2d16   :  { %v3493_v19 = vpop.permute.xlu1 %3492 }
0x2d17   :  { %4878 = vmatmul.mubr.msk.f32.vlgmr.msra.gmra.mrb[30].mxu0 %vm874_vm7, %v3493_v19 }
0x2d18   :  { %5220 = vmatpush3.bf16.msra.mxu0 %v5219_v51  ;;  %4911 = vmatprep.mubr.msk.f32.mxu0 %vm5508_vm1, %v5506_v53 }
0x2d19   :  { %5221 = vmatprep.subr.bf16.mxu0 %v5505_v9 }
0x2d1c   :  { %5223 = vmatpush3.bf16.msra.mxu0 %v5222_v30 }
0x2d1d   :  { %5224 = vmatprep.subr.bf16.mxu0 %v5505_v9 }
0x2d20   :  { %5226 = vmatpush3.bf16.msra.mxu0 %v5225_v6 }
0x2d21   :  { %5227 = vmatprep.subr.bf16.mxu0 %v5505_v9 }
0x2d24   :  { %5229 = vmatpush3.bf16.msra.mxu0 %v5228_v48 }
0x2d25   :  { %5230 = vmatprep.subr.bf16.mxu0 %v5505_v9 }
0x2d28   :  { %5232 = vmatpush3.bf16.msra.mxu0 %v5231_v5 }
0x2d2b   :  { %4912 = vmatmul.mubr.msk.f32.vlgmr.msra.gmra.mrb[32].mxu0 %vm3819_vm9, %v805_v28  ;;  %v3319_v28 = vsel %vm977_vm6, %v6604_v17, 0.0 }
0x2dea   :  { %v3562_v13 = vpop.f32.mrb[30].mxu0 }
0x2deb   :  { %v3567_v39 = vrot.slane %v3562_v13, 4  ;;  %v4879_v57 = vpop.f32.mrb[31].mxu0  ;;  %v2627_v13 = vand.u32 127, %v76_v22 }
0x2ded   :  { %v3569_v7 = vadd.f32 %v3567_v39, %v6529_v61  ;;  %vm2628_vm13 = vcmp.lt.s32.totalorder %v2627_v13, 30 }
0x2dee   :  { %v4099_v39 = vsel %vm2628_vm13, 1.0, %v5506_v53 }
0x2def   :  { %5465 = vtanh.f32 %v3569_v7  ;;  %v4114_v16 = vmul.f32 -1.442695, %v3569_v7 }
0x2df1   :  { %5467 = vpow2.f32 %v4114_v16 }
0x2df9   :  { %v5466_v12 = vpop.eup %5465 }
0x2dfa   :  { %3582 = vrot.lane.b32.xlu0 %v5466_v12, %s5507_s10 }
0x2dfb   :  { %v5468_v11 = vpop.eup %5467 }
0x2dfc   :  { %v3573_v9 = vadd.f32 1.0, %v5468_v11 }
0x2dfe   :  { %v6664_v24 = vpop.f32.mrb[32].mxu0  ;;  %5469 = vrcp.f32 %v3573_v9 }
0x2dff   :  { %v4913_v15 = vpop.f32.mrb[33].mxu0 }
0x2e08   :  { %v5470_v20 = vpop.eup %5469 }
0x2e09   :  { %v3580_v35 = vmul.f32 %v5470_v20, %v3578_v33 }
0x2e6c   :  { %v3583_v18 = vpop.permute.xlu0 %3582 }
0x2e6d   :  { %v3585_v26 = vmul.f32 %v5470_v20, %v3583_v18 }
0x2e6f   :  { %3587 = vrot.lane.b32.xlu1 %v3585_v26, %s5509_s4 }
0x2ee1   :  { %v3588_v43 = vpop.permute.xlu1 %3587 }
0x2ee2   :  { %v3590_v21 = vadd.f32 %v3588_v43, %v3580_v35 }
0x2ee4   :  { %5471 = vtanh.f32 %v3590_v21  ;;  %v3721_v34 = vrot.slane %v3590_v21, 6 }
0x2eee   :  { %v5472_v44 = vpop.eup %5471 }
0x2eef   :  { %3593 = vrot.lane.b32.xlu0 %v5472_v44, %s5507_s10 }
0x2f61   :  { %v3594_v14 = vpop.permute.xlu0 %3593 }
0x2f62   :  { %v6668_v56 = vmul.f32 %v5470_v20, %v3594_v14 }
0x2f64   :  { %v3634_v38 = vrot.slane %v6668_v56, 4 }
0x2f66   :  { %3635 = vrot.lane.b32.xlu1 %v3634_v38, %s5509_s4 }
0x2fd8   :  { %v3636_v45 = vpop.permute.xlu1 %3635 }
0x2fd9   :  { %4889 = vmatmul.mubr.msk.f32.vlgmr.msra.gmra.mrb[28].mxu1 %vm874_vm7, %v3636_v45 }
0x30ac   :  { %v3705_v25 = vpop.f32.mrb[28].mxu1 }
0x30ad   :  { %v3710_v50 = vrot.slane %v3705_v25, 2  ;;  %v4890_v54 = vpop.f32.mrb[29].mxu1 }
0x30af   :  { %v3712_v31 = vadd.f32 %v3710_v50, %v6529_v61 }
0x30b1   :  { %5473 = vtanh.f32 %v3712_v31  ;;  %v4116_v0 = vmul.f32 -1.442695, %v3712_v31 }
0x30b3   :  { %5475 = vpow2.f32 %v4116_v0 }
0x30bb   :  { %v5474_v37 = vpop.eup %5473 }
0x30bc   :  { %3725 = vrot.lane.b32.xlu0 %v5474_v37, %s5507_s10 }
0x30bd   :  { %v5476_v58 = vpop.eup %5475 }
0x30be   :  { %v3716_v60 = vadd.f32 1.0, %v5476_v58 }
0x30c0   :  { %3455 = vrot.lane.b32.xlu0 %v6617_v29, %s5509_s4  ;;  %5477 = vrcp.f32 %v3716_v60 }
0x30c4   :  { %3598 = vrot.lane.b32.xlu0 %v6668_v56, %s5509_s4 }
0x30ca   :  { %v5478_v62 = vpop.eup %5477 }
0x30cb   :  { %v3723_v51 = vmul.f32 %v5478_v62, %v3721_v34 }
0x312e   :  { %v3726_v63 = vpop.permute.xlu0 %3725 }
0x312f   :  { %v3728_v49 = vmul.f32 %v5478_v62, %v3726_v63 }
0x3131   :  { %3730 = vrot.lane.b32.xlu1 %v3728_v49, %s5509_s4 }
0x3132   :  { %v3456_v61 = vpop.permute.xlu0 %3455 }
0x3133   :  { %v3458_v2 = vsel %vm2889_vm10, %v3456_v61, 0.0 }
0x3134   :  { %3459 = vadd.xlane.f32.xlu0 %v3458_v2 }
0x3135   :  { %2886 = vrot.lane.b32.xlu1 %v6555_v27, %s5509_s4 }
0x3136   :  { %v3599_v6 = vpop.permute.xlu0 %3598 }
0x3137   :  { %v3601_v10 = vsel %vm3033_vm11, %v3599_v6, 0.0 }
0x3139   :  { %3030 = vrot.lane.b32.xlu1 %v6570_v59, %s5509_s4 }
0x313d   :  { %3175 = vrot.lane.b32.xlu1 %v6585_v47, %s5509_s4 }
0x31a3   :  { %v3731_v3 = vpop.permute.xlu1 %3730 }
0x31a4   :  { %v3733_v4 = vadd.f32 %v3731_v3, %v3723_v51 }
0x31a6   :  { %5479 = vtanh.f32 %v3733_v4 }
0x31a7   :  { %v2887_v19 = vpop.permute.xlu1 %2886 }
0x31a8   :  { %v2890_v30 = vsel %vm2889_vm10, %v2887_v19, 0.0 }
0x31a9   :  { %2891 = vadd.xlane.f32.xlu1 %v2890_v30 }
0x31ab   :  { %v3031_v52 = vpop.permute.xlu1 %3030 }
0x31ac   :  { %v3034_v32 = vsel %vm3033_vm11, %v3031_v52, 0.0 }
0x31ad   :  { %3035 = vadd.xlane.f32.xlu1 %v3034_v32 }
0x31af   :  { %v3176_v48 = vpop.permute.xlu1 %3175 }
0x31b0   :  { %v5480_v8 = vpop.eup %5479  ;;  %v3179_v41 = vsel %vm3178_vm12, %v3176_v48, 0.0 }
0x31b1   :  { %3602 = vadd.xlane.f32.xlu1 %v3601_v10  ;;  %3736 = vrot.lane.b32.xlu0 %v5480_v8, %s5507_s10  ;;  %v4102_v10 = vld [vmem:[%s6937_s17] ss:$0 sm:$0xff] }
0x31b5   :  { %3180 = vadd.xlane.f32.xlu1 %v3179_v41 }
0x31c1   :  { %v3460_v40 = vpop.xlane.xlu0 %3459 }
0x31c2   :  { %v3461_v15 = vmul.f32 0.033333335, %v3460_v40 }
0x31c4   :  { %v3462_v26 = vsub.f32 %v6617_v29, %v3461_v15  ;;  %v3778_v15 = vld [vmem:[%s6939_s18 + $0x8] sm:$0xff] }
0x31d0   :  { %2731 = vadd.xlane.f32.xlu0 %v2730_v55  ;;  %v4101_v55 = vld [vmem:[%s6938_s16] ss:$0 sm:$0xff] }
0x3223   :  { %v3737_v5 = vpop.permute.xlu0 %3736 }
0x3224   :  { %v6694_v1 = vmul.f32 %v5478_v62, %v3737_v5 }
0x3226   :  { %3741 = vrot.lane.b32.xlu0 %v6694_v1, %s5509_s4 }
0x3236   :  { %v2892_v36 = vpop.xlane.xlu1 %2891 }
0x3237   :  { %v2893_v16 = vmul.f32 0.033333335, %v2892_v36  ;;  %v3793_v36 = vld [vmem:[%s6939_s18 + $0x80] sm:$0xff] }
0x3239   :  { %v2894_v22 = vsub.f32 %v6555_v27, %v2893_v16 }
0x323a   :  { %v3036_v7 = vpop.xlane.xlu1 %3035 }
0x323b   :  { %v3037_v20 = vmul.f32 0.033333335, %v3036_v7  ;;  %v3777_v7 = vld [vmem:[%s6939_s18] sm:$0xff] }
0x323d   :  { %v3038_v53 = vsub.f32 %v6570_v59, %v3037_v20 }
0x323e   :  { %v3603_v11 = vpop.xlane.xlu1 %3602 }
0x3242   :  { %v3181_v44 = vpop.xlane.xlu1 %3180 }
0x3243   :  { %v3182_v59 = vmul.f32 0.033333335, %v3181_v44 }
0x3245   :  { %3320 = vadd.xlane.f32.xlu0 %v3319_v28  ;;  %v3183_v50 = vsub.f32 %v6585_v47, %v3182_v59  ;;  %v3604_v47 = vmul.f32 0.033333335, %v3603_v11  ;;  %v5235_v11 = vpack.c.bf16 %v3778_v15, %v3777_v7 }
0x3247   :  { %v3605_v58 = vsub.f32 %v6668_v56, %v3604_v47 }
0x325b   :  { %2736 = vrot.lane.b32.xlu0 %v4099_v39, %s5510_s6 }
0x325d   :  { %v2732_v57 = vpop.xlane.xlu0 %2731 }
0x325e   :  { %v2733_v18 = vmul.f32 0.033333335, %v2732_v57  ;;  %v3794_v57 = vld [vmem:[%s6939_s18 + $0x88] sm:$0xff] }
0x3260   :  { %v2734_v35 = vsub.f32 %v6537_v46, %v2733_v18 }
0x3298   :  { %v3742_v12 = vpop.permute.xlu0 %3741 }
0x3299   :  { %v3744_v0 = vsel %vm3178_vm12, %v3742_v12, 0.0  ;;  %v5233_v12 = vpack.c.bf16 %v3794_v57, %v3793_v36 }
0x329b   :  { %5234 = vmatprep.subr.bf16.mxu1 %v5233_v12 }
0x329c   :  { %5236 = vmatpush3.bf16.msra.mxu1 %v5235_v11  ;;  %v3802_v11 = vld [vmem:[%s6939_s18 + $0xc8] sm:$0xff] }
0x32d2   :  { %v3321_v9 = vpop.xlane.xlu0 %3320 }
0x32d3   :  { %v3322_v17 = vmul.f32 0.033333335, %v3321_v9 }
0x32d5   :  { %v3323_v14 = vsub.f32 %v6600_v42, %v3322_v17 }
0x32d6   :  { %v2737_v33 = vpop.permute.xlu0 %2736 }
0x32d7   :  { %v6707_v43 = vmul.f32 %v3462_v26, %v2737_v33  ;;  %v6709_v21 = vmul.f32 %v2894_v22, %v2737_v33  ;;  %v6716_v45 = vmul.f32 %v2737_v33, %v2734_v35  ;;  %v6718_v27 = vmul.f32 %v3038_v53, %v2737_v33 }
0x32d8   :  { %v6726_v25 = vmul.f32 %v3323_v14, %v2737_v33  ;;  %v6733_v31 = vmul.f32 %v3183_v50, %v2737_v33  ;;  %v6741_v60 = vmul.f32 %v3605_v58, %v2737_v33 }
0x32d9   :  { %v3464_v38 = vmul.f32 %v6707_v43, %v6707_v43  ;;  %v2896_v29 = vmul.f32 %v6709_v21, %v6709_v21  ;;  %v2740_v46 = vmul.f32 %v6716_v45, %v6716_v45  ;;  %v3040_v42 = vmul.f32 %v6718_v27, %v6718_v27 }
0x32da   :  { %v3325_v54 = vmul.f32 %v6726_v25, %v6726_v25  ;;  %v3185_v37 = vmul.f32 %v6733_v31, %v6733_v31  ;;  %v3607_v62 = vmul.f32 %v6741_v60, %v6741_v60 }
0x32db   :  { %3466 = vrot.lane.b32.xlu0 %v3464_v38, %s5509_s4  ;;  %2898 = vrot.lane.b32.xlu1 %v2896_v29, %s5509_s4  ;;  %v5511_v29 = vmov 1983009808  }
0x32dc   :  { %v2772_v59 = vunpack.c.l.s4 %v5511_v29  ;;  %v3788_v29 = vld [vmem:[%s6939_s18 + $0x58] sm:$0xff] }
0x32df   :  { %2742 = vrot.lane.b32.xlu0 %v2740_v46, %s5509_s4  ;;  %3042 = vrot.lane.b32.xlu1 %v3040_v42, %s5509_s4  ;;  %v3795_v46 = vld [vmem:[%s6939_s18 + $0x90] sm:$0xff]  ;;  %v3796_v42 = vld [vmem:[%s6939_s18 + $0x98] sm:$0xff] }
0x32e3   :  { %3327 = vrot.lane.b32.xlu0 %v3325_v54, %s5509_s4  ;;  %v5237_v54 = vpack.c.bf16 %v3796_v42, %v3795_v46 }
0x32e5   :  { %5238 = vmatprep.subr.bf16.mxu1 %v5237_v54  ;;  %v3806_v54 = vld [vmem:[%s6939_s18 + $0xe8] sm:$0xff] }
0x32e7   :  { %3187 = vrot.lane.b32.xlu0 %v3185_v37, %s5509_s4  ;;  %v3779_v37 = vld [vmem:[%s6939_s18 + $0x10] sm:$0xff] }
0x3303   :  { %3745 = vadd.xlane.f32.xlu1 %v3744_v0  ;;  %v3780_v0 = vld [vmem:[%s6939_s18 + $0x18] sm:$0xff] }
0x3304   :  { %v5239_v58 = vpack.c.bf16 %v3780_v0, %v3779_v37  ;;  %v3789_v37 = vld [vmem:[%s6939_s18 + $0x60] sm:$0xff] }
0x3306   :  { %5240 = vmatpush3.bf16.msra.mxu1 %v5239_v58 }
0x3314   :  { %3609 = vrot.lane.b32.xlu1 %v3607_v62, %s5509_s4 }
0x334d   :  { %v3467_v63 = vpop.permute.xlu0 %3466  ;;  %v2899_v49 = vpop.permute.xlu1 %2898 }
0x334e   :  { %v3469_v61 = vsel %vm2889_vm10, %v3467_v63, 0.0  ;;  %v2901_v2 = vsel %vm2889_vm10, %v2899_v49, 0.0  ;;  %v2773_v63 = vunpack.c.0.s8 %v2772_v59 }
0x334f   :  { %3470 = vadd.xlane.f32.xlu1 %v3469_v61  ;;  %2902 = vadd.xlane.f32.xlu0 %v2901_v2  ;;  %v3797_v2 = vld [vmem:[%s6939_s18 + $0xa0] sm:$0xff] }
0x3351   :  { %v2743_v34 = vpop.permute.xlu0 %2742  ;;  %v3043_v3 = vpop.permute.xlu1 %3042 }
0x3352   :  { %v2745_v51 = vsel %vm977_vm6, %v2743_v34, 0.0  ;;  %v3045_v56 = vsel %vm3033_vm11, %v3043_v3, 0.0  ;;  %v3798_v34 = vld [vmem:[%s6939_s18 + $0xa8] sm:$0xff] }
0x3353   :  { %2746 = vadd.xlane.f32.xlu0 %v2745_v51  ;;  %v5241_v3 = vpack.c.bf16 %v3798_v34, %v3797_v2 }
0x3355   :  { %v3328_v48 = vpop.permute.xlu0 %3327  ;;  %5242 = vmatprep.subr.bf16.mxu1 %v5241_v3  ;;  %v3792_v3 = vld [vmem:[%s6939_s18 + $0x78] sm:$0xff] }
0x3356   :  { %v3330_v41 = vsel %vm977_vm6, %v3328_v48, 0.0 }
0x3357   :  { %3046 = vadd.xlane.f32.xlu0 %v3045_v56  ;;  %v3781_v56 = vld [vmem:[%s6939_s18 + $0x20] sm:$0xff] }
0x3359   :  { %v3188_v40 = vpop.permute.xlu0 %3187 }
0x335a   :  { %v3190_v5 = vsel %vm3178_vm12, %v3188_v40, 0.0  ;;  %v3783_v40 = vld [vmem:[%s6939_s18 + $0x30] sm:$0xff] }
0x3390   :  { %v3746_v4 = vpop.xlane.xlu1 %3745 }
0x3391   :  { %v3747_v19 = vmul.f32 0.033333335, %v3746_v4  ;;  %v3782_v4 = vld [vmem:[%s6939_s18 + $0x28] sm:$0xff] }
0x3393   :  { %v3748_v30 = vsub.f32 %v6694_v1, %v3747_v19 }
0x3394   :  { %v3610_v52 = vpop.permute.xlu1 %3609 }
0x3395   :  { %v6751_v32 = vmul.f32 %v3748_v30, %v2737_v33  ;;  %v3612_v6 = vsel %vm3033_vm11, %v3610_v52, 0.0 }
0x3396   :  { %3613 = vadd.xlane.f32.xlu0 %v3612_v6  ;;  %v5243_v6 = vpack.c.bf16 %v3782_v4, %v3781_v56 }
0x3397   :  { %v3750_v8 = vmul.f32 %v6751_v32, %v6751_v32 }
0x3398   :  { %5244 = vmatpush3.bf16.msra.mxu1 %v5243_v6 }
0x3399   :  { %3752 = vrot.lane.b32.xlu1 %v3750_v8, %s5509_s4 }
0x33ac   :  { %2766 = vrot.lane.b32.xlu0 %v4102_v10, %s5510_s6  ;;  %v6808_v10 = vsub.s32 %v2773_v63, %v5656_v23  ;;  %v3800_v23 = vld [vmem:[%s6939_s18 + $0xb8] sm:$0xff] }
0x33ad   :  { %v3808_v63 = vld [vmem:[%s6939_s18 + $0xf8] sm:$0xff] }
0x33bd   :  { %3331 = vadd.xlane.f32.xlu1 %v3330_v41 }
0x33ce   :  { %2757 = vrot.lane.b32.xlu1 %v4101_v55, %s5510_s6 }
0x33dc   :  { %v3471_v1 = vpop.xlane.xlu1 %3470  ;;  %v2903_v39 = vpop.xlane.xlu0 %2902 }
0x33dd   :  { %v2904_v20 = vmul.f32 0.033333335, %v2903_v39  ;;  %v3472_v18 = vmul.f32 0.033333335, %v3471_v1  ;;  %v3784_v1 = vld [vmem:[%s6939_s18 + $0x38] sm:$0xff] }
0x33de   :  { %v5247_v36 = vpack.c.bf16 %v3784_v1, %v3783_v40 }
0x33df   :  { %v2905_v22 = vadd.f32 1e-05, %v2904_v20  ;;  %v3473_v33 = vadd.f32 1e-05, %v3472_v18  ;;  %v3785_v20 = vld [vmem:[%s6939_s18 + $0x40] sm:$0xff]  ;;  %v3786_v18 = vld [vmem:[%s6939_s18 + $0x48] sm:$0xff] }
0x33e0   :  { %v2747_v16 = vpop.xlane.xlu0 %2746 }
0x33e1   :  { %v2748_v17 = vmul.f32 0.033333335, %v2747_v16  ;;  %5481 = vrsqrt.f32 %v2905_v22 }
0x33e2   :  { %5483 = vrsqrt.f32 %v3473_v33 }
0x33e3   :  { %v2749_v53 = vadd.f32 1e-05, %v2748_v17  ;;  %v5251_v17 = vpack.c.bf16 %v3786_v18, %v3785_v20 }
0x33e4   :  { %v3047_v9 = vpop.xlane.xlu0 %3046 }
0x33e5   :  { %5485 = vrsqrt.f32 %v2749_v53  ;;  %v3048_v14 = vmul.f32 0.033333335, %v3047_v9 }
0x33e7   :  { %v3049_v38 = vadd.f32 1e-05, %v3048_v14 }
0x33eb   :  { %v5482_v50 = vpop.eup %5481 }
0x33ec   :  { %v5484_v47 = vpop.eup %5483  ;;  %v2907_v51 = vmul.f32 %v5482_v50, %v6709_v21  ;;  %v3805_v50 = vld [vmem:[%s6939_s18 + $0xe0] sm:$0xff] }
0x33ed   :  { %v3475_v19 = vmul.f32 %v5484_v47, %v6707_v43  ;;  %v5257_v58 = vpack.c.bf16 %v3806_v54, %v3805_v50 }
0x33ef   :  { %v5486_v62 = vpop.eup %5485 }
0x33f0   :  { %v2751_v30 = vmul.f32 %v5486_v62, %v6716_v45  ;;  %v3799_v45 = vld [vmem:[%s6939_s18 + $0xb0] sm:$0xff] }
0x33f1   :  { %v3807_v62 = vld [vmem:[%s6939_s18 + $0xf0] sm:$0xff] }
0x33f2   :  { %3191 = vadd.xlane.f32.xlu1 %v3190_v5  ;;  %v5245_v5 = vpack.c.bf16 %v3800_v23, %v3799_v45  ;;  %v5261_v34 = vpack.c.bf16 %v3808_v63, %v3807_v62 }
0x33f4   :  { %5246 = vmatprep.subr.bf16.mxu1 %v5245_v5 }
0x33f5   :  { %5248 = vmatpush3.bf16.msra.mxu1 %v5247_v36 }
0x340b   :  { %v3753_v28 = vpop.permute.xlu1 %3752 }
0x340c   :  { %v3755_v13 = vsel %vm3178_vm12, %v3753_v28, 0.0 }
0x340d   :  { %3756 = vadd.xlane.f32.xlu0 %v3755_v13 }
0x3423   :  { %v3614_v26 = vpop.xlane.xlu0 %3613 }
0x3424   :  { %v3615_v35 = vmul.f32 0.033333335, %v3614_v26 }
0x3426   :  { %v3616_v44 = vadd.f32 1e-05, %v3615_v35  ;;  %v3803_v35 = vld [vmem:[%s6939_s18 + $0xd0] sm:$0xff] }
0x3427   :  { %v6812_v48 = vpop.permute.xlu0 %2766 }
0x3428   :  { %5487 = vrsqrt.f32 %v3616_v44  ;;  %v3804_v44 = vld [vmem:[%s6939_s18 + $0xd8] sm:$0xff] }
0x3429   :  { %5489 = vrsqrt.f32 %v3049_v38  ;;  %v5253_v38 = vpack.c.bf16 %v3804_v44, %v3803_v35 }
0x3432   :  { %v5488_v8 = vpop.eup %5487 }
0x3433   :  { %v3618_v28 = vmul.f32 %v5488_v8, %v6741_v60  ;;  %v5490_v57 = vpop.eup %5489  ;;  %v3801_v60 = vld [vmem:[%s6939_s18 + $0xc0] sm:$0xff] }
0x3434   :  { %v5249_v9 = vpack.c.bf16 %v3802_v11, %v3801_v60  ;;  %v3051_v26 = vmul.f32 %v5490_v57, %v6718_v27  ;;  %v3787_v27 = vld [vmem:[%s6939_s18 + $0x50] sm:$0xff] }
0x3435   :  { %v5255_v46 = vpack.c.bf16 %v3788_v29, %v3787_v27 }
0x3436   :  { %5250 = vmatprep.subr.bf16.mxu1 %v5249_v9 }
0x3437   :  { %5252 = vmatpush3.bf16.msra.mxu1 %v5251_v17 }
0x3438   :  { %5254 = vmatprep.subr.bf16.mxu1 %v5253_v38 }
0x343b   :  { %5256 = vmatpush3.bf16.msra.mxu1 %v5255_v46 }
0x343c   :  { %5258 = vmatprep.subr.bf16.mxu1 %v5257_v58 }
0x344a   :  { %v3332_v49 = vpop.xlane.xlu1 %3331 }
0x344b   :  { %v3333_v61 = vmul.f32 0.033333335, %v3332_v49 }
0x344d   :  { %v3334_v52 = vadd.f32 1e-05, %v3333_v61 }
0x344e   :  { %v6810_v21 = vpop.permute.xlu1 %2757 }
0x344f   :  { %5491 = vrsqrt.f32 %v3334_v52  ;;  %v2760_v41 = vmul.f32 %v6810_v21, %v2751_v30  ;;  %v2908_v55 = vmul.f32 %v2907_v51, %v6810_v21  ;;  %v3476_v43 = vmul.f32 %v3475_v19, %v6810_v21  ;;  %v3791_v51 = vld [vmem:[%s6939_s18 + $0x70] sm:$0xff] }
0x3450   :  { %v3619_v16 = vmul.f32 %v3618_v28, %v6810_v21  ;;  %v3052_v14 = vmul.f32 %v3051_v26, %v6810_v21  ;;  %v5263_v19 = vpack.c.bf16 %v3792_v3, %v3791_v51 }
0x3451   :  { %v2769_v13 = vadd.f32 %v6812_v48, %v2760_v41  ;;  %v2909_v39 = vadd.f32 %v2908_v55, %v6812_v48  ;;  %v3477_v15 = vadd.f32 %v3476_v43, %v6812_v48 }
0x3452   :  { %v3620_v53 = vadd.f32 %v3619_v16, %v6812_v48  ;;  %v3053_v61 = vadd.f32 %v3052_v14, %v6812_v48 }
0x3453   :  { %v2777_v7 = vrot.slane %v2769_v13, %v6808_v10  ;;  %v2917_v12 = vrot.slane %v2909_v39, %v6808_v10  ;;  %v3485_v33 = vrot.slane %v3477_v15, %v6808_v10 }
0x3454   :  { %v3622_v47 = vcombine.high %v3620_v53, %v3620_v53  ;;  %v3055_v52 = vcombine.high %v3053_v61, %v3053_v61 }
0x3455   :  { %2778 = vrot.lane.b32.xlu1 %v2777_v7, %s5509_s4  ;;  %v2918_v22 = vcombine.high %v2917_v12, %v2917_v12  ;;  %v3486_v0 = vcombine.high %v3485_v33, %v3485_v33  ;;  %v4119_v33 = vld [vmem:[%s6940_s20] ss:$0 sm:$0xff] }
0x3456   :  { %v3629_v4 = vrot.slane %v3622_v47, %v6808_v10  ;;  %v3062_v6 = vrot.slane %v3055_v52, %v6808_v10 }
0x3459   :  { %v5492_v59 = vpop.eup %5491  ;;  %2919 = vrot.lane.b32.xlu1 %v2918_v22, %s5507_s10 }
0x345a   :  { %v3336_v42 = vmul.f32 %v5492_v59, %v6726_v25  ;;  %v3790_v25 = vld [vmem:[%s6939_s18 + $0x68] sm:$0xff] }
0x345b   :  { %v5259_v2 = vpack.c.bf16 %v3790_v25, %v3789_v37 }
0x345c   :  { %v3337_v49 = vmul.f32 %v3336_v42, %v6810_v21 }
0x345d   :  { %3487 = vrot.lane.b32.xlu1 %v3486_v0, %s5507_s10  ;;  %5260 = vmatpush3.bf16.msra.mxu1 %v5259_v2 }
0x345e   :  { %v3338_v56 = vadd.f32 %v3337_v49, %v6812_v48  ;;  %5262 = vmatprep.subr.bf16.mxu1 %v5261_v34 }
0x3460   :  { %v3346_v30 = vrot.slane %v3338_v56, %v6808_v10 }
0x3461   :  { %3630 = vrot.lane.b32.xlu1 %v3629_v4, %s5510_s6  ;;  %5264 = vmatpush3.bf16.msra.mxu1 %v5263_v19 }
0x3462   :  { %3347 = vrot.lane.b32.xlu0 %v3346_v30, %s5509_s4 }
0x3466   :  { %3063 = vrot.lane.b32.xlu0 %v3062_v6, %s5510_s6 }
0x347f   :  { %v3192_v41 = vpop.xlane.xlu1 %3191 }
0x3480   :  { %v3193_v43 = vmul.f32 0.033333335, %v3192_v41 }
0x3482   :  { %v3194_v23 = vadd.f32 1e-05, %v3193_v43 }
0x349a   :  { %v3757_v8 = vpop.xlane.xlu0 %3756 }
0x349b   :  { %v3758_v55 = vmul.f32 0.033333335, %v3757_v8 }
0x349d   :  { %v3759_v45 = vadd.f32 1e-05, %v3758_v55 }
0x349f   :  { %5493 = vrsqrt.f32 %v3759_v45 }
0x34a0   :  { %5495 = vrsqrt.f32 %v3194_v23 }
0x34a9   :  { %v5494_v40 = vpop.eup %5493 }
0x34aa   :  { %v5496_v5 = vpop.eup %5495  ;;  %v3761_v1 = vmul.f32 %v5494_v40, %v6751_v32 }
0x34ab   :  { %v3196_v28 = vmul.f32 %v5496_v5, %v6733_v31 }
0x34ac   :  { %v3762_v13 = vmul.f32 %v3761_v1, %v6810_v21 }
0x34ad   :  { %v3197_v36 = vmul.f32 %v3196_v28, %v6810_v21 }
0x34ae   :  { %v3763_v57 = vadd.f32 %v3762_v13, %v6812_v48 }
0x34af   :  { %v3198_v12 = vadd.f32 %v3197_v36, %v6812_v48 }
0x34b0   :  { %v3765_v15 = vcombine.high %v3763_v57, %v3763_v57 }
0x34b1   :  { %v3200_v60 = vcombine.high %v3198_v12, %v3198_v12 }
0x34b2   :  { %v3772_v32 = vrot.slane %v3765_v15, %v6808_v10 }
0x34b3   :  { %v3207_v11 = vrot.slane %v3200_v60, %v6808_v10 }
0x34b4   :  { %v3773_v9 = vcombine.high %v3772_v32, %v3772_v32 }
0x34b5   :  { %v3208_v18 = vcombine.high %v3207_v11, %v3207_v11 }
0x34c7   :  { %v2779_v39 = vpop.permute.xlu1 %2778 }
0x34c8   :  { %2781 = vst.msk [vmem:[#allocation5] sm:$0x3] %vm977_vm6, %v2779_v39 }
0x34cb   :  { %v2920_v7 = vpop.permute.xlu1 %2919 }
0x34cc   :  { %2922 = vst.msk [vmem:[#allocation5] sm:$0x3] %vm1078_vm8, %v2920_v7 }
0x34cf   :  { %v3488_v16 = vpop.permute.xlu1 %3487 }
0x34d3   :  { %v3631_v21 = vpop.permute.xlu1 %3630 }
0x34d4   :  { %v3348_v31 = vpop.permute.xlu0 %3347 }
0x34d5   :  { %3350 = vst.msk [vmem:[#allocation5 + $0x2] sm:$0x3] %vm977_vm6, %v3348_v31 }
0x34d6   :  { %3490 = vst.msk [vmem:[#allocation5 + $0x2] sm:$0x3] %vm1078_vm8, %v3488_v16 }
0x34d7   :  { %3633 = vst.msk [vmem:[#allocation5 + $0x2] sm:$0x3] %vm3066_vm14, %v3631_v21 }
0x34d8   :  { %v3064_v20 = vpop.permute.xlu0 %3063  ;;  %3775 = vst.msk [vmem:[#allocation5 + $0x2] sm:$0x3] %vm3210_vm15, %v3773_v9 }
0x34d9   :  { %3067 = vst.msk [vmem:[#allocation5] sm:$0x3] %vm3066_vm14, %v3064_v20 }
0x34da   :  { %3211 = vst.msk [vmem:[#allocation5] sm:$0x3] %vm3210_vm15, %v3208_v18 }
0x34e1   :  { %v4118_v48 = vld.sshfl [vmem:[#allocation5] sm:$0x33 pattern:$0x76325410] }
0x34e2   :  { %v3901_v17 = vcombine.high %v4118_v48, %v4118_v48 }
0x34e4   :  { %3968 = vmatprep.mubr.f32.mxu1 %v3901_v17 }
0x34e5   :  { %3969 = vmatmul.mubr.f32.vlgmr.msra.gmra.mrb[30].mxu1 %v4118_v48 }
0x35b8   :  { %v4395_v26 = vpop.f32.mrb[30].mxu1 }
0x35b9   :  { %v4396_v22 = vpop.f32.mrb[31].mxu1 }
0x35ba   :  { %v4397_v10 = vadd.f32 %v4396_v22, %v4395_v26 }
0x35bc   :  { %v3971_v53 = vadd.f32 %v4397_v10, %v6664_v24 }
0x35be   :  { %v3981_v35 = vadd.f32 %v4119_v33, %v3971_v53 }
0x35c0   :  { %3982 = vst [vmem:[%s6941_s21] sm:$0x3] %v3981_v35 }

</bundles_post_ra>
